<compile_context>
chip_gen: v5e
topology: v5e:2x2
jax: 0.10.0
libtpu: 0.0.40
codegen_flags: <defaults>
</compile_context>

<pallas_src>
import jax
import jax.numpy as jnp
from jax.experimental import pallas as pl
from jax.experimental.pallas import tpu as pltpu

# Padded/logical dimensions.
_D_IN = 100
_D_IN_PAD = 128       # 100 -> 128 (lane / K alignment)
_H1, _H2, _H3 = 256, 512, 1024
_D_OUT = 784
_D_OUT_PAD = 896      # 784 -> 896 = 7 * 128 (lane-dense output stores)


def _round_up(n, m):
    return ((n + m - 1) // m) * m


def _generator_kernel(x_ref,
                      w1_ref, b1_ref,
                      w2_ref, b2_ref,
                      w3_ref, b3_ref,
                      w4_ref, b4_ref,
                      o_ref):
    """Fused 4-layer MLP for one batch tile: (Linear+ReLU) x3, Linear+Tanh."""
    x = x_ref[...]  # (TB, 128) bf16

    # Layer 1: (TB,128) @ (128,256) -> f32 acc, bias+ReLU in f32, down to bf16.
    h = jnp.dot(x, w1_ref[...], preferred_element_type=jnp.float32) + b1_ref[...]
    h = jnp.maximum(h, 0.0).astype(jnp.bfloat16)

    # Layer 2: (TB,256) @ (256,512)
    h = jnp.dot(h, w2_ref[...], preferred_element_type=jnp.float32) + b2_ref[...]
    h = jnp.maximum(h, 0.0).astype(jnp.bfloat16)

    # Layer 3: (TB,512) @ (512,1024)
    h = jnp.dot(h, w3_ref[...], preferred_element_type=jnp.float32) + b3_ref[...]
    h = jnp.maximum(h, 0.0).astype(jnp.bfloat16)

    # Layer 4: (TB,1024) @ (1024,896) + Tanh.
    # Cast acc+bias to bf16 before tanh (bf16 EUP on v6e/v7x) and store bf16.
    h = jnp.dot(h, w4_ref[...], preferred_element_type=jnp.float32) + b4_ref[...]
    o_ref[...] = jnp.tanh(h.astype(jnp.bfloat16)).astype(o_ref.dtype)


def _pick_batch_tile(B):
    """Choose batch tile size.

    - Very large B: TB=512 (amortizes ~0.35us per-grid-step overhead).
    - Mid-size B:   split into >= 2 tiles so v7x's second TensorCore has work.
    - Tiny B:       single tile rounded up to 16 rows (bf16 sublane packing).
    """
    if B >= 1024:
        return 512
    if B >= 32:
        half = _round_up(pl.cdiv(B, 2), 16)
        return min(256, max(16, half))
    return max(16, _round_up(B, 16))


def _resident_spec(a):
    """Full-array block, constant index -> DMA'd once, stays VMEM-resident.

    Requested single-buffered (no point double-buffering a constant block)."""
    idx = lambda i: (0,) * a.ndim
    try:
        return pl.BlockSpec(a.shape, idx, pipeline_mode=pl.Buffered(1))
    except TypeError:  # older jax without pipeline_mode kwarg
        return pl.BlockSpec(a.shape, idx)


@jax.jit
def generator_forward(x, params):
    """x: (B, 100) float32 -> (B, 1, 28, 28) float32."""
    (w1, b1), (w2, b2), (w3, b3), (w4, b4) = params
    B = x.shape[0]

    TB = _pick_batch_tile(B)
    B_pad = _round_up(B, TB)
    num_tiles = B_pad // TB

    # ---- Layout prep (cheap XLA plumbing, not kernel work) -----------------
    x_p = jnp.zeros((B_pad, _D_IN_PAD), jnp.bfloat16)
    x_p = x_p.at[:B, :_D_IN].set(x.astype(jnp.bfloat16))

    w1_p = jnp.zeros((_D_IN_PAD, _H1), jnp.bfloat16).at[:_D_IN, :].set(
        w1.astype(jnp.bfloat16))
    w2_p = w2.astype(jnp.bfloat16)
    w3_p = w3.astype(jnp.bfloat16)
    w4_p = jnp.zeros((_H3, _D_OUT_PAD), jnp.bfloat16).at[:, :_D_OUT].set(
        w4.astype(jnp.bfloat16))

    b1_p = b1.astype(jnp.float32)
    b2_p = b2.astype(jnp.float32)
    b3_p = b3.astype(jnp.float32)
    b4_p = jnp.zeros((1, _D_OUT_PAD), jnp.float32).at[:, :_D_OUT].set(
        b4.astype(jnp.float32))

    # ---- BlockSpecs --------------------------------------------------------
    in_specs = [
        pl.BlockSpec((TB, _D_IN_PAD), lambda i: (i, 0)),   # x tile (pipelined)
        _resident_spec(w1_p), _resident_spec(b1_p),
        _resident_spec(w2_p), _resident_spec(b2_p),
        _resident_spec(w3_p), _resident_spec(b3_p),
        _resident_spec(w4_p), _resident_spec(b4_p),
    ]
    out_spec = pl.BlockSpec((TB, _D_OUT_PAD), lambda i: (i, 0))

    # ---- Cost estimate (helps XLA schedule around the custom call) ---------
    flops = 2 * B_pad * (_D_IN_PAD * _H1 + _H1 * _H2 + _H2 * _H3
                         + _H3 * _D_OUT_PAD)
    bytes_accessed = (
        x_p.size * 2
        + (w1_p.size + w2_p.size + w3_p.size + w4_p.size) * 2
        + (b1_p.size + b2_p.size + b3_p.size + b4_p.size) * 4
        + B_pad * _D_OUT_PAD * 2                           # bf16 output
    )
    cost = pl.CostEstimate(flops=flops,
                           transcendentals=B_pad * _D_OUT_PAD,
                           bytes_accessed=bytes_accessed)

    out = pl.pallas_call(
        _generator_kernel,
        out_shape=jax.ShapeDtypeStruct((B_pad, _D_OUT_PAD), jnp.bfloat16),
        grid=(num_tiles,),
        in_specs=in_specs,
        out_specs=out_spec,
        compiler_params=pltpu.CompilerParams(
            dimension_semantics=("parallel",),   # megacore sharding on v7x
            vmem_limit_bytes=32 << 20,           # ~8 MB working set at TB=512
        ),
        cost_estimate=cost,
    )(x_p, w1_p, b1_p, w2_p, b2_p, w3_p, b3_p, w4_p, b4_p)

    # Drop batch/lane padding, cast back to f32, then match PyTorch view().
    out = out[:B, :_D_OUT].astype(jnp.float32)
    return out.reshape(B, 1, 28, 28)


def init_params(key):
    """Deterministic synthetic params. Weights stored as (in, out); bias (1, out)."""
    dims = [(100, 256), (256, 512), (512, 1024), (1024, 784)]
    params = []
    for (fan_in, fan_out) in dims:
        key, kw, kb = jax.random.split(key, 3)
        bound = 1.0 / jnp.sqrt(fan_in)  # mimic PyTorch Linear init range
        w = jax.random.uniform(kw, (fan_in, fan_out), jnp.float32, -bound, bound)
        b = jax.random.uniform(kb, (1, fan_out), jnp.float32, -bound, bound)
        params.append((w, b))
    return params


if __name__ == "__main__":
    key = jax.random.PRNGKey(0)
    key, kx = jax.random.split(key)

    B = 2
    x = jax.random.normal(kx, (B, 100), jnp.float32)  # latent noise vectors
    params = init_params(key)

    y = generator_forward(x, params)
    jax.block_until_ready(y)

    assert y.shape == (B, 1, 28, 28), y.shape
    assert y.dtype == jnp.float32
    # Tanh output range sanity check.
    assert float(jnp.max(jnp.abs(y))) <= 1.0 + 1e-6

    # Cross-check against a pure-JAX f32 reference (bf16 weights/out => loose tol).
    def ref(xx, ps):
        h = xx
        for i, (w, b) in enumerate(ps):
            h = h @ w + b
            h = jnp.maximum(h, 0.0) if i < 3 else jnp.tanh(h)
        return h.reshape(xx.shape[0], 1, 28, 28)

    y_ref = ref(x, params)
    assert float(jnp.max(jnp.abs(y - y_ref))) < 5e-2

    print("KERNEL_OK")
</pallas_src>

<mosaic_0001>
module attributes {stable_mosaic.version = 11 : i64} {
  func.func @_generator_kernel(%arg0: i32, %arg1: memref<16x128xbf16, #tpu.memory_space<vmem>>, %arg2: memref<128x256xbf16, #tpu.memory_space<vmem>>, %arg3: memref<1x256xf32, #tpu.memory_space<vmem>>, %arg4: memref<256x512xbf16, #tpu.memory_space<vmem>>, %arg5: memref<1x512xf32, #tpu.memory_space<vmem>>, %arg6: memref<512x1024xbf16, #tpu.memory_space<vmem>>, %arg7: memref<1x1024xf32, #tpu.memory_space<vmem>>, %arg8: memref<1024x896xbf16, #tpu.memory_space<vmem>>, %arg9: memref<1x896xf32, #tpu.memory_space<vmem>>, %arg10: memref<16x896xbf16, #tpu.memory_space<vmem>>) attributes {dimension_semantics = [#tpu.dimension_semantics<parallel>], iteration_bounds = array<i64: 1>, scalar_prefetch = 0 : i64, scratch_operands = 0 : i64, tpu.core_type = #tpu.core_type<tc>, window_params = [{transform_indices = @transform_0, window_bounds = array<i64: 16, 128>}, {pipeline_mode = #tpu.pipeline_mode<synchronous>, transform_indices = @transform_1, window_bounds = array<i64: 128, 256>}, {pipeline_mode = #tpu.pipeline_mode<synchronous>, transform_indices = @transform_2, window_bounds = array<i64: 1, 256>}, {pipeline_mode = #tpu.pipeline_mode<synchronous>, transform_indices = @transform_3, window_bounds = array<i64: 256, 512>}, {pipeline_mode = #tpu.pipeline_mode<synchronous>, transform_indices = @transform_4, window_bounds = array<i64: 1, 512>}, {pipeline_mode = #tpu.pipeline_mode<synchronous>, transform_indices = @transform_5, window_bounds = array<i64: 512, 1024>}, {pipeline_mode = #tpu.pipeline_mode<synchronous>, transform_indices = @transform_6, window_bounds = array<i64: 1, 1024>}, {pipeline_mode = #tpu.pipeline_mode<synchronous>, transform_indices = @transform_7, window_bounds = array<i64: 1024, 896>}, {pipeline_mode = #tpu.pipeline_mode<synchronous>, transform_indices = @transform_8, window_bounds = array<i64: 1, 896>}, {transform_indices = @transform_9, window_bounds = array<i64: 16, 896>}]} {
    %c0 = arith.constant 0 : index
    %c0_0 = arith.constant 0 : index
    %0 = vector.load %arg1[%c0, %c0_0] : memref<16x128xbf16, #tpu.memory_space<vmem>>, vector<16x128xbf16>
    %c0_1 = arith.constant 0 : index
    %c0_2 = arith.constant 0 : index
    %1 = vector.load %arg2[%c0_1, %c0_2] : memref<128x256xbf16, #tpu.memory_space<vmem>>, vector<128x256xbf16>
    %cst = arith.constant dense<0.000000e+00> : vector<16x256xf32>
    %2 = tpu.matmul %0, %1, %cst {dimension_numbers = #tpu.dot_dimension_numbers<[1], [0], [0], [1], [0, 0, 1, 1], [], []>} : vector<16x128xbf16>, vector<128x256xbf16>, vector<16x256xf32> -> vector<16x256xf32>
    %c0_3 = arith.constant 0 : index
    %c0_4 = arith.constant 0 : index
    %3 = vector.load %arg3[%c0_3, %c0_4] : memref<1x256xf32, #tpu.memory_space<vmem>>, vector<1x256xf32>
    %4 = vector.broadcast %3 : vector<1x256xf32> to vector<16x256xf32>
    %5 = arith.addf %2, %4 : vector<16x256xf32>
    %cst_5 = arith.constant 0.000000e+00 : f32
    %6 = vector.broadcast %cst_5 : f32 to vector<16x256xf32>
    %7 = arith.maximumf %5, %6 : vector<16x256xf32>
    %8 = arith.truncf %7 : vector<16x256xf32> to vector<16x256xbf16>
    %c0_6 = arith.constant 0 : index
    %c0_7 = arith.constant 0 : index
    %9 = vector.load %arg4[%c0_6, %c0_7] : memref<256x512xbf16, #tpu.memory_space<vmem>>, vector<256x512xbf16>
    %cst_8 = arith.constant dense<0.000000e+00> : vector<16x512xf32>
    %10 = tpu.matmul %8, %9, %cst_8 {dimension_numbers = #tpu.dot_dimension_numbers<[1], [0], [0], [1], [0, 0, 1, 1], [], []>} : vector<16x256xbf16>, vector<256x512xbf16>, vector<16x512xf32> -> vector<16x512xf32>
    %c0_9 = arith.constant 0 : index
    %c0_10 = arith.constant 0 : index
    %11 = vector.load %arg5[%c0_9, %c0_10] : memref<1x512xf32, #tpu.memory_space<vmem>>, vector<1x512xf32>
    %12 = vector.broadcast %11 : vector<1x512xf32> to vector<16x512xf32>
    %13 = arith.addf %10, %12 : vector<16x512xf32>
    %cst_11 = arith.constant 0.000000e+00 : f32
    %14 = vector.broadcast %cst_11 : f32 to vector<16x512xf32>
    %15 = arith.maximumf %13, %14 : vector<16x512xf32>
    %16 = arith.truncf %15 : vector<16x512xf32> to vector<16x512xbf16>
    %c0_12 = arith.constant 0 : index
    %c0_13 = arith.constant 0 : index
    %17 = vector.load %arg6[%c0_12, %c0_13] : memref<512x1024xbf16, #tpu.memory_space<vmem>>, vector<512x1024xbf16>
    %cst_14 = arith.constant dense<0.000000e+00> : vector<16x1024xf32>
    %18 = tpu.matmul %16, %17, %cst_14 {dimension_numbers = #tpu.dot_dimension_numbers<[1], [0], [0], [1], [0, 0, 1, 1], [], []>} : vector<16x512xbf16>, vector<512x1024xbf16>, vector<16x1024xf32> -> vector<16x1024xf32>
    %c0_15 = arith.constant 0 : index
    %c0_16 = arith.constant 0 : index
    %19 = vector.load %arg7[%c0_15, %c0_16] : memref<1x1024xf32, #tpu.memory_space<vmem>>, vector<1x1024xf32>
    %20 = vector.broadcast %19 : vector<1x1024xf32> to vector<16x1024xf32>
    %21 = arith.addf %18, %20 : vector<16x1024xf32>
    %cst_17 = arith.constant 0.000000e+00 : f32
    %22 = vector.broadcast %cst_17 : f32 to vector<16x1024xf32>
    %23 = arith.maximumf %21, %22 : vector<16x1024xf32>
    %24 = arith.truncf %23 : vector<16x1024xf32> to vector<16x1024xbf16>
    %c0_18 = arith.constant 0 : index
    %c0_19 = arith.constant 0 : index
    %25 = vector.load %arg8[%c0_18, %c0_19] : memref<1024x896xbf16, #tpu.memory_space<vmem>>, vector<1024x896xbf16>
    %cst_20 = arith.constant dense<0.000000e+00> : vector<16x896xf32>
    %26 = tpu.matmul %24, %25, %cst_20 {dimension_numbers = #tpu.dot_dimension_numbers<[1], [0], [0], [1], [0, 0, 1, 1], [], []>} : vector<16x1024xbf16>, vector<1024x896xbf16>, vector<16x896xf32> -> vector<16x896xf32>
    %c0_21 = arith.constant 0 : index
    %c0_22 = arith.constant 0 : index
    %27 = vector.load %arg9[%c0_21, %c0_22] : memref<1x896xf32, #tpu.memory_space<vmem>>, vector<1x896xf32>
    %28 = vector.broadcast %27 : vector<1x896xf32> to vector<16x896xf32>
    %29 = arith.addf %26, %28 : vector<16x896xf32>
    %30 = arith.truncf %29 : vector<16x896xf32> to vector<16x896xbf16>
    %31 = math.tanh %30 : vector<16x896xbf16>
    %c0_23 = arith.constant 0 : index
    %c0_24 = arith.constant 0 : index
    %32 = vector.load %arg10[%c0_23, %c0_24] : memref<16x896xbf16, #tpu.memory_space<vmem>>, vector<16x896xbf16>
    tpu.vector_store %arg10[%c0_23, %c0_24], %31 {strides = array<i32>} : memref<16x896xbf16, #tpu.memory_space<vmem>>, vector<16x896xbf16>,
    return
  }
  func.func @transform_0(%arg0: i32) -> (i32, i32) {
    %c0_i32 = arith.constant 0 : i32
    %c0_i32_0 = arith.constant 0 : i32
    return %arg0, %c0_i32 : i32, i32
  }
  func.func @transform_1(%arg0: i32) -> (i32, i32) {
    %c0_i32 = arith.constant 0 : i32
    %c0_i32_0 = arith.constant 0 : i32
    %c0_i32_1 = arith.constant 0 : i32
    return %c0_i32, %c0_i32_0 : i32, i32
  }
  func.func @transform_2(%arg0: i32) -> (i32, i32) {
    %c0_i32 = arith.constant 0 : i32
    %c0_i32_0 = arith.constant 0 : i32
    %c0_i32_1 = arith.constant 0 : i32
    return %c0_i32, %c0_i32_0 : i32, i32
  }
  func.func @transform_3(%arg0: i32) -> (i32, i32) {
    %c0_i32 = arith.constant 0 : i32
    %c0_i32_0 = arith.constant 0 : i32
    %c0_i32_1 = arith.constant 0 : i32
    return %c0_i32, %c0_i32_0 : i32, i32
  }
  func.func @transform_4(%arg0: i32) -> (i32, i32) {
    %c0_i32 = arith.constant 0 : i32
    %c0_i32_0 = arith.constant 0 : i32
    %c0_i32_1 = arith.constant 0 : i32
    return %c0_i32, %c0_i32_0 : i32, i32
  }
  func.func @transform_5(%arg0: i32) -> (i32, i32) {
    %c0_i32 = arith.constant 0 : i32
    %c0_i32_0 = arith.constant 0 : i32
    %c0_i32_1 = arith.constant 0 : i32
    return %c0_i32, %c0_i32_0 : i32, i32
  }
  func.func @transform_6(%arg0: i32) -> (i32, i32) {
    %c0_i32 = arith.constant 0 : i32
    %c0_i32_0 = arith.constant 0 : i32
    %c0_i32_1 = arith.constant 0 : i32
    return %c0_i32, %c0_i32_0 : i32, i32
  }
  func.func @transform_7(%arg0: i32) -> (i32, i32) {
    %c0_i32 = arith.constant 0 : i32
    %c0_i32_0 = arith.constant 0 : i32
    %c0_i32_1 = arith.constant 0 : i32
    return %c0_i32, %c0_i32_0 : i32, i32
  }
  func.func @transform_8(%arg0: i32) -> (i32, i32) {
    %c0_i32 = arith.constant 0 : i32
    %c0_i32_0 = arith.constant 0 : i32
    %c0_i32_1 = arith.constant 0 : i32
    return %c0_i32, %c0_i32_0 : i32, i32
  }
  func.func @transform_9(%arg0: i32) -> (i32, i32) {
    %c0_i32 = arith.constant 0 : i32
    %c0_i32_0 = arith.constant 0 : i32
    return %arg0, %c0_i32 : i32, i32
  }
}

</mosaic_0001>

<bundles_post_ra>
// kernel: generator_forward.1
= control target key start
LH: loop header
LB: loop body
LE: loop exit
PB: predicated region body
PF: predicated region fallthrough
CT: control target
= control target key end

     0   :  { %s15482_s1 = inlined_call_operand.vmem [shape: bf16[128,256], index: 1, kind: input, shape index: {}]   ;;  %s15483_s3 = inlined_call_operand.vmem [shape: bf16[256,512], index: 3, kind: input, shape index: {}]   ;;  %s15484_s0 = inlined_call_operand.vmem [shape: bf16[16,128], index: 0, kind: input, shape index: {}]   ;;  %s15485_s2 = inlined_call_operand.vmem [shape: f32[1,256], index: 2, kind: input, shape index: {}]   ;;  %s15486_s5 = inlined_call_operand.vmem [shape: bf16[512,1024], index: 5, kind: input, shape index: {}]   ;;  %s15487_s4 = inlined_call_operand.vmem [shape: f32[1,512], index: 4, kind: input, shape index: {}]   ;;  %s15488_s7 = inlined_call_operand.vmem [shape: bf16[1024,896], index: 7, kind: input, shape index: {}]   ;;  %s15489_s6 = inlined_call_operand.vmem [shape: f32[1,1024], index: 6, kind: input, shape index: {}]   ;;  %s15490_s8 = inlined_call_operand.vmem [shape: f32[1,896], index: 8, kind: input, shape index: {}]   ;;  %s15491_s9 = inlined_call_operand.vmem [shape: bf16[16,896], index: 9, kind: output, shape index: {}]  }
   0x1   :  { %v6454_v0 = vld [vmem:[%s15482_s1 + $0x70] sm:$0xf]  ;;  %v9548_v1 = vld [vmem:[%s15482_s1 + $0x74] sm:$0xf0]  ;;  %v9547_v2 = vld [vmem:[%s15482_s1 + $0x74] sm:$0xf] }
   0x2   :  { %v6455_v3 = vor.u32 %v9548_v1, %v6454_v0  ;;  %v6456_v4 = vld [vmem:[%s15482_s1 + $0x78] sm:$0xf0]  ;;  %v6446_v5 = vld [vmem:[%s15482_s1 + $0x60] sm:$0xf]  ;;  %v9546_v6 = vld [vmem:[%s15482_s1 + $0x64] sm:$0xf0] }
   0x3   :  { %v6459_v7 = vor.u32 %v9547_v2, %v6456_v4  ;;  %v9545_v8 = vld [vmem:[%s15482_s1 + $0x64] sm:$0xf]  ;;  %v6448_v9 = vld [vmem:[%s15482_s1 + $0x68] sm:$0xf0]  ;;  %v6447_v10 = vor.u32 %v9546_v6, %v6446_v5  ;;  %v6438_v12 = vld [vmem:[%s15482_s1 + $0x50] sm:$0xf] }
   0x4   :  { %142 = vmatpush.bf16.msra.mxu0 %v6455_v3  ;;  %v6451_v11 = vor.u32 %v9545_v8, %v6448_v9  ;;  %v9544_v13 = vld [vmem:[%s15482_s1 + $0x54] sm:$0xf0]  ;;  %v9543_v14 = vld [vmem:[%s15482_s1 + $0x54] sm:$0xf]  ;;  %v6440_v15 = vld [vmem:[%s15482_s1 + $0x58] sm:$0xf0] }
   0x5   :  { %156 = vmatpush.bf16.msra.mxu1 %v6459_v7  ;;  %v6439_v16 = vor.u32 %v9544_v13, %v6438_v12  ;;  %v6443_v17 = vor.u32 %v9543_v14, %v6440_v15  ;;  %v6430_v18 = vld [vmem:[%s15482_s1 + $0x40] sm:$0xf]  ;;  %v9542_v19 = vld [vmem:[%s15482_s1 + $0x44] sm:$0xf0]  ;;  %v9541_v20 = vld [vmem:[%s15482_s1 + $0x44] sm:$0xf] }
   0x6   :  { %v6432_v21 = vld [vmem:[%s15482_s1 + $0x48] sm:$0xf0]  ;;  %v6431_v22 = vor.u32 %v9542_v19, %v6430_v18  ;;  %v6574_v23 = vld [vmem:[%s15483_s3 + $0xe0] sm:$0xf]  ;;  %v9579_v24 = vld [vmem:[%s15483_s3 + $0xec] sm:$0xf0] }
   0x7   :  { %v6702_v25 = vld [vmem:[%s15483_s3 + $0x1e0] sm:$0xf]  ;;  %v6435_v26 = vor.u32 %v9541_v20, %v6432_v21  ;;  %v6422_v27 = vld [vmem:[%s15482_s1 + $0x30] sm:$0xf]  ;;  %v9540_v28 = vld [vmem:[%s15482_s1 + $0x34] sm:$0xf0]  ;;  %v6575_v29 = vor.u32 %v9579_v24, %v6574_v23 }
   0x8   :  { %143 = vmatpush.bf16.msra.mxu0 %v6447_v10  ;;  %v9611_v30 = vld [vmem:[%s15483_s3 + $0x1ec] sm:$0xf0]  ;;  %v9539_v31 = vld [vmem:[%s15482_s1 + $0x34] sm:$0xf]  ;;  %v6424_v32 = vld [vmem:[%s15482_s1 + $0x38] sm:$0xf0]  ;;  %v6423_v38 = vor.u32 %v9540_v28, %v6422_v27 }
   0x9   :  { %157 = vmatpush.bf16.msra.mxu1 %v6451_v11  ;;  %v6703_v33 = vor.u32 %v9611_v30, %v6702_v25  ;;  %v6558_v34 = vld [vmem:[%s15483_s3 + $0xc0] sm:$0xf]  ;;  %570 = vmatpush.bf16.msra.mxu2 %v6575_v29  ;;  %v9575_v35 = vld [vmem:[%s15483_s3 + $0xcc] sm:$0xf0]  ;;  %v9538_v40 = vld [vmem:[%s15482_s1 + $0x24] sm:$0xf0]  ;;  %v6427_v43 = vor.u32 %v9539_v31, %v6424_v32 }
   0xa   :  { %v6686_v36 = vld [vmem:[%s15483_s3 + $0x1c0] sm:$0xf]  ;;  %v9607_v37 = vld [vmem:[%s15483_s3 + $0x1cc] sm:$0xf0]  ;;  %v6559_v41 = vor.u32 %v9575_v35, %v6558_v34  ;;  %v9537_v44 = vld [vmem:[%s15482_s1 + $0x24] sm:$0xf] }
   0xb   :  { %v6414_v39 = vld [vmem:[%s15482_s1 + $0x20] sm:$0xf]  ;;  %584 = vmatpush.bf16.msra.mxu3 %v6703_v33  ;;  %v6687_v42 = vor.u32 %v9607_v37, %v6686_v36  ;;  %v9571_v46 = vld [vmem:[%s15483_s3 + $0xac] sm:$0xf0]  ;;  %v6416_v47 = vld [vmem:[%s15482_s1 + $0x28] sm:$0xf0] }
   0xc   :  { %144 = vmatpush.bf16.msra.mxu0 %v6439_v16  ;;  %v6542_v45 = vld [vmem:[%s15483_s3 + $0xa0] sm:$0xf]  ;;  %v9603_v49 = vld [vmem:[%s15483_s3 + $0x1ac] sm:$0xf0]  ;;  %v6415_v51 = vor.u32 %v9538_v40, %v6414_v39  ;;  %v6419_v56 = vor.u32 %v9537_v44, %v6416_v47  ;;  %v9536_v57 = vld [vmem:[%s15482_s1 + $0x14] sm:$0xf0] }
   0xd   :  { %158 = vmatpush.bf16.msra.mxu1 %v6443_v17  ;;  %v6670_v48 = vld [vmem:[%s15483_s3 + $0x1a0] sm:$0xf]  ;;  %571 = vmatpush.bf16.msra.mxu2 %v6559_v41  ;;  %v6543_v50 = vor.u32 %v9571_v46, %v6542_v45  ;;  %v6406_v52 = vld [vmem:[%s15482_s1 + $0x10] sm:$0xf]  ;;  %v9535_v60 = vld [vmem:[%s15482_s1 + $0x14] sm:$0xf] }
   0xe   :  { %v6671_v53 = vor.u32 %v9603_v49, %v6670_v48  ;;  %v6526_v54 = vld [vmem:[%s15483_s3 + $0x80] sm:$0xf]  ;;  %v9567_v55 = vld [vmem:[%s15483_s3 + $0x8c] sm:$0xf0]  ;;  %v6408_v61 = vld [vmem:[%s15482_s1 + $0x18] sm:$0xf0]  ;;  %v6407_v0 = vor.u32 %v9536_v57, %v6406_v52 }
   0xf   :  { %585 = vmatpush.bf16.msra.mxu3 %v6687_v42  ;;  %v6654_v58 = vld [vmem:[%s15483_s3 + $0x180] sm:$0xf]  ;;  %v9599_v59 = vld [vmem:[%s15483_s3 + $0x18c] sm:$0xf0]  ;;  %v6527_v63 = vor.u32 %v9567_v55, %v6526_v54  ;;  %v9534_v1 = vld [vmem:[%s15482_s1 + $0x4] sm:$0xf0]  ;;  %v6411_v5 = vor.u32 %v9535_v60, %v6408_v61 }
  0x10   :  { %145 = vmatpush.bf16.msra.mxu0 %v6431_v22  ;;  %v6398_v62 = vld [vmem:[%s15482_s1] sm:$0xf]  ;;  %v6655_v2 = vor.u32 %v9599_v59, %v6654_v58  ;;  %v9563_v4 = vld [vmem:[%s15483_s3 + $0x6c] sm:$0xf0]  ;;  %v9533_v6 = vld [vmem:[%s15482_s1 + $0x4] sm:$0xf] }
  0x11   :  { %159 = vmatpush.bf16.msra.mxu1 %v6435_v26  ;;  %572 = vmatpush.bf16.msra.mxu2 %v6543_v50  ;;  %v6510_v3 = vld [vmem:[%s15483_s3 + $0x60] sm:$0xf]  ;;  %v9595_v8 = vld [vmem:[%s15483_s3 + $0x16c] sm:$0xf0]  ;;  %v6400_v9 = vld [vmem:[%s15482_s1 + $0x8] sm:$0xf0]  ;;  %v6399_v15 = vor.u32 %v9534_v1, %v6398_v62 }
  0x12   :  { %v6638_v7 = vld [vmem:[%s15483_s3 + $0x160] sm:$0xf]  ;;  %v9577_v10 = vld [vmem:[%s15483_s3 + $0xe4] sm:$0xf]  ;;  %v6576_v11 = vld [vmem:[%s15483_s3 + $0xf0] sm:$0xf0]  ;;  %v6511_v14 = vor.u32 %v9563_v4, %v6510_v3  ;;  %v6403_v19 = vor.u32 %v9533_v6, %v6400_v9 }
  0x13   :  { %586 = vmatpush.bf16.msra.mxu3 %v6671_v53  ;;  %v9609_v12 = vld [vmem:[%s15483_s3 + $0x1e4] sm:$0xf]  ;;  %v6704_v13 = vld [vmem:[%s15483_s3 + $0x1f0] sm:$0xf0]  ;;  %v6639_v16 = vor.u32 %v9595_v8, %v6638_v7  ;;  %v6494_v17 = vld [vmem:[%s15483_s3 + $0x40] sm:$0xf]  ;;  %v6579_v20 = vor.u32 %v9577_v10, %v6576_v11 }
  0x14   :  { %146 = vmatpush.bf16.msra.mxu0 %v6423_v38  ;;  %v9559_v18 = vld [vmem:[%s15483_s3 + $0x4c] sm:$0xf0]  ;;  %v6622_v21 = vld [vmem:[%s15483_s3 + $0x140] sm:$0xf]  ;;  %v6707_v23 = vor.u32 %v9609_v12, %v6704_v13  ;;  %v9573_v24 = vld [vmem:[%s15483_s3 + $0xc4] sm:$0xf] }
  0x15   :  { %160 = vmatpush.bf16.msra.mxu1 %v6427_v43  ;;  %573 = vmatpush.bf16.msra.mxu2 %v6527_v63  ;;  %v9591_v22 = vld [vmem:[%s15483_s3 + $0x14c] sm:$0xf0]  ;;  %v6560_v25 = vld [vmem:[%s15483_s3 + $0xd0] sm:$0xf0]  ;;  %v9532_v26 = vld [vmem:[%s15484_s0] sm:$0xff]  ;;  %v6495_v29 = vor.u32 %v9559_v18, %v6494_v17 }
  0x16   :  { %v9605_v27 = vld [vmem:[%s15483_s3 + $0x1c4] sm:$0xf]  ;;  %v6688_v28 = vld [vmem:[%s15483_s3 + $0x1d0] sm:$0xf0]  ;;  %v6623_v30 = vor.u32 %v9591_v22, %v6622_v21  ;;  %v6478_v31 = vld [vmem:[%s15483_s3 + $0x20] sm:$0xf]  ;;  %v6563_v33 = vor.u32 %v9573_v24, %v6560_v25 }
  0x17   :  { %587 = vmatpush.bf16.msra.mxu3 %v6655_v2  ;;  %v9555_v32 = vld [vmem:[%s15483_s3 + $0x2c] sm:$0xf0]  ;;  %v6606_v34 = vld [vmem:[%s15483_s3 + $0x120] sm:$0xf]  ;;  %v6691_v36 = vor.u32 %v9605_v27, %v6688_v28  ;;  %v9569_v37 = vld [vmem:[%s15483_s3 + $0xa4] sm:$0xf] }
  0x18   :  { %147 = vmatpush.bf16.msra.mxu0 %v6415_v51  ;;  %v9587_v35 = vld [vmem:[%s15483_s3 + $0x12c] sm:$0xf0]  ;;  %v6544_v38 = vld [vmem:[%s15483_s3 + $0xb0] sm:$0xf0]  ;;  %v9601_v39 = vld [vmem:[%s15483_s3 + $0x1a4] sm:$0xf]  ;;  %v6479_v41 = vor.u32 %v9555_v32, %v6478_v31 }
  0x19   :  { %161 = vmatpush.bf16.msra.mxu1 %v6419_v56  ;;  %574 = vmatpush.bf16.msra.mxu2 %v6511_v14  ;;  %v6672_v40 = vld [vmem:[%s15483_s3 + $0x1b0] sm:$0xf0]  ;;  %v6607_v42 = vor.u32 %v9587_v35, %v6606_v34  ;;  %v6462_v43 = vld [vmem:[%s15483_s3] sm:$0xf]  ;;  %v9551_v44 = vld [vmem:[%s15483_s3 + $0xc] sm:$0xf0]  ;;  %v6547_v45 = vor.u32 %v9569_v37, %v6544_v38 }
  0x1a   :  { %v6590_v46 = vld [vmem:[%s15483_s3 + $0x100] sm:$0xf]  ;;  %v9583_v47 = vld [vmem:[%s15483_s3 + $0x10c] sm:$0xf0]  ;;  %v6675_v48 = vor.u32 %v9601_v39, %v6672_v40  ;;  %v9565_v49 = vld [vmem:[%s15483_s3 + $0x84] sm:$0xf]  ;;  %v6463_v53 = vor.u32 %v9551_v44, %v6462_v43 }
  0x1b   :  { %588 = vmatpush.bf16.msra.mxu3 %v6639_v16  ;;  %v6528_v50 = vld [vmem:[%s15483_s3 + $0x90] sm:$0xf0]  ;;  %v9597_v51 = vld [vmem:[%s15483_s3 + $0x184] sm:$0xf]  ;;  %v6591_v54 = vor.u32 %v9583_v47, %v6590_v46  ;;  %v6582_v17 = vld [vmem:[%s15483_s3 + $0xe8] sm:$0xf] }
  0x1c   :  { %148 = vmatpush.bf16.msra.mxu0 %v6407_v0  ;;  %v6656_v52 = vld [vmem:[%s15483_s3 + $0x190] sm:$0xf0]  ;;  %v6531_v55 = vor.u32 %v9565_v49, %v6528_v50  ;;  %v9561_v57 = vld [vmem:[%s15483_s3 + $0x64] sm:$0xf]  ;;  %v9580_v18 = vld [vmem:[%s15483_s3 + $0xf4] sm:$0xf0] }
  0x1d   :  { %162 = vmatpush.bf16.msra.mxu1 %v6411_v5  ;;  %575 = vmatpush.bf16.msra.mxu2 %v6495_v29  ;;  %v6659_v56 = vor.u32 %v9597_v51, %v6656_v52  ;;  %v6512_v58 = vld [vmem:[%s15483_s3 + $0x70] sm:$0xf0]  ;;  %v9593_v59 = vld [vmem:[%s15483_s3 + $0x164] sm:$0xf]  ;;  %v9612_v21 = vld [vmem:[%s15483_s3 + $0x1f4] sm:$0xf0] }
  0x1e   :  { %v6640_v60 = vld [vmem:[%s15483_s3 + $0x170] sm:$0xf0]  ;;  %v6515_v61 = vor.u32 %v9561_v57, %v6512_v58  ;;  %v9557_v63 = vld [vmem:[%s15483_s3 + $0x44] sm:$0xf]  ;;  %v9578_v22 = vld [vmem:[%s15483_s3 + $0xec] sm:$0xf] }
  0x1f   :  { %589 = vmatpush.bf16.msra.mxu3 %v6623_v30  ;;  %v6643_v62 = vor.u32 %v9593_v59, %v6640_v60  ;;  %v6496_v0 = vld [vmem:[%s15483_s3 + $0x50] sm:$0xf0]  ;;  %v9589_v1 = vld [vmem:[%s15483_s3 + $0x144] sm:$0xf]  ;;  %v6712_v27 = vld [vmem:[%s15483_s3 + $0x1f8] sm:$0xf0] }
  0x20   :  { %149 = vmatpush.bf16.msra.mxu0 %v6399_v15  ;;  %v6624_v2 = vld [vmem:[%s15483_s3 + $0x150] sm:$0xf0]  ;;  %v6499_v3 = vor.u32 %v9557_v63, %v6496_v0  ;;  %v9553_v5 = vld [vmem:[%s15483_s3 + $0x24] sm:$0xf]  ;;  %v6566_v29 = vld [vmem:[%s15483_s3 + $0xc8] sm:$0xf] }
  0x21   :  { %163 = vmatpush.bf16.msra.mxu1 %v6403_v19  ;;  %576 = vmatpush.bf16.msra.mxu2 %v6479_v41  ;;  %v6627_v4 = vor.u32 %v9589_v1, %v6624_v2  ;;  %v6480_v6 = vld [vmem:[%s15483_s3 + $0x30] sm:$0xf0]  ;;  %v9585_v7 = vld [vmem:[%s15483_s3 + $0x124] sm:$0xf]  ;;  %v6710_v19 = vld [vmem:[%s15483_s3 + $0x1e8] sm:$0xf] }
  0x22   :  { %v6608_v8 = vld [vmem:[%s15483_s3 + $0x130] sm:$0xf0]  ;;  %v6483_v9 = vor.u32 %v9553_v5, %v6480_v6  ;;  %v9549_v11 = vld [vmem:[%s15483_s3 + $0x4] sm:$0xf]  ;;  %v6711_v24 = vor.u32 %v9612_v21, %v6710_v19  ;;  %v9576_v30 = vld [vmem:[%s15483_s3 + $0xd4] sm:$0xf0] }
  0x23   :  { %150 = vmatmul.bf16.vlgmr.msra.gmra.mxu0 %v9532_v26  ;;  %590 = vmatpush.bf16.msra.mxu3 %v6607_v42  ;;  %v6611_v10 = vor.u32 %v9585_v7, %v6608_v8  ;;  %v6464_v12 = vld [vmem:[%s15483_s3 + $0x10] sm:$0xf0]  ;;  %v9581_v13 = vld [vmem:[%s15483_s3 + $0x104] sm:$0xf]  ;;  %v6567_v31 = vor.u32 %v9576_v30, %v6566_v29  ;;  %v6694_v32 = vld [vmem:[%s15483_s3 + $0x1c8] sm:$0xf] }
  0x24   :  { %598 = vmatpush.bf16.msrb.mxu0 %v6579_v20  ;;  %164 = vmatmul.bf16.vlgmr.msra.gmra.mxu1 %v9532_v26  ;;  %v6592_v14 = vld [vmem:[%s15483_s3 + $0x110] sm:$0xf0]  ;;  %v6467_v15 = vor.u32 %v9549_v11, %v6464_v12  ;;  %v6583_v20 = vor.u32 %v9580_v18, %v6582_v17  ;;  %v9610_v26 = vld [vmem:[%s15483_s3 + $0x1ec] sm:$0xf]  ;;  %v6696_v38 = vld [vmem:[%s15483_s3 + $0x1d8] sm:$0xf0] }
  0x25   :  { %612 = vmatpush.bf16.msrb.mxu1 %v6707_v23  ;;  %577 = vmatpush.bf16.msra.mxu2 %v6463_v53  ;;  %v6595_v16 = vor.u32 %v9581_v13, %v6592_v14  ;;  %v6584_v23 = vld [vmem:[%s15483_s3 + $0xf8] sm:$0xf0]  ;;  %v6715_v28 = vor.u32 %v9610_v26, %v6712_v27  ;;  %v9574_v34 = vld [vmem:[%s15483_s3 + $0xcc] sm:$0xf]  ;;  %v6550_v41 = vld [vmem:[%s15483_s3 + $0xa8] sm:$0xf] }
  0x26   :  { %v6587_v25 = vor.u32 %v9578_v22, %v6584_v23  ;;  %v9606_v37 = vld [vmem:[%s15483_s3 + $0x1cc] sm:$0xf]  ;;  %v9572_v42 = vld [vmem:[%s15483_s3 + $0xb4] sm:$0xf0]  ;;  %v6678_v43 = vld [vmem:[%s15483_s3 + $0x1a8] sm:$0xf] }
  0x27   :  { %591 = vmatpush.bf16.msra.mxu3 %v6591_v54  ;;  %v6699_v40 = vor.u32 %v9606_v37, %v6696_v38  ;;  %v6551_v44 = vor.u32 %v9572_v42, %v6550_v41  ;;  %v9570_v46 = vld [vmem:[%s15483_s3 + $0xac] sm:$0xf]  ;;  %v6552_v47 = vld [vmem:[%s15483_s3 + $0xb8] sm:$0xf0]  ;;  %v6534_v53 = vld [vmem:[%s15483_s3 + $0x88] sm:$0xf] }
  0x28   :  { %599 = vmatpush.bf16.msrb.mxu0 %v6563_v33  ;;  %v9608_v33 = vld [vmem:[%s15483_s3 + $0x1d4] sm:$0xf0]  ;;  %v6555_v49 = vor.u32 %v9570_v46, %v6552_v47  ;;  %v9602_v50 = vld [vmem:[%s15483_s3 + $0x1ac] sm:$0xf]  ;;  %v6680_v51 = vld [vmem:[%s15483_s3 + $0x1b8] sm:$0xf0] }
  0x29   :  { %613 = vmatpush.bf16.msrb.mxu1 %v6691_v36  ;;  %626 = vmatpush.bf16.msrb.mxu2 %v6583_v20  ;;  %v6695_v35 = vor.u32 %v9608_v33, %v6694_v32  ;;  %v6568_v36 = vld [vmem:[%s15483_s3 + $0xd8] sm:$0xf0]  ;;  %v6683_v52 = vor.u32 %v9602_v50, %v6680_v51  ;;  %v9568_v54 = vld [vmem:[%s15483_s3 + $0x94] sm:$0xf0]  ;;  %v9566_v58 = vld [vmem:[%s15483_s3 + $0x8c] sm:$0xf] }
  0x2a   :  { %v6571_v39 = vor.u32 %v9574_v34, %v6568_v36  ;;  %v9600_v57 = vld [vmem:[%s15483_s3 + $0x194] sm:$0xf0]  ;;  %v6536_v59 = vld [vmem:[%s15483_s3 + $0x98] sm:$0xf0]  ;;  %v6518_v1 = vld [vmem:[%s15483_s3 + $0x68] sm:$0xf] }
  0x2b   :  { %640 = vmatpush.bf16.msrb.mxu3 %v6711_v24  ;;  %v6664_v63 = vld [vmem:[%s15483_s3 + $0x198] sm:$0xf0]  ;;  %v9564_v2 = vld [vmem:[%s15483_s3 + $0x74] sm:$0xf0]  ;;  %v9562_v6 = vld [vmem:[%s15483_s3 + $0x6c] sm:$0xf] }
  0x2c   :  { %600 = vmatpush.bf16.msrb.mxu0 %v6547_v45  ;;  %v9604_v45 = vld [vmem:[%s15483_s3 + $0x1b4] sm:$0xf0]  ;;  %v6520_v7 = vld [vmem:[%s15483_s3 + $0x78] sm:$0xf0]  ;;  %v6502_v12 = vld [vmem:[%s15483_s3 + $0x48] sm:$0xf] }
  0x2d   :  { %614 = vmatpush.bf16.msrb.mxu1 %v6675_v48  ;;  %627 = vmatpush.bf16.msrb.mxu2 %v6567_v31  ;;  %v6679_v48 = vor.u32 %v9604_v45, %v6678_v43  ;;  %v9596_v5 = vld [vmem:[%s15483_s3 + $0x174] sm:$0xf0]  ;;  %v6648_v11 = vld [vmem:[%s15483_s3 + $0x178] sm:$0xf0]  ;;  %v9558_v19 = vld [vmem:[%s15483_s3 + $0x4c] sm:$0xf] }
  0x2e   :  { %v9560_v14 = vld [vmem:[%s15483_s3 + $0x54] sm:$0xf0]  ;;  %v6504_v20 = vld [vmem:[%s15483_s3 + $0x58] sm:$0xf0]  ;;  %v9590_v21 = vld [vmem:[%s15483_s3 + $0x14c] sm:$0xf] }
  0x2f   :  { %641 = vmatpush.bf16.msrb.mxu3 %v6695_v35  ;;  %v6503_v17 = vor.u32 %v9560_v14, %v6502_v12  ;;  %v6507_v22 = vor.u32 %v9558_v19, %v6504_v20  ;;  %v6632_v23 = vld [vmem:[%s15483_s3 + $0x158] sm:$0xf0]  ;;  %v6486_v24 = vld [vmem:[%s15483_s3 + $0x28] sm:$0xf]  ;;  %v9554_v29 = vld [vmem:[%s15483_s3 + $0x2c] sm:$0xf] }
  0x30   :  { %601 = vmatpush.bf16.msrb.mxu0 %v6531_v55  ;;  %v6662_v55 = vld [vmem:[%s15483_s3 + $0x188] sm:$0xf]  ;;  %v6635_v26 = vor.u32 %v9590_v21, %v6632_v23  ;;  %v6488_v31 = vld [vmem:[%s15483_s3 + $0x38] sm:$0xf0]  ;;  %v9586_v32 = vld [vmem:[%s15483_s3 + $0x12c] sm:$0xf] }
  0x31   :  { %615 = vmatpush.bf16.msrb.mxu1 %v6659_v56  ;;  %628 = vmatpush.bf16.msrb.mxu2 %v6551_v44  ;;  %v6535_v56 = vor.u32 %v9568_v54, %v6534_v53  ;;  %v6663_v60 = vor.u32 %v9600_v57, %v6662_v55  ;;  %v6614_v27 = vld [vmem:[%s15483_s3 + $0x128] sm:$0xf]  ;;  %v6616_v33 = vld [vmem:[%s15483_s3 + $0x138] sm:$0xf0]  ;;  %v9552_v36 = vld [vmem:[%s15483_s3 + $0x14] sm:$0xf0]  ;;  %v6491_v37 = vor.u32 %v9554_v29, %v6488_v31 }
  0x32   :  { %v6470_v35 = vld [vmem:[%s15483_s3 + $0x8] sm:$0xf]  ;;  %v6619_v38 = vor.u32 %v9586_v32, %v6616_v33  ;;  %v9550_v41 = vld [vmem:[%s15483_s3 + $0xc] sm:$0xf]  ;;  %v6472_v42 = vld [vmem:[%s15483_s3 + $0x18] sm:$0xf0] }
  0x33   :  { %642 = vmatpush.bf16.msrb.mxu3 %v6679_v48  ;;  %v9582_v43 = vld [vmem:[%s15483_s3 + $0x10c] sm:$0xf]  ;;  %v6600_v44 = vld [vmem:[%s15483_s3 + $0x118] sm:$0xf0]  ;;  %v6471_v45 = vor.u32 %v9552_v36, %v6470_v35  ;;  %v6475_v47 = vor.u32 %v9550_v41, %v6472_v42  ;;  %v6910_v14 = vld [vmem:[%s15486_s5 + $0x180] sm:$0xf] }
  0x34   :  { %602 = vmatpush.bf16.msrb.mxu0 %v6515_v61  ;;  %v6539_v61 = vor.u32 %v9566_v58, %v6536_v59  ;;  %v6603_v48 = vor.u32 %v9582_v43, %v6600_v44  ;;  %v7198_v59 = vld [vmem:[%s15486_s5 + $0x3c0] sm:$0xf] }
  0x35   :  { %616 = vmatpush.bf16.msrb.mxu1 %v6643_v62  ;;  %v9598_v62 = vld [vmem:[%s15483_s3 + $0x18c] sm:$0xf]  ;;  %629 = vmatpush.bf16.msrb.mxu2 %v6535_v56  ;;  %v9857_v19 = vld [vmem:[%s15486_s5 + $0x79c] sm:$0xf0] }
  0x36   :  { %v6667_v0 = vor.u32 %v9598_v62, %v6664_v63  ;;  %v9673_v63 = vld [vmem:[%s15486_s5 + $0x1dc] sm:$0xf0] }
  0x37   :  { %643 = vmatpush.bf16.msrb.mxu3 %v6663_v60  ;;  %v9737_v60 = vld [vmem:[%s15486_s5 + $0x3dc] sm:$0xf0] }
  0x38   :  { %603 = vmatpush.bf16.msrb.mxu0 %v6499_v3  ;;  %v6646_v3 = vld [vmem:[%s15483_s3 + $0x168] sm:$0xf]  ;;  %v7422_v20 = vld [vmem:[%s15486_s5 + $0x580] sm:$0xf] }
  0x39   :  { %617 = vmatpush.bf16.msrb.mxu1 %v6627_v4  ;;  %v6519_v4 = vor.u32 %v9564_v2, %v6518_v1  ;;  %v6647_v8 = vor.u32 %v9596_v5, %v6646_v3  ;;  %v9865_v1 = vld [vmem:[%s15486_s5 + $0x7dc] sm:$0xf0] }
  0x3a   :  { %v9801_v5 = vld [vmem:[%s15486_s5 + $0x5dc] sm:$0xf0] }
  0x3b   :  { %630 = vmatpush.bf16.msrb.mxu2 %v6519_v4  ;;  %644 = vmatpush.bf16.msrb.mxu3 %v6647_v8  ;;  %v7454_v4 = vld [vmem:[%s15486_s5 + $0x5c0] sm:$0xf] }
  0x3c   :  { %604 = vmatpush.bf16.msrb.mxu0 %v6483_v9  ;;  %v6523_v9 = vor.u32 %v9562_v6, %v6520_v7  ;;  %v9793_v21 = vld [vmem:[%s15486_s5 + $0x59c] sm:$0xf0] }
  0x3d   :  { %618 = vmatpush.bf16.msrb.mxu1 %v6611_v10  ;;  %v9594_v10 = vld [vmem:[%s15483_s3 + $0x16c] sm:$0xf]  ;;  %v7134_v23 = vld [vmem:[%s15486_s5 + $0x340] sm:$0xf] }
  0x3e   :  { %v6651_v13 = vor.u32 %v9594_v10, %v6648_v11  ;;  %v7166_v10 = vld [vmem:[%s15486_s5 + $0x380] sm:$0xf] }
  0x3f   :  { %631 = vmatpush.bf16.msrb.mxu2 %v6503_v17  ;;  %v9729_v11 = vld [vmem:[%s15486_s5 + $0x39c] sm:$0xf0] }
  0x40   :  { %605 = vmatpush.bf16.msrb.mxu0 %v6467_v15  ;;  %v6630_v15 = vld [vmem:[%s15483_s3 + $0x148] sm:$0xf]  ;;  %v7678_v17 = vld [vmem:[%s15486_s5 + $0x780] sm:$0xf] }
  0x41   :  { %619 = vmatpush.bf16.msrb.mxu1 %v6595_v16  ;;  %v9592_v16 = vld [vmem:[%s15483_s3 + $0x154] sm:$0xf0]  ;;  %v7646_v29 = vld [vmem:[%s15486_s5 + $0x740] sm:$0xf] }
  0x42   :  { %v6631_v18 = vor.u32 %v9592_v16, %v6630_v15  ;;  %v9665_v15 = vld [vmem:[%s15486_s5 + $0x19c] sm:$0xf0] }
  0x43   :  { %v9849_v31 = vld [vmem:[%s15486_s5 + $0x75c] sm:$0xf0] }
  0x44   :  { %654 = vmatpush.bf16.msra.mxu0 %v6587_v25  ;;  %v9556_v25 = vld [vmem:[%s15483_s3 + $0x34] sm:$0xf0]  ;;  %645 = vmatpush.bf16.msrb.mxu3 %v6631_v18  ;;  %v7455_v18 = vor.u32 %v9801_v5, %v7454_v4  ;;  %v7390_v32 = vld [vmem:[%s15486_s5 + $0x540] sm:$0xf] }
  0x45   :  { %668 = vmatpush.bf16.msra.mxu1 %v6715_v28  ;;  %v9588_v28 = vld [vmem:[%s15483_s3 + $0x134] sm:$0xf0]  ;;  %v6487_v30 = vor.u32 %v9556_v25, %v6486_v24  ;;  %v9721_v24 = vld [vmem:[%s15486_s5 + $0x35c] sm:$0xf0]  ;;  %v6911_v25 = vor.u32 %v9665_v15, %v6910_v14 }
  0x46   :  { %v6615_v34 = vor.u32 %v9588_v28, %v6614_v27  ;;  %v9657_v27 = vld [vmem:[%s15486_s5 + $0x15c] sm:$0xf0]  ;;  %v7679_v28 = vor.u32 %v9857_v19, %v7678_v17  ;;  %v9733_v17 = vld [vmem:[%s15486_s5 + $0x3c4] sm:$0xf] }
  0x47   :  { %632 = vmatpush.bf16.msrb.mxu2 %v6487_v30  ;;  %v7423_v30 = vor.u32 %v9793_v21, %v7422_v20  ;;  %v9785_v33 = vld [vmem:[%s15486_s5 + $0x55c] sm:$0xf0]  ;;  %v7200_v21 = vld [vmem:[%s15486_s5 + $0x3e0] sm:$0xf0] }
  0x48   :  { %655 = vmatpush.bf16.msra.mxu0 %v6571_v39  ;;  %v6598_v39 = vld [vmem:[%s15483_s3 + $0x108] sm:$0xf]  ;;  %646 = vmatpush.bf16.msrb.mxu3 %v6615_v34  ;;  %v7135_v34 = vor.u32 %v9721_v24, %v7134_v23  ;;  %v7102_v35 = vld [vmem:[%s15486_s5 + $0x300] sm:$0xf]  ;;  %v7391_v42 = vor.u32 %v9785_v33, %v7390_v32  ;;  %v6944_v23 = vld [vmem:[%s15486_s5 + $0x1e0] sm:$0xf0] }
  0x49   :  { %669 = vmatpush.bf16.msra.mxu1 %v6699_v40  ;;  %v9584_v40 = vld [vmem:[%s15483_s3 + $0x114] sm:$0xf0]  ;;  %v9713_v36 = vld [vmem:[%s15486_s5 + $0x31c] sm:$0xf0] }
  0x4a   :  { %v6599_v46 = vor.u32 %v9584_v40, %v6598_v39  ;;  %v9649_v39 = vld [vmem:[%s15486_s5 + $0x11c] sm:$0xf0]  ;;  %v7647_v40 = vor.u32 %v9849_v31, %v7646_v29  ;;  %v7168_v29 = vld [vmem:[%s15486_s5 + $0x3a0] sm:$0xf0] }
  0x4b   :  { %633 = vmatpush.bf16.msrb.mxu2 %v6471_v45  ;;  %v7614_v41 = vld [vmem:[%s15486_s5 + $0x700] sm:$0xf]  ;;  %v6912_v31 = vld [vmem:[%s15486_s5 + $0x1a0] sm:$0xf0] }
  0x4c   :  { %656 = vmatpush.bf16.msra.mxu0 %v6555_v49  ;;  %647 = vmatpush.bf16.msrb.mxu3 %v6599_v46  ;;  %v50_v49 = vld [vmem:[%s15485_s2] sm:$0x3]  ;;  %v7103_v46 = vor.u32 %v9713_v36, %v7102_v35  ;;  %v7136_v35 = vld [vmem:[%s15486_s5 + $0x360] sm:$0xf0] }
  0x4d   :  { %670 = vmatpush.bf16.msra.mxu1 %v6683_v52  ;;  %v52_v52 = vperm.slane %v50_v49, 0  ;;  %v53_v53 = vperm.slane %v50_v49, 1  ;;  %v9841_v43 = vld [vmem:[%s15486_s5 + $0x71c] sm:$0xf0] }
  0x4e   :  { %v7358_v44 = vld [vmem:[%s15486_s5 + $0x500] sm:$0xf] }
  0x4f   :  { %v9777_v45 = vld [vmem:[%s15486_s5 + $0x51c] sm:$0xf0] }
  0x50   :  { %657 = vmatpush.bf16.msra.mxu0 %v6539_v61  ;;  %v6942_v61 = vld [vmem:[%s15486_s5 + $0x1c0] sm:$0xf] }
  0x51   :  { %671 = vmatpush.bf16.msra.mxu1 %v6667_v0  ;;  %v7710_v0 = vld [vmem:[%s15486_s5 + $0x7c0] sm:$0xf]  ;;  %v6943_v12 = vor.u32 %v9673_v63, %v6942_v61 }
  0x52   :  { %v7711_v16 = vor.u32 %v9865_v1, %v7710_v0  ;;  %v9697_v61 = vld [vmem:[%s15486_s5 + $0x29c] sm:$0xf0] }
  0x53   :  { %v9633_v63 = vld [vmem:[%s15486_s5 + $0x9c] sm:$0xf0] }
  0x54   :  { %658 = vmatpush.bf16.msra.mxu0 %v6523_v9  ;;  %v7199_v9 = vor.u32 %v9737_v60, %v7198_v59  ;;  %v7038_v59 = vld [vmem:[%s15486_s5 + $0x280] sm:$0xf] }
  0x55   :  { %672 = vmatpush.bf16.msra.mxu1 %v6651_v13  ;;  %v7039_v4 = vor.u32 %v9697_v61, %v7038_v59  ;;  %v7006_v5 = vld [vmem:[%s15486_s5 + $0x240] sm:$0xf]  ;;  %v6848_v59 = vld [vmem:[%s15486_s5 + $0x120] sm:$0xf0] }
  0x56   :  { %v6974_v14 = vld [vmem:[%s15486_s5 + $0x200] sm:$0xf]  ;;  %v9693_v61 = vld [vmem:[%s15486_s5 + $0x284] sm:$0xf] }
  0x57   :  { %v9681_v15 = vld [vmem:[%s15486_s5 + $0x21c] sm:$0xf0] }
  0x58   :  { %659 = vmatpush.bf16.msra.mxu0 %v6507_v22  ;;  %v7167_v22 = vor.u32 %v9729_v11, %v7166_v10  ;;  %v7518_v11 = vld [vmem:[%s15486_s5 + $0x640] sm:$0xf]  ;;  %v6975_v24 = vor.u32 %v9681_v15, %v6974_v14  ;;  %v9845_v14 = vld [vmem:[%s15486_s5 + $0x744] sm:$0xf] }
  0x59   :  { %673 = vmatpush.bf16.msra.mxu1 %v6635_v26  ;;  %v6878_v26 = vld [vmem:[%s15486_s5 + $0x140] sm:$0xf] }
  0x5a   :  { %v9617_v19 = vld [vmem:[%s15486_s5 + $0x1c] sm:$0xf0] }
  0x5c   :  { %660 = vmatpush.bf16.msra.mxu0 %v6491_v37  ;;  %v6879_v37 = vor.u32 %v9657_v27, %v6878_v26  ;;  %v7203_v26 = vor.u32 %v9733_v17, %v7200_v21  ;;  %v9725_v27 = vld [vmem:[%s15486_s5 + $0x384] sm:$0xf] }
  0x5d   :  { %674 = vmatpush.bf16.msra.mxu1 %v6619_v38  ;;  %v6846_v38 = vld [vmem:[%s15486_s5 + $0x100] sm:$0xf]  ;;  %v7171_v32 = vor.u32 %v9725_v27, %v7168_v29 }
  0x5e   :  { %v6847_v49 = vor.u32 %v9649_v39, %v6846_v38  ;;  %v7104_v38 = vld [vmem:[%s15486_s5 + $0x320] sm:$0xf0] }
  0x60   :  { %661 = vmatpush.bf16.msra.mxu0 %v6475_v47  ;;  %v7070_v47 = vld [vmem:[%s15486_s5 + $0x2c0] sm:$0xf] }
  0x61   :  { %675 = vmatpush.bf16.msra.mxu1 %v6603_v48  ;;  %v9705_v48 = vld [vmem:[%s15486_s5 + $0x2dc] sm:$0xf0] }
  0xa0   :  { %v151_v50 = vpop.f32.mrf.mxu0 }
  0xa1   :  { %v165_v51 = vpop.f32.mrf.mxu1  ;;  %v152_v54 = vadd.f32 %v151_v50, %v52_v52  ;;  %v6814_v50 = vld [vmem:[%s15486_s5 + $0xc0] sm:$0xf] }
  0xa2   :  { %v166_v55 = vadd.f32 %v165_v51, %v53_v53  ;;  %v9641_v51 = vld [vmem:[%s15486_s5 + $0xdc] sm:$0xf0] }
  0xa3   :  { %v170_v2 = vmax.f32 %v152_v54, 0.0  ;;  %v7359_v54 = vor.u32 %v9777_v45, %v7358_v44  ;;  %v6815_v60 = vor.u32 %v9641_v51, %v6814_v50  ;;  %v6880_v44 = vld [vmem:[%s15486_s5 + $0x160] sm:$0xf0] }
  0xa4   :  { %v171_v6 = vmax.f32 %v166_v55, 0.0  ;;  %v9833_v55 = vld [vmem:[%s15486_s5 + $0x6dc] sm:$0xf0]  ;;  %v7072_v50 = vld [vmem:[%s15486_s5 + $0x2e0] sm:$0xf0] }
  0xa5   :  { %v9861_v51 = vld [vmem:[%s15486_s5 + $0x7c4] sm:$0xf] }
  0xa8   :  { %v153_v56 = vpop.f32.mrf.mxu0 }
  0xa9   :  { %v154_v57 = vadd.f32 %v153_v56, %v52_v52  ;;  %v167_v58 = vpop.f32.mrf.mxu1  ;;  %v7615_v52 = vor.u32 %v9841_v43, %v7614_v41  ;;  %v7326_v56 = vld [vmem:[%s15486_s5 + $0x4c0] sm:$0xf]  ;;  %v9653_v43 = vld [vmem:[%s15486_s5 + $0x144] sm:$0xf] }
  0xaa   :  { %v168_v62 = vadd.f32 %v167_v58, %v53_v53  ;;  %v7582_v53 = vld [vmem:[%s15486_s5 + $0x6c0] sm:$0xf]  ;;  %v7071_v58 = vor.u32 %v9705_v48, %v7070_v47  ;;  %v6883_v45 = vor.u32 %v9653_v43, %v6880_v44  ;;  %v7360_v43 = vld [vmem:[%s15486_s5 + $0x520] sm:$0xf0] }
  0xab   :  { %v172_v3 = vmax.f32 %v154_v57, 0.0  ;;  %v9769_v57 = vld [vmem:[%s15486_s5 + $0x4dc] sm:$0xf0]  ;;  %v7583_v0 = vor.u32 %v9833_v55, %v7582_v53  ;;  %v7712_v53 = vld [vmem:[%s15486_s5 + $0x7e0] sm:$0xf0] }
  0xac   :  { %v173_v7 = vmax.f32 %v168_v62, 0.0  ;;  %v6782_v62 = vld [vmem:[%s15486_s5 + $0x80] sm:$0xf]  ;;  %v7327_v1 = vor.u32 %v9769_v57, %v7326_v56  ;;  %v7715_v56 = vor.u32 %v9861_v51, %v7712_v53  ;;  %v9813_v51 = vld [vmem:[%s15486_s5 + $0x644] sm:$0xf] }
  0xad   :  { %v10907_v8 = vpack.c.bf16 %v172_v3, %v170_v2  ;;  %v7550_v2 = vld [vmem:[%s15486_s5 + $0x680] sm:$0xf] }
  0xae   :  { %v10915_v13 = vpack.c.bf16 %v173_v7, %v171_v6  ;;  %v9825_v3 = vld [vmem:[%s15486_s5 + $0x69c] sm:$0xf0]  ;;  %v6783_v6 = vor.u32 %v9633_v63, %v6782_v62  ;;  %v7040_v62 = vld [vmem:[%s15486_s5 + $0x2a0] sm:$0xf0] }
  0xaf   :  { %578 = vmatmul.bf16.vlgmr.msra.gmra.mxu2 %v10907_v8  ;;  %606 = vmatmul.bf16.vlgmr.msrb.gmra.mxu0 %v10907_v8  ;;  %v9689_v7 = vld [vmem:[%s15486_s5 + $0x25c] sm:$0xf0]  ;;  %v7551_v10 = vor.u32 %v9825_v3, %v7550_v2  ;;  %v9853_v63 = vld [vmem:[%s15486_s5 + $0x784] sm:$0xf] }
  0xb0   :  { %592 = vmatmul.bf16.vlgmr.msra.gmra.mxu3 %v10915_v13  ;;  %620 = vmatmul.bf16.vlgmr.msrb.gmra.mxu1 %v10915_v13  ;;  %v9761_v41 = vld [vmem:[%s15486_s5 + $0x49c] sm:$0xf0] }
  0xb1   :  { %2262 = vmatpush.bf16.msra.mxu3 %v7199_v9  ;;  %2248 = vmatpush.bf16.msra.mxu2 %v6943_v12  ;;  %v9625_v9 = vld [vmem:[%s15486_s5 + $0x5c] sm:$0xf0] }
  0xb2   :  { %2290 = vmatpush.bf16.msrb.mxu1 %v7711_v16  ;;  %2276 = vmatpush.bf16.msrb.mxu0 %v7455_v18  ;;  %v9817_v12 = vld [vmem:[%s15486_s5 + $0x65c] sm:$0xf0] }
  0xb3   :  { %v6718_v18 = vld [vmem:[%s15486_s5] sm:$0xf]  ;;  %v7519_v20 = vor.u32 %v9817_v12, %v7518_v11  ;;  %v9685_v12 = vld [vmem:[%s15486_s5 + $0x244] sm:$0xf] }
  0xb4   :  { %v9809_v47 = vld [vmem:[%s15486_s5 + $0x61c] sm:$0xf0] }
  0xb5   :  { %2263 = vmatpush.bf16.msra.mxu3 %v7167_v22  ;;  %2249 = vmatpush.bf16.msra.mxu2 %v6911_v25  ;;  %v9669_v22 = vld [vmem:[%s15486_s5 + $0x1c4] sm:$0xf]  ;;  %v6719_v25 = vor.u32 %v9617_v19, %v6718_v18  ;;  %v9753_v55 = vld [vmem:[%s15486_s5 + $0x45c] sm:$0xf0] }
  0xb6   :  { %2291 = vmatpush.bf16.msrb.mxu1 %v7679_v28  ;;  %2277 = vmatpush.bf16.msrb.mxu0 %v7423_v30  ;;  %v6947_v28 = vor.u32 %v9669_v22, %v6944_v23  ;;  %v9661_v30 = vld [vmem:[%s15486_s5 + $0x184] sm:$0xf]  ;;  %v7230_v2 = vld [vmem:[%s15486_s5 + $0x400] sm:$0xf] }
  0xb7   :  { %v6915_v33 = vor.u32 %v9661_v30, %v6912_v31  ;;  %v9745_v3 = vld [vmem:[%s15486_s5 + $0x41c] sm:$0xf0]  ;;  %v9629_v18 = vld [vmem:[%s15486_s5 + $0x84] sm:$0xf] }
  0xb8   :  { %v6784_v19 = vld [vmem:[%s15486_s5 + $0xa0] sm:$0xf0] }
  0xb9   :  { %2264 = vmatpush.bf16.msra.mxu3 %v7135_v34  ;;  %2250 = vmatpush.bf16.msra.mxu2 %v6879_v37  ;;  %v9717_v34 = vld [vmem:[%s15486_s5 + $0x344] sm:$0xf]  ;;  %v6787_v21 = vor.u32 %v9629_v18, %v6784_v19 }
  0xba   :  { %2292 = vmatpush.bf16.msrb.mxu1 %v7647_v40  ;;  %2278 = vmatpush.bf16.msrb.mxu0 %v7391_v42  ;;  %v7139_v36 = vor.u32 %v9717_v34, %v7136_v35  ;;  %v9709_v37 = vld [vmem:[%s15486_s5 + $0x304] sm:$0xf]  ;;  %v7294_v40 = vld [vmem:[%s15486_s5 + $0x480] sm:$0xf] }
  0xbb   :  { %v7107_v39 = vor.u32 %v9709_v37, %v7104_v38  ;;  %v7295_v42 = vor.u32 %v9761_v41, %v7294_v40  ;;  %v7424_v22 = vld [vmem:[%s15486_s5 + $0x5a0] sm:$0xf0] }
  0xbc   :  { %v9621_v30 = vld [vmem:[%s15486_s5 + $0x44] sm:$0xf] }
  0xbd   :  { %2265 = vmatpush.bf16.msra.mxu3 %v7103_v46  ;;  %2251 = vmatpush.bf16.msra.mxu2 %v6847_v49  ;;  %v7486_v46 = vld [vmem:[%s15486_s5 + $0x600] sm:$0xf]  ;;  %v9701_v49 = vld [vmem:[%s15486_s5 + $0x2c4] sm:$0xf] }
  0xbe   :  { %2293 = vmatpush.bf16.msrb.mxu1 %v7615_v52  ;;  %2279 = vmatpush.bf16.msrb.mxu0 %v7359_v54  ;;  %v7487_v48 = vor.u32 %v9809_v47, %v7486_v46  ;;  %v7075_v52 = vor.u32 %v9701_v49, %v7072_v50  ;;  %v7262_v54 = vld [vmem:[%s15486_s5 + $0x440] sm:$0xf]  ;;  %v6752_v31 = vld [vmem:[%s15486_s5 + $0x60] sm:$0xf0] }
  0xbf   :  { %634 = vmatmul.bf16.vlgmr.msrb.gmra.mxu2 %v10907_v8  ;;  %662 = vmatmul.bf16.vlgmr.msra.gmra.mxu0 %v10907_v8  ;;  %v6750_v8 = vld [vmem:[%s15486_s5 + $0x40] sm:$0xf]  ;;  %v7263_v57 = vor.u32 %v9753_v55, %v7262_v54  ;;  %v7392_v34 = vld [vmem:[%s15486_s5 + $0x560] sm:$0xf0] }
  0xc0   :  { %648 = vmatmul.bf16.vlgmr.msrb.gmra.mxu3 %v10915_v13  ;;  %676 = vmatmul.bf16.vlgmr.msra.gmra.mxu1 %v10915_v13  ;;  %v7007_v13 = vor.u32 %v9689_v7, %v7006_v5  ;;  %v6751_v16 = vor.u32 %v9625_v9, %v6750_v8  ;;  %v7231_v5 = vor.u32 %v9745_v3, %v7230_v2  ;;  %v6816_v7 = vld [vmem:[%s15486_s5 + $0xe0] sm:$0xf0] }
  0xc1   :  { %2266 = vmatpush.bf16.msra.mxu3 %v7071_v58  ;;  %2252 = vmatpush.bf16.msra.mxu2 %v6815_v60  ;;  %v9645_v58 = vld [vmem:[%s15486_s5 + $0x104] sm:$0xf] }
  0xc2   :  { %2294 = vmatpush.bf16.msrb.mxu1 %v7583_v0  ;;  %2280 = vmatpush.bf16.msrb.mxu0 %v7327_v1  ;;  %v6851_v60 = vor.u32 %v9645_v58, %v6848_v59  ;;  %v7043_v0 = vor.u32 %v9693_v61, %v7040_v62  ;;  %v7680_v1 = vld [vmem:[%s15486_s5 + $0x7a0] sm:$0xf0] }
  0xc3   :  { %v9797_v8 = vld [vmem:[%s15486_s5 + $0x5c4] sm:$0xf] }
  0xc4   :  { %v7584_v37 = vld [vmem:[%s15486_s5 + $0x6e0] sm:$0xf0] }
  0xc5   :  { %2267 = vmatpush.bf16.msra.mxu3 %v7039_v4  ;;  %2253 = vmatpush.bf16.msra.mxu2 %v6783_v6  ;;  %v7683_v4 = vor.u32 %v9853_v63, %v7680_v1  ;;  %v9637_v6 = vld [vmem:[%s15486_s5 + $0xc4] sm:$0xf] }
  0xc6   :  { %2295 = vmatpush.bf16.msrb.mxu1 %v7551_v10  ;;  %2281 = vmatpush.bf16.msrb.mxu0 %v7295_v42  ;;  %v6819_v9 = vor.u32 %v9637_v6, %v6816_v7  ;;  %v7456_v10 = vld [vmem:[%s15486_s5 + $0x5e0] sm:$0xf0] }
  0xc7   :  { %v7459_v11 = vor.u32 %v9797_v8, %v7456_v10  ;;  %v6720_v40 = vld [vmem:[%s15486_s5 + $0x20] sm:$0xf0] }
  0xc8   :  { %v9773_v41 = vld [vmem:[%s15486_s5 + $0x504] sm:$0xf] }
  0xc9   :  { %2268 = vmatpush.bf16.msra.mxu3 %v7007_v13  ;;  %2254 = vmatpush.bf16.msra.mxu2 %v6751_v16  ;;  %v7008_v13 = vld [vmem:[%s15486_s5 + $0x260] sm:$0xf0]  ;;  %v7363_v44 = vor.u32 %v9773_v41, %v7360_v43  ;;  %v9666_v43 = vld [vmem:[%s15486_s5 + $0x1a4] sm:$0xf0] }
  0xca   :  { %2296 = vmatpush.bf16.msrb.mxu1 %v7519_v20  ;;  %2282 = vmatpush.bf16.msrb.mxu0 %v7263_v57  ;;  %v7011_v15 = vor.u32 %v9685_v12, %v7008_v13  ;;  %v7648_v16 = vld [vmem:[%s15486_s5 + $0x760] sm:$0xf0]  ;;  %v11264_v57 = vld [vmem:[%s15487_s4] sm:$0xf] }
  0xcb   :  { %v7651_v17 = vor.u32 %v9845_v14, %v7648_v16  ;;  %v9789_v20 = vld [vmem:[%s15486_s5 + $0x584] sm:$0xf]  ;;  %v242_v8 = vperm.slane %v11264_v57, 0  ;;  %v7206_v16 = vld [vmem:[%s15486_s5 + $0x3c8] sm:$0xf] }
  0xcc   :  { %v7427_v23 = vor.u32 %v9789_v20, %v7424_v22  ;;  %v7552_v46 = vld [vmem:[%s15486_s5 + $0x6a0] sm:$0xf0] }
  0xcd   :  { %2269 = vmatpush.bf16.msra.mxu3 %v6975_v24  ;;  %2255 = vmatpush.bf16.msra.mxu2 %v6719_v25  ;;  %v9677_v24 = vld [vmem:[%s15486_s5 + $0x204] sm:$0xf] }
  0xce   :  { %2297 = vmatpush.bf16.msrb.mxu1 %v7487_v48  ;;  %2283 = vmatpush.bf16.msrb.mxu0 %v7231_v5  ;;  %v6976_v25 = vld [vmem:[%s15486_s5 + $0x220] sm:$0xf0] }
  0xcf   :  { %v6979_v27 = vor.u32 %v9677_v24, %v6976_v25  ;;  %v9765_v48 = vld [vmem:[%s15486_s5 + $0x4c4] sm:$0xf] }
  0xd0   :  { %v7328_v49 = vld [vmem:[%s15486_s5 + $0x4e0] sm:$0xf0] }
  0xd1   :  { %2318 = vmatpush.bf16.msrb.mxu3 %v7203_v26  ;;  %2304 = vmatpush.bf16.msrb.mxu2 %v6947_v28  ;;  %v9837_v26 = vld [vmem:[%s15486_s5 + $0x704] sm:$0xf]  ;;  %v7331_v50 = vor.u32 %v9765_v48, %v7328_v49  ;;  %v7110_v48 = vld [vmem:[%s15486_s5 + $0x308] sm:$0xf] }
  0xd2   :  { %2346 = vmatpush.bf16.msra.mxu1 %v7715_v56  ;;  %2332 = vmatpush.bf16.msra.mxu0 %v7459_v11  ;;  %v7616_v28 = vld [vmem:[%s15486_s5 + $0x720] sm:$0xf0]  ;;  %v9714_v49 = vld [vmem:[%s15486_s5 + $0x324] sm:$0xf0] }
  0xd3   :  { %v7619_v29 = vor.u32 %v9837_v26, %v7616_v28  ;;  %v9757_v54 = vld [vmem:[%s15486_s5 + $0x484] sm:$0xf]  ;;  %v7174_v26 = vld [vmem:[%s15486_s5 + $0x388] sm:$0xf] }
  0xd4   :  { %v7296_v55 = vld [vmem:[%s15486_s5 + $0x4a0] sm:$0xf0] }
  0xd5   :  { %2319 = vmatpush.bf16.msrb.mxu3 %v7171_v32  ;;  %2305 = vmatpush.bf16.msrb.mxu2 %v6915_v33  ;;  %v6755_v32 = vor.u32 %v9621_v30, %v6752_v31  ;;  %v9781_v33 = vld [vmem:[%s15486_s5 + $0x544] sm:$0xf]  ;;  %v7299_v56 = vor.u32 %v9757_v54, %v7296_v55  ;;  %v245_v30 = vperm.slane %v11264_v57, 3  ;;  %v6886_v54 = vld [vmem:[%s15486_s5 + $0x148] sm:$0xf] }
  0xd6   :  { %2347 = vmatpush.bf16.msra.mxu1 %v7683_v4  ;;  %2333 = vmatpush.bf16.msra.mxu0 %v7427_v23  ;;  %v7395_v35 = vor.u32 %v9781_v33, %v7392_v34  ;;  %v9805_v58 = vld [vmem:[%s15486_s5 + $0x604] sm:$0xf]  ;;  %v9674_v33 = vld [vmem:[%s15486_s5 + $0x1e4] sm:$0xf0] }
  0xd7   :  { %v7488_v59 = vld [vmem:[%s15486_s5 + $0x620] sm:$0xf0]  ;;  %v9658_v55 = vld [vmem:[%s15486_s5 + $0x164] sm:$0xf0] }
  0xd8   :  { %v9749_v62 = vld [vmem:[%s15486_s5 + $0x444] sm:$0xf] }
  0xd9   :  { %2320 = vmatpush.bf16.msrb.mxu3 %v7139_v36  ;;  %2306 = vmatpush.bf16.msrb.mxu2 %v6883_v45  ;;  %v9829_v36 = vld [vmem:[%s15486_s5 + $0x6c4] sm:$0xf] }
  0xda   :  { %2348 = vmatpush.bf16.msra.mxu1 %v7651_v17  ;;  %v7587_v38 = vor.u32 %v9829_v36, %v7584_v37  ;;  %2334 = vmatpush.bf16.msra.mxu0 %v7395_v35  ;;  %v9821_v45 = vld [vmem:[%s15486_s5 + $0x684] sm:$0xf]  ;;  %v9738_v17 = vld [vmem:[%s15486_s5 + $0x3e4] sm:$0xf0] }
  0xdb   :  { %v7555_v47 = vor.u32 %v9821_v45, %v7552_v46  ;;  %v7264_v63 = vld [vmem:[%s15486_s5 + $0x460] sm:$0xf0]  ;;  %v7142_v37 = vld [vmem:[%s15486_s5 + $0x348] sm:$0xf]  ;;  %v244_v46 = vperm.slane %v11264_v57, 2 }
  0xdc   :  { %v7267_v2 = vor.u32 %v9749_v62, %v7264_v63  ;;  %v9741_v3 = vld [vmem:[%s15486_s5 + $0x404] sm:$0xf]  ;;  %v7718_v62 = vld [vmem:[%s15486_s5 + $0x7c8] sm:$0xf] }
  0xdd   :  { %2321 = vmatpush.bf16.msrb.mxu3 %v7107_v39  ;;  %2307 = vmatpush.bf16.msrb.mxu2 %v6851_v60  ;;  %v9613_v39 = vld [vmem:[%s15486_s5 + $0x4] sm:$0xf]  ;;  %v7491_v60 = vor.u32 %v9805_v58, %v7488_v59  ;;  %v7078_v58 = vld [vmem:[%s15486_s5 + $0x2c8] sm:$0xf] }
  0xde   :  { %2349 = vmatpush.bf16.msra.mxu1 %v7619_v29  ;;  %v6723_v42 = vor.u32 %v9613_v39, %v6720_v40  ;;  %2335 = vmatpush.bf16.msra.mxu0 %v7363_v44  ;;  %v7232_v4 = vld [vmem:[%s15486_s5 + $0x420] sm:$0xf0]  ;;  %v9866_v63 = vld [vmem:[%s15486_s5 + $0x7e4] sm:$0xf0] }
  0xdf   :  { %v7235_v6 = vor.u32 %v9741_v3, %v7232_v4  ;;  %v6854_v3 = vld [vmem:[%s15486_s5 + $0x108] sm:$0xf] }
  0xe0   :  { %v9650_v4 = vld [vmem:[%s15486_s5 + $0x124] sm:$0xf0] }
  0xe1   :  { %2322 = vmatpush.bf16.msrb.mxu3 %v7075_v52  ;;  %2308 = vmatpush.bf16.msrb.mxu2 %v6819_v9  ;;  %v7520_v52 = vld [vmem:[%s15486_s5 + $0x660] sm:$0xf0] }
  0xe2   :  { %2350 = vmatpush.bf16.msra.mxu1 %v7587_v38  ;;  %v7523_v53 = vor.u32 %v9813_v51, %v7520_v52  ;;  %2336 = vmatpush.bf16.msra.mxu0 %v7331_v50  ;;  %v9722_v38 = vld [vmem:[%s15486_s5 + $0x364] sm:$0xf0] }
  0xe3   :  { %v7143_v45 = vor.u32 %v9722_v38, %v7142_v37  ;;  %v9794_v37 = vld [vmem:[%s15486_s5 + $0x5a4] sm:$0xf0] }
  0xe5   :  { %2323 = vmatpush.bf16.msrb.mxu3 %v7043_v0  ;;  %2309 = vmatpush.bf16.msrb.mxu2 %v6787_v21  ;;  %v243_v0 = vperm.slane %v11264_v57, 1  ;;  %v7207_v21 = vor.u32 %v9738_v17, %v7206_v16  ;;  %v7111_v57 = vor.u32 %v9714_v49, %v7110_v48  ;;  %v6855_v16 = vor.u32 %v9650_v4, %v6854_v3  ;;  %v6822_v17 = vld [vmem:[%s15486_s5 + $0xc8] sm:$0xf]  ;;  %v7208_v48 = vld [vmem:[%s15486_s5 + $0x3e8] sm:$0xf0] }
  0xe6   :  { %2351 = vmatpush.bf16.msra.mxu1 %v7555_v47  ;;  %2337 = vmatpush.bf16.msra.mxu0 %v7299_v56  ;;  %v6758_v49 = vld [vmem:[%s15486_s5 + $0x48] sm:$0xf]  ;;  %v9670_v3 = vld [vmem:[%s15486_s5 + $0x1cc] sm:$0xf] }
  0xe7   :  { %v6952_v4 = vld [vmem:[%s15486_s5 + $0x1e8] sm:$0xf0] }
  0xe9   :  { %2324 = vmatpush.bf16.msrb.mxu3 %v7011_v15  ;;  %2310 = vmatpush.bf16.msrb.mxu2 %v6755_v32  ;;  %v6950_v32 = vld [vmem:[%s15486_s5 + $0x1c8] sm:$0xf] }
  0xea   :  { %2352 = vmatpush.bf16.msra.mxu1 %v7523_v53  ;;  %2338 = vmatpush.bf16.msra.mxu0 %v7267_v2  ;;  %v6951_v39 = vor.u32 %v9674_v33, %v6950_v32  ;;  %v6790_v33 = vld [vmem:[%s15486_s5 + $0x88] sm:$0xf] }
  0xed   :  { %2325 = vmatpush.bf16.msrb.mxu3 %v6979_v27  ;;  %2311 = vmatpush.bf16.msrb.mxu2 %v6723_v42  ;;  %v9730_v27 = vld [vmem:[%s15486_s5 + $0x3a4] sm:$0xf0] }
  0xee   :  { %2353 = vmatpush.bf16.msra.mxu1 %v7491_v60  ;;  %2339 = vmatpush.bf16.msra.mxu0 %v7235_v6  ;;  %v7175_v34 = vor.u32 %v9730_v27, %v7174_v26  ;;  %v6918_v42 = vld [vmem:[%s15486_s5 + $0x188] sm:$0xf] }
  0xef   :  { %v6919_v51 = vor.u32 %v9666_v43, %v6918_v42  ;;  %v9690_v26 = vld [vmem:[%s15486_s5 + $0x264] sm:$0xf0] }
  0xf0   :  { %v9682_v42 = vld [vmem:[%s15486_s5 + $0x224] sm:$0xf0] }
  0xf1   :  { %v7622_v43 = vld [vmem:[%s15486_s5 + $0x708] sm:$0xf] }
 0x12c   :  { %v607_v61 = vpop.f32.mrf.mxu0 }
 0x12d   :  { %v621_v1 = vpop.f32.mrf.mxu1  ;;  %v608_v5 = vadd.f32 %v607_v61, %v243_v0  ;;  %v9706_v61 = vld [vmem:[%s15486_s5 + $0x2e4] sm:$0xf0] }
 0x12e   :  { %v7079_v6 = vor.u32 %v9706_v61, %v7078_v58  ;;  %v7176_v61 = vld [vmem:[%s15486_s5 + $0x3a8] sm:$0xf0] }
 0x12f   :  { %v622_v11 = vadd.f32 %v621_v1, %v608_v5 }
 0x131   :  { %v683_v18 = vmax.f32 %v622_v11, 0.0 }
 0x132   :  { %v579_v7 = vpop.f32.mrf.mxu2 }
 0x133   :  { %v593_v9 = vpop.f32.mrf.mxu3  ;;  %v580_v14 = vadd.f32 %v579_v7, %v242_v8  ;;  %v7719_v7 = vor.u32 %v9866_v63, %v7718_v62  ;;  %v6726_v62 = vld [vmem:[%s15486_s5 + $0x8] sm:$0xf] }
 0x134   :  { %v609_v10 = vpop.f32.mrf.mxu0  ;;  %v9618_v63 = vld [vmem:[%s15486_s5 + $0x24] sm:$0xf0] }
 0x135   :  { %v610_v12 = vadd.f32 %v609_v10, %v243_v0  ;;  %v623_v13 = vpop.f32.mrf.mxu1  ;;  %v594_v22 = vadd.f32 %v593_v9, %v580_v14  ;;  %v6887_v0 = vor.u32 %v9658_v55, %v6886_v54  ;;  %v9858_v14 = vld [vmem:[%s15486_s5 + $0x7a4] sm:$0xf0] }
 0x137   :  { %v624_v15 = vadd.f32 %v623_v13, %v610_v12  ;;  %v682_v35 = vmax.f32 %v594_v22, 0.0  ;;  %v9698_v12 = vld [vmem:[%s15486_s5 + $0x2a4] sm:$0xf0] }
 0x138   :  { %v7686_v13 = vld [vmem:[%s15486_s5 + $0x788] sm:$0xf] }
 0x139   :  { %v687_v19 = vmax.f32 %v624_v15, 0.0 }
 0x13a   :  { %v581_v20 = vpop.f32.mrf.mxu2 }
 0x13b   :  { %v11292_v23 = vpack.c.bf16 %v687_v19, %v683_v18  ;;  %v582_v24 = vadd.f32 %v581_v20, %v242_v8  ;;  %v595_v25 = vpop.f32.mrf.mxu3  ;;  %v7046_v8 = vld [vmem:[%s15486_s5 + $0x288] sm:$0xf] }
 0x13c   :  { %v663_v28 = vpop.f32.mrf.mxu0  ;;  %v9642_v19 = vld [vmem:[%s15486_s5 + $0xe4] sm:$0xf0]  ;;  %v7047_v22 = vor.u32 %v9698_v12, %v7046_v8  ;;  %v6727_v8 = vor.u32 %v9618_v63, %v6726_v62  ;;  %v7144_v12 = vld [vmem:[%s15486_s5 + $0x368] sm:$0xf0] }
 0x13d   :  { %v596_v29 = vadd.f32 %v595_v25, %v582_v24  ;;  %v677_v31 = vpop.f32.mrf.mxu1  ;;  %2270 = vmatmul.bf16.vlgmr.msra.gmra.mxu3 %v11292_v23  ;;  %v664_v41 = vadd.f32 %v663_v28, %v245_v30  ;;  %v7462_v20 = vld [vmem:[%s15486_s5 + $0x5c8] sm:$0xf]  ;;  %v7687_v24 = vor.u32 %v9858_v14, %v7686_v13  ;;  %v6955_v13 = vor.u32 %v9670_v3, %v6952_v4  ;;  %v9846_v3 = vld [vmem:[%s15486_s5 + $0x74c] sm:$0xf] }
 0x13e   :  { %2374 = vmatpush.bf16.msra.mxu3 %v7207_v21  ;;  %v9802_v21 = vld [vmem:[%s15486_s5 + $0x5e4] sm:$0xf0]  ;;  %v7656_v4 = vld [vmem:[%s15486_s5 + $0x768] sm:$0xf0] }
 0x13f   :  { %v686_v36 = vmax.f32 %v596_v29, 0.0  ;;  %v678_v52 = vadd.f32 %v677_v31, %v664_v41  ;;  %v7014_v25 = vld [vmem:[%s15486_s5 + $0x248] sm:$0xf]  ;;  %v6823_v31 = vor.u32 %v9642_v19, %v6822_v17  ;;  %v7463_v32 = vor.u32 %v9802_v21, %v7462_v20  ;;  %v9662_v17 = vld [vmem:[%s15486_s5 + $0x18c] sm:$0xf] }
 0x140   :  { %v7654_v29 = vld [vmem:[%s15486_s5 + $0x748] sm:$0xf]  ;;  %v7015_v38 = vor.u32 %v9690_v26, %v7014_v25  ;;  %v7112_v25 = vld [vmem:[%s15486_s5 + $0x328] sm:$0xf0] }
 0x141   :  { %v11314_v40 = vpack.c.bf16 %v686_v36, %v682_v35  ;;  %v685_v1 = vmax.f32 %v678_v52, 0.0  ;;  %v9634_v35 = vld [vmem:[%s15486_s5 + $0xa4] sm:$0xf0] }
 0x142   :  { %2375 = vmatpush.bf16.msra.mxu3 %v7175_v34  ;;  %v635_v44 = vpop.f32.mrf.mxu2  ;;  %v7430_v36 = vld [vmem:[%s15486_s5 + $0x588] sm:$0xf] }
 0x143   :  { %v649_v47 = vpop.f32.mrf.mxu3  ;;  %2256 = vmatmul.bf16.vlgmr.msra.gmra.mxu2 %v11314_v40  ;;  %v636_v59 = vadd.f32 %v635_v44, %v244_v46  ;;  %v6982_v41 = vld [vmem:[%s15486_s5 + $0x208] sm:$0xf] }
 0x144   :  { %2360 = vmatpush.bf16.msra.mxu2 %v6951_v39  ;;  %v665_v50 = vpop.f32.mrf.mxu0  ;;  %v9842_v44 = vld [vmem:[%s15486_s5 + $0x724] sm:$0xf0] }
 0x145   :  { %v666_v53 = vadd.f32 %v665_v50, %v245_v30  ;;  %v679_v56 = vpop.f32.mrf.mxu1  ;;  %v650_v9 = vadd.f32 %v649_v47, %v636_v59  ;;  %v9850_v30 = vld [vmem:[%s15486_s5 + $0x764] sm:$0xf0]  ;;  %v9734_v47 = vld [vmem:[%s15486_s5 + $0x3cc] sm:$0xf]  ;;  %v7623_v54 = vor.u32 %v9842_v44, %v7622_v43 }
 0x146   :  { %2376 = vmatpush.bf16.msra.mxu3 %v7143_v45  ;;  %v7655_v39 = vor.u32 %v9850_v30, %v7654_v29  ;;  %v6791_v45 = vor.u32 %v9634_v35, %v6790_v33  ;;  %v9626_v50 = vld [vmem:[%s15486_s5 + $0x64] sm:$0xf0]  ;;  %v7211_v55 = vor.u32 %v9734_v47, %v7208_v48  ;;  %v9654_v30 = vld [vmem:[%s15486_s5 + $0x14c] sm:$0xf] }
 0x147   :  { %v680_v60 = vadd.f32 %v679_v56, %v666_v53  ;;  %v684_v27 = vmax.f32 %v650_v9, 0.0  ;;  %v9786_v52 = vld [vmem:[%s15486_s5 + $0x564] sm:$0xf0]  ;;  %v6983_v53 = vor.u32 %v9682_v42, %v6982_v41  ;;  %v6759_v58 = vor.u32 %v9626_v50, %v6758_v49  ;;  %v7720_v41 = vld [vmem:[%s15486_s5 + $0x7e8] sm:$0xf0] }
 0x148   :  { %2361 = vmatpush.bf16.msra.mxu2 %v6919_v51  ;;  %v7398_v51 = vld [vmem:[%s15486_s5 + $0x548] sm:$0xf]  ;;  %v6856_v47 = vld [vmem:[%s15486_s5 + $0x128] sm:$0xf0] }
 0x149   :  { %v689_v2 = vmax.f32 %v680_v60, 0.0  ;;  %v7590_v56 = vld [vmem:[%s15486_s5 + $0x6c8] sm:$0xf]  ;;  %v7399_v59 = vor.u32 %v9786_v52, %v7398_v51  ;;  %v9726_v60 = vld [vmem:[%s15486_s5 + $0x38c] sm:$0xf] }
 0x14a   :  { %2377 = vmatpush.bf16.msra.mxu3 %v7111_v57  ;;  %v637_v5 = vpop.f32.mrf.mxu2  ;;  %v9834_v57 = vld [vmem:[%s15486_s5 + $0x6e4] sm:$0xf0]  ;;  %v9694_v50 = vld [vmem:[%s15486_s5 + $0x28c] sm:$0xf] }
 0x14b   :  { %v11357_v10 = vpack.c.bf16 %v689_v2, %v685_v1  ;;  %v638_v11 = vadd.f32 %v637_v5, %v244_v46  ;;  %v651_v15 = vpop.f32.mrf.mxu3  ;;  %v7431_v46 = vor.u32 %v9794_v37, %v7430_v36  ;;  %v9778_v1 = vld [vmem:[%s15486_s5 + $0x524] sm:$0xf0]  ;;  %v7591_v2 = vor.u32 %v9834_v57, %v7590_v56  ;;  %v9702_v36 = vld [vmem:[%s15486_s5 + $0x2cc] sm:$0xf] }
 0x14c   :  { %2362 = vmatpush.bf16.msra.mxu2 %v6887_v0  ;;  %v7366_v0 = vld [vmem:[%s15486_s5 + $0x508] sm:$0xf]  ;;  %v7179_v5 = vor.u32 %v9726_v60, %v7176_v61  ;;  %v7048_v52 = vld [vmem:[%s15486_s5 + $0x2a8] sm:$0xf0] }
 0x14d   :  { %v652_v18 = vadd.f32 %v651_v15, %v638_v11  ;;  %2298 = vmatmul.bf16.vlgmr.msrb.gmra.mxu1 %v11357_v10  ;;  %2326 = vmatmul.bf16.vlgmr.msrb.gmra.mxu3 %v11292_v23  ;;  %v7367_v9 = vor.u32 %v9778_v1, %v7366_v0  ;;  %v9718_v11 = vld [vmem:[%s15486_s5 + $0x34c] sm:$0xf]  ;;  %v7334_v14 = vld [vmem:[%s15486_s5 + $0x4c8] sm:$0xf]  ;;  %v7051_v62 = vor.u32 %v9694_v50, %v7048_v52  ;;  %v7150_v50 = vld [vmem:[%s15486_s5 + $0x350] sm:$0xf] }
 0x14e   :  { %2378 = vmatpush.bf16.msra.mxu3 %v7079_v6  ;;  %2402 = vmatpush.bf16.msrb.mxu1 %v7719_v7  ;;  %v7558_v6 = vld [vmem:[%s15486_s5 + $0x688] sm:$0xf]  ;;  %v7147_v19 = vor.u32 %v9718_v11, %v7144_v12  ;;  %v9798_v60 = vld [vmem:[%s15486_s5 + $0x5cc] sm:$0xf] }
 0x14f   :  { %v688_v28 = vmax.f32 %v652_v18, 0.0  ;;  %v9826_v7 = vld [vmem:[%s15486_s5 + $0x6a4] sm:$0xf0]  ;;  %v6920_v18 = vld [vmem:[%s15486_s5 + $0x1a8] sm:$0xf0] }
 0x150   :  { %2363 = vmatpush.bf16.msra.mxu2 %v6855_v16  ;;  %v9770_v15 = vld [vmem:[%s15486_s5 + $0x4e4] sm:$0xf0]  ;;  %v7559_v16 = vor.u32 %v9826_v7, %v7558_v6  ;;  %v6923_v26 = vor.u32 %v9662_v17, %v6920_v18  ;;  %v7464_v61 = vld [vmem:[%s15486_s5 + $0x5e8] sm:$0xf0] }
 0x151   :  { %v11397_v34 = vpack.c.bf16 %v688_v28, %v684_v27  ;;  %v7526_v20 = vld [vmem:[%s15486_s5 + $0x648] sm:$0xf]  ;;  %v9686_v0 = vld [vmem:[%s15486_s5 + $0x24c] sm:$0xf]  ;;  %v7467_v6 = vor.u32 %v9798_v60, %v7464_v61 }
 0x152   :  { %2379 = vmatpush.bf16.msra.mxu3 %v7047_v22  ;;  %2403 = vmatpush.bf16.msrb.mxu1 %v7687_v24  ;;  %v9818_v21 = vld [vmem:[%s15486_s5 + $0x664] sm:$0xf0]  ;;  %v7335_v22 = vor.u32 %v9770_v15, %v7334_v14  ;;  %v9710_v24 = vld [vmem:[%s15486_s5 + $0x30c] sm:$0xf] }
 0x153   :  { %2284 = vmatmul.bf16.vlgmr.msrb.gmra.mxu0 %v11397_v34  ;;  %2312 = vmatmul.bf16.vlgmr.msrb.gmra.mxu2 %v11314_v40  ;;  %v7302_v27 = vld [vmem:[%s15486_s5 + $0x488] sm:$0xf]  ;;  %v7527_v29 = vor.u32 %v9818_v21, %v7526_v20  ;;  %v9630_v7 = vld [vmem:[%s15486_s5 + $0x8c] sm:$0xf]  ;;  %v7214_v20 = vld [vmem:[%s15486_s5 + $0x3d0] sm:$0xf] }
 0x154   :  { %2364 = vmatpush.bf16.msra.mxu2 %v6823_v31  ;;  %2388 = vmatpush.bf16.msrb.mxu0 %v7463_v32  ;;  %v9762_v28 = vld [vmem:[%s15486_s5 + $0x4a4] sm:$0xf0]  ;;  %v6888_v31 = vld [vmem:[%s15486_s5 + $0x168] sm:$0xf0]  ;;  %v7115_v32 = vor.u32 %v9710_v24, %v7112_v25  ;;  %v9739_v21 = vld [vmem:[%s15486_s5 + $0x3ec] sm:$0xf0] }
 0x155   :  { %v7494_v33 = vld [vmem:[%s15486_s5 + $0x608] sm:$0xf]  ;;  %v7303_v37 = vor.u32 %v9762_v28, %v7302_v27  ;;  %v6891_v42 = vor.u32 %v9654_v30, %v6888_v31  ;;  %v7432_v11 = vld [vmem:[%s15486_s5 + $0x5a8] sm:$0xf0] }
 0x156   :  { %2380 = vmatpush.bf16.msra.mxu3 %v7015_v38  ;;  %2404 = vmatpush.bf16.msrb.mxu1 %v7655_v39  ;;  %v9810_v35 = vld [vmem:[%s15486_s5 + $0x624] sm:$0xf0]  ;;  %v7080_v38 = vld [vmem:[%s15486_s5 + $0x2e8] sm:$0xf0] }
 0x157   :  { %v9862_v39 = vld [vmem:[%s15486_s5 + $0x7cc] sm:$0xf]  ;;  %v7270_v43 = vld [vmem:[%s15486_s5 + $0x448] sm:$0xf]  ;;  %v7083_v48 = vor.u32 %v9702_v36, %v7080_v38  ;;  %v9731_v36 = vld [vmem:[%s15486_s5 + $0x3ac] sm:$0xf0] }
 0x158   :  { %2365 = vmatpush.bf16.msra.mxu2 %v6791_v45  ;;  %2389 = vmatpush.bf16.msrb.mxu0 %v7431_v46  ;;  %v9754_v44 = vld [vmem:[%s15486_s5 + $0x464] sm:$0xf0]  ;;  %v7495_v45 = vor.u32 %v9810_v35, %v7494_v33  ;;  %v9646_v46 = vld [vmem:[%s15486_s5 + $0x10c] sm:$0xf]  ;;  %v7723_v49 = vor.u32 %v9862_v39, %v7720_v41  ;;  %v7182_v35 = vld [vmem:[%s15486_s5 + $0x390] sm:$0xf] }
 0x159   :  { %v7271_v51 = vor.u32 %v9754_v44, %v7270_v43  ;;  %v7238_v56 = vld [vmem:[%s15486_s5 + $0x408] sm:$0xf]  ;;  %v9678_v14 = vld [vmem:[%s15486_s5 + $0x20c] sm:$0xf]  ;;  %v6958_v43 = vld [vmem:[%s15486_s5 + $0x1d0] sm:$0xf] }
 0x15a   :  { %2381 = vmatpush.bf16.msra.mxu3 %v6983_v53  ;;  %2405 = vmatpush.bf16.msrb.mxu1 %v7623_v54  ;;  %v9854_v53 = vld [vmem:[%s15486_s5 + $0x78c] sm:$0xf]  ;;  %v9746_v57 = vld [vmem:[%s15486_s5 + $0x424] sm:$0xf0]  ;;  %v9675_v44 = vld [vmem:[%s15486_s5 + $0x1ec] sm:$0xf0] }
 0x15b   :  { %v7688_v54 = vld [vmem:[%s15486_s5 + $0x7a8] sm:$0xf0]  ;;  %v7239_v1 = vor.u32 %v9746_v57, %v7238_v56  ;;  %v6959_v52 = vor.u32 %v9675_v44, %v6958_v43  ;;  %v6926_v56 = vld [vmem:[%s15486_s5 + $0x190] sm:$0xf] }
 0x15c   :  { %2366 = vmatpush.bf16.msra.mxu2 %v6759_v58  ;;  %2390 = vmatpush.bf16.msrb.mxu0 %v7399_v59  ;;  %v9638_v58 = vld [vmem:[%s15486_s5 + $0xcc] sm:$0xf]  ;;  %v7691_v63 = vor.u32 %v9854_v53, %v7688_v54  ;;  %v9667_v57 = vld [vmem:[%s15486_s5 + $0x1ac] sm:$0xf0] }
 0x15d   :  { %2354 = vmatmul.bf16.vlgmr.msra.gmra.mxu1 %v11357_v10  ;;  %2382 = vmatmul.bf16.vlgmr.msra.gmra.mxu3 %v11292_v23  ;;  %v6824_v59 = vld [vmem:[%s15486_s5 + $0xe8] sm:$0xf0] }
 0x15e   :  { %2430 = vmatpush.bf16.msrb.mxu3 %v7211_v55  ;;  %2406 = vmatpush.bf16.msrb.mxu1 %v7591_v2  ;;  %v6859_v55 = vor.u32 %v9646_v46, %v6856_v47  ;;  %v7016_v2 = vld [vmem:[%s15486_s5 + $0x268] sm:$0xf0] }
 0x15f   :  { %v7019_v12 = vor.u32 %v9686_v0, %v7016_v2  ;;  %v6984_v15 = vld [vmem:[%s15486_s5 + $0x228] sm:$0xf0]  ;;  %v6927_v0 = vor.u32 %v9667_v57, %v6926_v56  ;;  %v9843_v56 = vld [vmem:[%s15486_s5 + $0x72c] sm:$0xf0] }
 0x160   :  { %2367 = vmatpush.bf16.msra.mxu2 %v6727_v8  ;;  %2391 = vmatpush.bf16.msrb.mxu0 %v7367_v9  ;;  %v6792_v8 = vld [vmem:[%s15486_s5 + $0xa8] sm:$0xf0]  ;;  %v6987_v27 = vor.u32 %v9678_v14, %v6984_v15  ;;  %v9867_v14 = vld [vmem:[%s15486_s5 + $0x7ec] sm:$0xf0] }
 0x161   :  { %v9790_v9 = vld [vmem:[%s15486_s5 + $0x58c] sm:$0xf]  ;;  %v6795_v18 = vor.u32 %v9630_v7, %v6792_v8 }
 0x162   :  { %2431 = vmatpush.bf16.msrb.mxu3 %v7179_v5  ;;  %2407 = vmatpush.bf16.msrb.mxu1 %v7559_v16  ;;  %v6827_v5 = vor.u32 %v9638_v58, %v6824_v59  ;;  %v9838_v16 = vld [vmem:[%s15486_s5 + $0x70c] sm:$0xf] }
 0x163   :  { %2340 = vmatmul.bf16.vlgmr.msra.gmra.mxu0 %v11397_v34  ;;  %2368 = vmatmul.bf16.vlgmr.msra.gmra.mxu2 %v11314_v40  ;;  %v7624_v17 = vld [vmem:[%s15486_s5 + $0x728] sm:$0xf0] }
 0x164   :  { %2416 = vmatpush.bf16.msrb.mxu2 %v6955_v13  ;;  %2392 = vmatpush.bf16.msrb.mxu0 %v7335_v22  ;;  %v7659_v13 = vor.u32 %v9846_v3, %v7656_v4  ;;  %v9622_v22 = vld [vmem:[%s15486_s5 + $0x4c] sm:$0xf]  ;;  %v7627_v28 = vor.u32 %v9838_v16, %v7624_v17  ;;  %v6894_v4 = vld [vmem:[%s15486_s5 + $0x150] sm:$0xf] }
 0x165   :  { %v6760_v24 = vld [vmem:[%s15486_s5 + $0x68] sm:$0xf0] }
 0x166   :  { %2432 = vmatpush.bf16.msrb.mxu3 %v7147_v19  ;;  %2408 = vmatpush.bf16.msrb.mxu1 %v7527_v29  ;;  %v7435_v19 = vor.u32 %v9790_v9, %v7432_v11  ;;  %v9782_v25 = vld [vmem:[%s15486_s5 + $0x54c] sm:$0xf]  ;;  %v7215_v29 = vor.u32 %v9739_v21, %v7214_v20  ;;  %v7086_v9 = vld [vmem:[%s15486_s5 + $0x2d0] sm:$0xf] }
 0x167   :  { %v9830_v30 = vld [vmem:[%s15486_s5 + $0x6cc] sm:$0xf]  ;;  %v9651_v20 = vld [vmem:[%s15486_s5 + $0x12c] sm:$0xf0] }
 0x168   :  { %2417 = vmatpush.bf16.msrb.mxu2 %v6923_v26  ;;  %2393 = vmatpush.bf16.msrb.mxu0 %v7303_v37  ;;  %v7400_v26 = vld [vmem:[%s15486_s5 + $0x568] sm:$0xf0] }
 0x169   :  { %v7592_v31 = vld [vmem:[%s15486_s5 + $0x6e8] sm:$0xf0]  ;;  %v7403_v33 = vor.u32 %v9782_v25, %v7400_v26  ;;  %v9699_v26 = vld [vmem:[%s15486_s5 + $0x2ac] sm:$0xf0] }
 0x16a   :  { %2433 = vmatpush.bf16.msrb.mxu3 %v7115_v32  ;;  %2409 = vmatpush.bf16.msrb.mxu1 %v7495_v45  ;;  %v6763_v32 = vor.u32 %v9622_v22, %v6760_v24  ;;  %v9614_v37 = vld [vmem:[%s15486_s5 + $0xc] sm:$0xf]  ;;  %v7183_v45 = vor.u32 %v9731_v36, %v7182_v35  ;;  %v7054_v24 = vld [vmem:[%s15486_s5 + $0x290] sm:$0xf] }
 0x16b   :  { %v6728_v38 = vld [vmem:[%s15486_s5 + $0x28] sm:$0xf0]  ;;  %v7470_v35 = vld [vmem:[%s15486_s5 + $0x5d0] sm:$0xf] }
 0x16c   :  { %2418 = vmatpush.bf16.msrb.mxu2 %v6891_v42  ;;  %2394 = vmatpush.bf16.msrb.mxu0 %v7271_v51  ;;  %v9774_v39 = vld [vmem:[%s15486_s5 + $0x50c] sm:$0xf]  ;;  %v7595_v42 = vor.u32 %v9830_v30, %v7592_v31  ;;  %v9723_v51 = vld [vmem:[%s15486_s5 + $0x36c] sm:$0xf0] }
 0x16d   :  { %2410 = vmatmul.bf16.vlgmr.msrb.gmra.mxu1 %v11357_v10  ;;  %v7368_v41 = vld [vmem:[%s15486_s5 + $0x528] sm:$0xf0]  ;;  %v7151_v58 = vor.u32 %v9723_v51, %v7150_v50  ;;  %v9803_v36 = vld [vmem:[%s15486_s5 + $0x5ec] sm:$0xf0] }
 0x16e   :  { %2434 = vmatpush.bf16.msrb.mxu3 %v7083_v48  ;;  %2458 = vmatpush.bf16.msra.mxu1 %v7723_v49  ;;  %v9822_v46 = vld [vmem:[%s15486_s5 + $0x68c] sm:$0xf]  ;;  %v6731_v48 = vor.u32 %v9614_v37, %v6728_v38  ;;  %v7371_v49 = vor.u32 %v9774_v39, %v7368_v41  ;;  %v7055_v37 = vor.u32 %v9699_v26, %v7054_v24  ;;  %v7022_v41 = vld [vmem:[%s15486_s5 + $0x250] sm:$0xf]  ;;  %v9719_v24 = vld [vmem:[%s15486_s5 + $0x354] sm:$0xf] }
 0x16f   :  { %v7560_v47 = vld [vmem:[%s15486_s5 + $0x6a8] sm:$0xf0]  ;;  %v7471_v44 = vor.u32 %v9803_v36, %v7470_v35  ;;  %v9795_v50 = vld [vmem:[%s15486_s5 + $0x5ac] sm:$0xf0]  ;;  %v7152_v26 = vld [vmem:[%s15486_s5 + $0x370] sm:$0xf0] }
 0x170   :  { %2419 = vmatpush.bf16.msrb.mxu2 %v6859_v55  ;;  %2395 = vmatpush.bf16.msrb.mxu0 %v7239_v1  ;;  %v9766_v53 = vld [vmem:[%s15486_s5 + $0x4cc] sm:$0xf]  ;;  %v7563_v55 = vor.u32 %v9822_v46, %v7560_v47  ;;  %v9851_v46 = vld [vmem:[%s15486_s5 + $0x76c] sm:$0xf0] }
 0x171   :  { %v7336_v54 = vld [vmem:[%s15486_s5 + $0x4e8] sm:$0xf0]  ;;  %v6798_v47 = vld [vmem:[%s15486_s5 + $0x90] sm:$0xf] }
 0x172   :  { %2435 = vmatpush.bf16.msrb.mxu3 %v7051_v62  ;;  %2459 = vmatpush.bf16.msra.mxu1 %v7691_v63  ;;  %v9814_v59 = vld [vmem:[%s15486_s5 + $0x64c] sm:$0xf]  ;;  %v7339_v61 = vor.u32 %v9766_v53, %v7336_v54  ;;  %v7118_v62 = vld [vmem:[%s15486_s5 + $0x310] sm:$0xf] }
 0x173   :  { %2396 = vmatmul.bf16.vlgmr.msrb.gmra.mxu0 %v11397_v34  ;;  %v7528_v60 = vld [vmem:[%s15486_s5 + $0x668] sm:$0xf0]  ;;  %v9715_v63 = vld [vmem:[%s15486_s5 + $0x32c] sm:$0xf0] }
 0x174   :  { %2420 = vmatpush.bf16.msrb.mxu2 %v6827_v5  ;;  %2444 = vmatpush.bf16.msra.mxu0 %v7467_v6  ;;  %v9758_v1 = vld [vmem:[%s15486_s5 + $0x48c] sm:$0xf]  ;;  %v7531_v3 = vor.u32 %v9814_v59, %v7528_v60  ;;  %v9659_v5 = vld [vmem:[%s15486_s5 + $0x16c] sm:$0xf0]  ;;  %v7119_v6 = vor.u32 %v9715_v63, %v7118_v62  ;;  %v9735_v59 = vld [vmem:[%s15486_s5 + $0x3d4] sm:$0xf] }
 0x175   :  { %v7304_v2 = vld [vmem:[%s15486_s5 + $0x4a8] sm:$0xf0]  ;;  %v6895_v15 = vor.u32 %v9659_v5, %v6894_v4  ;;  %v9683_v54 = vld [vmem:[%s15486_s5 + $0x22c] sm:$0xf0]  ;;  %v7216_v60 = vld [vmem:[%s15486_s5 + $0x3f0] sm:$0xf0] }
 0x176   :  { %2436 = vmatpush.bf16.msrb.mxu3 %v7019_v12  ;;  %2460 = vmatpush.bf16.msra.mxu1 %v7659_v13  ;;  %v9806_v7 = vld [vmem:[%s15486_s5 + $0x60c] sm:$0xf]  ;;  %v7307_v11 = vor.u32 %v9758_v1, %v7304_v2  ;;  %v9707_v12 = vld [vmem:[%s15486_s5 + $0x2ec] sm:$0xf0] }
 0x177   :  { %v7496_v8 = vld [vmem:[%s15486_s5 + $0x628] sm:$0xf0]  ;;  %v7726_v13 = vld [vmem:[%s15486_s5 + $0x7d0] sm:$0xf]  ;;  %v7087_v21 = vor.u32 %v9707_v12, %v7086_v9  ;;  %v7184_v9 = vld [vmem:[%s15486_s5 + $0x3b0] sm:$0xf0] }
 0x178   :  { %2421 = vmatpush.bf16.msrb.mxu2 %v6795_v18  ;;  %2445 = vmatpush.bf16.msra.mxu0 %v7435_v19  ;;  %v9750_v16 = vld [vmem:[%s15486_s5 + $0x44c] sm:$0xf]  ;;  %v7499_v18 = vor.u32 %v9806_v7, %v7496_v8  ;;  %v6862_v19 = vld [vmem:[%s15486_s5 + $0x110] sm:$0xf]  ;;  %v7727_v22 = vor.u32 %v9867_v14, %v7726_v13  ;;  %v9727_v8 = vld [vmem:[%s15486_s5 + $0x394] sm:$0xf] }
 0x179   :  { %v7272_v17 = vld [vmem:[%s15486_s5 + $0x468] sm:$0xf0]  ;;  %v9627_v62 = vld [vmem:[%s15486_s5 + $0x6c] sm:$0xf0] }
 0x17a   :  { %2437 = vmatpush.bf16.msrb.mxu3 %v6987_v27  ;;  %2461 = vmatpush.bf16.msra.mxu1 %v7627_v28  ;;  %v7275_v25 = vor.u32 %v9750_v16, %v7272_v17  ;;  %v7694_v27 = vld [vmem:[%s15486_s5 + $0x790] sm:$0xf]  ;;  %v9742_v30 = vld [vmem:[%s15486_s5 + $0x40c] sm:$0xf]  ;;  %v6960_v16 = vld [vmem:[%s15486_s5 + $0x1f0] sm:$0xf0] }
 0x17b   :  { %v9859_v28 = vld [vmem:[%s15486_s5 + $0x7ac] sm:$0xf0]  ;;  %v7240_v31 = vld [vmem:[%s15486_s5 + $0x428] sm:$0xf0] }
 0x17c   :  { %2422 = vmatpush.bf16.msrb.mxu2 %v6763_v32  ;;  %2446 = vmatpush.bf16.msra.mxu0 %v7403_v33  ;;  %v6830_v32 = vld [vmem:[%s15486_s5 + $0xd0] sm:$0xf]  ;;  %v7695_v38 = vor.u32 %v9859_v28, %v7694_v27  ;;  %v7243_v39 = vor.u32 %v9742_v30, %v7240_v31  ;;  %v6928_v30 = vld [vmem:[%s15486_s5 + $0x1b0] sm:$0xf0] }
 0x17d   :  { %2438 = vmatmul.bf16.vlgmr.msrb.gmra.mxu3 %v11292_v23  ;;  %v9643_v33 = vld [vmem:[%s15486_s5 + $0xec] sm:$0xf0] }
 0x17e   :  { %2486 = vmatpush.bf16.msra.mxu3 %v7215_v29  ;;  %2462 = vmatpush.bf16.msra.mxu1 %v7595_v42  ;;  %v6863_v29 = vor.u32 %v9651_v20, %v6862_v19  ;;  %v9691_v42 = vld [vmem:[%s15486_s5 + $0x26c] sm:$0xf0]  ;;  %v6831_v43 = vor.u32 %v9643_v33, %v6830_v32  ;;  %v7155_v32 = vor.u32 %v9719_v24, %v7152_v26  ;;  %v7440_v24 = vld [vmem:[%s15486_s5 + $0x5b0] sm:$0xf0] }
 0x17f   :  { %v7023_v51 = vor.u32 %v9691_v42, %v7022_v41  ;;  %v7406_v63 = vld [vmem:[%s15486_s5 + $0x550] sm:$0xf]  ;;  %v9679_v26 = vld [vmem:[%s15486_s5 + $0x214] sm:$0xf] }
 0x180   :  { %2423 = vmatpush.bf16.msrb.mxu2 %v6731_v48  ;;  %2447 = vmatpush.bf16.msra.mxu0 %v7371_v49  ;;  %v9635_v48 = vld [vmem:[%s15486_s5 + $0xac] sm:$0xf0] }
 0x181   :  { %v7438_v49 = vld [vmem:[%s15486_s5 + $0x590] sm:$0xf]  ;;  %v6799_v57 = vor.u32 %v9635_v48, %v6798_v47 }
 0x182   :  { %2487 = vmatpush.bf16.msra.mxu3 %v7183_v45  ;;  %2463 = vmatpush.bf16.msra.mxu1 %v7563_v55  ;;  %v7662_v45 = vld [vmem:[%s15486_s5 + $0x750] sm:$0xf] }
 0x183   :  { %2424 = vmatmul.bf16.vlgmr.msrb.gmra.mxu2 %v11314_v40  ;;  %v7663_v53 = vor.u32 %v9851_v46, %v7662_v45  ;;  %v7630_v55 = vld [vmem:[%s15486_s5 + $0x710] sm:$0xf] }
 0x184   :  { %2472 = vmatpush.bf16.msra.mxu2 %v6959_v52  ;;  %2448 = vmatpush.bf16.msra.mxu0 %v7339_v61  ;;  %v6990_v52 = vld [vmem:[%s15486_s5 + $0x210] sm:$0xf]  ;;  %v7631_v2 = vor.u32 %v9843_v56, %v7630_v55 }
 0x185   :  { %v6766_v61 = vld [vmem:[%s15486_s5 + $0x50] sm:$0xf]  ;;  %v6991_v1 = vor.u32 %v9683_v54, %v6990_v52  ;;  %v7728_v54 = vld [vmem:[%s15486_s5 + $0x7f0] sm:$0xf0] }
 0x186   :  { %2488 = vmatpush.bf16.msra.mxu3 %v7151_v58  ;;  %2464 = vmatpush.bf16.msra.mxu1 %v7531_v3  ;;  %v7439_v58 = vor.u32 %v9795_v50, %v7438_v49  ;;  %v7219_v3 = vor.u32 %v9735_v59, %v7216_v60  ;;  %v7598_v4 = vld [vmem:[%s15486_s5 + $0x6d0] sm:$0xf]  ;;  %v9703_v50 = vld [vmem:[%s15486_s5 + $0x2d4] sm:$0xf] }
 0x187   :  { %v9835_v5 = vld [vmem:[%s15486_s5 + $0x6ec] sm:$0xf0] }
 0x188   :  { %2473 = vmatpush.bf16.msra.mxu2 %v6927_v0  ;;  %2449 = vmatpush.bf16.msra.mxu0 %v7307_v11  ;;  %v9787_v0 = vld [vmem:[%s15486_s5 + $0x56c] sm:$0xf0]  ;;  %v7599_v17 = vor.u32 %v9835_v5, %v7598_v4 }
 0x189   :  { %v7407_v7 = vor.u32 %v9787_v0, %v7406_v63  ;;  %v6734_v11 = vld [vmem:[%s15486_s5 + $0x10] sm:$0xf]  ;;  %v7056_v63 = vld [vmem:[%s15486_s5 + $0x2b0] sm:$0xf0] }
 0x18a   :  { %2489 = vmatpush.bf16.msra.mxu3 %v7119_v6  ;;  %2465 = vmatpush.bf16.msra.mxu1 %v7499_v18  ;;  %v6767_v6 = vor.u32 %v9627_v62, %v6766_v61  ;;  %v9619_v12 = vld [vmem:[%s15486_s5 + $0x2c] sm:$0xf0]  ;;  %v7187_v18 = vor.u32 %v9727_v8, %v7184_v9  ;;  %v9695_v62 = vld [vmem:[%s15486_s5 + $0x294] sm:$0xf] }
 0x18b   :  { %v7374_v13 = vld [vmem:[%s15486_s5 + $0x510] sm:$0xf]  ;;  %v6735_v19 = vor.u32 %v9619_v12, %v6734_v11  ;;  %v9799_v8 = vld [vmem:[%s15486_s5 + $0x5d4] sm:$0xf]  ;;  %v7059_v11 = vor.u32 %v9695_v62, %v7056_v63  ;;  %v7158_v62 = vld [vmem:[%s15486_s5 + $0x358] sm:$0xf] }
 0x18c   :  { %2474 = vmatpush.bf16.msra.mxu2 %v6895_v15  ;;  %2450 = vmatpush.bf16.msra.mxu0 %v7275_v25  ;;  %v9779_v14 = vld [vmem:[%s15486_s5 + $0x52c] sm:$0xf0]  ;;  %v9671_v15 = vld [vmem:[%s15486_s5 + $0x1d4] sm:$0xf] }
 0x18d   :  { %2466 = vmatmul.bf16.vlgmr.msra.gmra.mxu1 %v11357_v10  ;;  %v7375_v20 = vor.u32 %v9779_v14, %v7374_v13  ;;  %v6963_v25 = vor.u32 %v9671_v15, %v6960_v16  ;;  %v7342_v27 = vld [vmem:[%s15486_s5 + $0x4d0] sm:$0xf]  ;;  %v7472_v9 = vld [vmem:[%s15486_s5 + $0x5f0] sm:$0xf0] }
 0x18e   :  { %2490 = vmatpush.bf16.msra.mxu3 %v7087_v21  ;;  %2514 = vmatpush.bf16.msrb.mxu1 %v7727_v22  ;;  %v7566_v21 = vld [vmem:[%s15486_s5 + $0x690] sm:$0xf]  ;;  %v9687_v15 = vld [vmem:[%s15486_s5 + $0x254] sm:$0xf] }
 0x18f   :  { %v9827_v22 = vld [vmem:[%s15486_s5 + $0x6ac] sm:$0xf0]  ;;  %v7024_v16 = vld [vmem:[%s15486_s5 + $0x270] sm:$0xf0] }
 0x190   :  { %2475 = vmatpush.bf16.msra.mxu2 %v6863_v29  ;;  %2451 = vmatpush.bf16.msra.mxu0 %v7243_v39  ;;  %v9771_v28 = vld [vmem:[%s15486_s5 + $0x4ec] sm:$0xf0]  ;;  %v9663_v29 = vld [vmem:[%s15486_s5 + $0x194] sm:$0xf]  ;;  %v7567_v31 = vor.u32 %v9827_v22, %v7566_v21 }
 0x191   :  { %v7343_v33 = vor.u32 %v9771_v28, %v7342_v27  ;;  %v7534_v35 = vld [vmem:[%s15486_s5 + $0x650] sm:$0xf]  ;;  %v7120_v39 = vld [vmem:[%s15486_s5 + $0x330] sm:$0xf0] }
 0x192   :  { %2491 = vmatpush.bf16.msra.mxu3 %v7055_v37  ;;  %2515 = vmatpush.bf16.msrb.mxu1 %v7695_v38  ;;  %v9819_v36 = vld [vmem:[%s15486_s5 + $0x66c] sm:$0xf0]  ;;  %v9711_v37 = vld [vmem:[%s15486_s5 + $0x314] sm:$0xf]  ;;  %v6931_v38 = vor.u32 %v9663_v29, %v6928_v30 }
 0x193   :  { %2452 = vmatmul.bf16.vlgmr.msra.gmra.mxu0 %v11397_v34  ;;  %v7310_v41 = vld [vmem:[%s15486_s5 + $0x490] sm:$0xf]  ;;  %v7535_v45 = vor.u32 %v9819_v36, %v7534_v35  ;;  %v7123_v47 = vor.u32 %v9711_v37, %v7120_v39  ;;  %v6800_v21 = vld [vmem:[%s15486_s5 + $0xb0] sm:$0xf0]  ;;  %v9740_v35 = vld [vmem:[%s15486_s5 + $0x3f4] sm:$0xf0] }
 0x194   :  { %2476 = vmatpush.bf16.msra.mxu2 %v6831_v43  ;;  %2500 = vmatpush.bf16.msrb.mxu0 %v7471_v44  ;;  %v9763_v42 = vld [vmem:[%s15486_s5 + $0x4ac] sm:$0xf0]  ;;  %v9655_v43 = vld [vmem:[%s15486_s5 + $0x154] sm:$0xf] }
 0x195   :  { %v6896_v44 = vld [vmem:[%s15486_s5 + $0x170] sm:$0xf0]  ;;  %v7502_v46 = vld [vmem:[%s15486_s5 + $0x610] sm:$0xf]  ;;  %v7311_v48 = vor.u32 %v9763_v42, %v7310_v41 }
 0x196   :  { %2492 = vmatpush.bf16.msra.mxu3 %v7023_v51  ;;  %2516 = vmatpush.bf16.msrb.mxu1 %v7663_v53  ;;  %v9811_v49 = vld [vmem:[%s15486_s5 + $0x62c] sm:$0xf0]  ;;  %v7088_v51 = vld [vmem:[%s15486_s5 + $0x2f0] sm:$0xf0]  ;;  %v6899_v52 = vor.u32 %v9655_v43, %v6896_v44 }
 0x197   :  { %v9863_v53 = vld [vmem:[%s15486_s5 + $0x7d4] sm:$0xf]  ;;  %v7278_v55 = vld [vmem:[%s15486_s5 + $0x450] sm:$0xf]  ;;  %v7503_v59 = vor.u32 %v9811_v49, %v7502_v46  ;;  %v7091_v60 = vor.u32 %v9703_v50, %v7088_v51  ;;  %v9732_v49 = vld [vmem:[%s15486_s5 + $0x3b4] sm:$0xf0] }
 0x198   :  { %2477 = vmatpush.bf16.msra.mxu2 %v6799_v57  ;;  %2501 = vmatpush.bf16.msrb.mxu0 %v7439_v58  ;;  %v9755_v56 = vld [vmem:[%s15486_s5 + $0x46c] sm:$0xf0]  ;;  %v9647_v57 = vld [vmem:[%s15486_s5 + $0x114] sm:$0xf]  ;;  %v7731_v61 = vor.u32 %v9863_v53, %v7728_v54  ;;  %v6966_v54 = vld [vmem:[%s15486_s5 + $0x1d8] sm:$0xf] }
 0x199   :  { %v6864_v58 = vld [vmem:[%s15486_s5 + $0x130] sm:$0xf0]  ;;  %v7279_v0 = vor.u32 %v9755_v56, %v7278_v55  ;;  %v7246_v4 = vld [vmem:[%s15486_s5 + $0x410] sm:$0xf]  ;;  %v9676_v55 = vld [vmem:[%s15486_s5 + $0x1f4] sm:$0xf0] }
 0x19a   :  { %2493 = vmatpush.bf16.msra.mxu3 %v6991_v1  ;;  %2517 = vmatpush.bf16.msrb.mxu1 %v7631_v2  ;;  %v6867_v1 = vor.u32 %v9647_v57, %v6864_v58  ;;  %v9855_v2 = vld [vmem:[%s15486_s5 + $0x794] sm:$0xf]  ;;  %v9747_v5 = vld [vmem:[%s15486_s5 + $0x42c] sm:$0xf0]  ;;  %v6967_v63 = vor.u32 %v9676_v55, %v6966_v54  ;;  %v7030_v54 = vld [vmem:[%s15486_s5 + $0x258] sm:$0xf] }
 0x19b   :  { %v7247_v13 = vor.u32 %v9747_v5, %v7246_v4  ;;  %v9791_v22 = vld [vmem:[%s15486_s5 + $0x594] sm:$0xf]  ;;  %v9668_v4 = vld [vmem:[%s15486_s5 + $0x1b4] sm:$0xf0] }
 0x19c   :  { %2478 = vmatpush.bf16.msra.mxu2 %v6767_v6  ;;  %2502 = vmatpush.bf16.msrb.mxu0 %v7407_v7  ;;  %v9639_v6 = vld [vmem:[%s15486_s5 + $0xd4] sm:$0xf]  ;;  %v9692_v55 = vld [vmem:[%s15486_s5 + $0x274] sm:$0xf0] }
 0x19d   :  { %2494 = vmatmul.bf16.vlgmr.msra.gmra.mxu3 %v11292_v23  ;;  %v6832_v7 = vld [vmem:[%s15486_s5 + $0xf0] sm:$0xf0] }
 0x19e   :  { %2542 = vmatpush.bf16.msrb.mxu3 %v7219_v3  ;;  %2518 = vmatpush.bf16.msrb.mxu1 %v7599_v17  ;;  %v7696_v3 = vld [vmem:[%s15486_s5 + $0x7b0] sm:$0xf0]  ;;  %v6835_v14 = vor.u32 %v9639_v6, %v6832_v7 }
 0x19f   :  { %v7699_v12 = vor.u32 %v9855_v2, %v7696_v3  ;;  %v9847_v17 = vld [vmem:[%s15486_s5 + $0x754] sm:$0xf]  ;;  %v6934_v3 = vld [vmem:[%s15486_s5 + $0x198] sm:$0xf] }
 0x1a0   :  { %2479 = vmatpush.bf16.msra.mxu2 %v6735_v19  ;;  %2503 = vmatpush.bf16.msrb.mxu0 %v7375_v20  ;;  %v7664_v19 = vld [vmem:[%s15486_s5 + $0x770] sm:$0xf0] }
 0x1a1   :  { %v9631_v20 = vld [vmem:[%s15486_s5 + $0x94] sm:$0xf]  ;;  %v7667_v27 = vor.u32 %v9847_v17, %v7664_v19  ;;  %v9660_v17 = vld [vmem:[%s15486_s5 + $0x174] sm:$0xf0] }
 0x1a2   :  { %2543 = vmatpush.bf16.msrb.mxu3 %v7187_v18  ;;  %2519 = vmatpush.bf16.msrb.mxu1 %v7567_v31  ;;  %v7475_v18 = vor.u32 %v9799_v8, %v7472_v9  ;;  %v6803_v28 = vor.u32 %v9631_v20, %v6800_v21  ;;  %v6992_v29 = vld [vmem:[%s15486_s5 + $0x230] sm:$0xf0] }
 0x1a3   :  { %2480 = vmatmul.bf16.vlgmr.msra.gmra.mxu2 %v11314_v40  ;;  %v9839_v30 = vld [vmem:[%s15486_s5 + $0x714] sm:$0xf]  ;;  %v6995_v41 = vor.u32 %v9679_v26, %v6992_v29 }
 0x1a4   :  { %2528 = vmatpush.bf16.msrb.mxu2 %v6963_v25  ;;  %2504 = vmatpush.bf16.msrb.mxu0 %v7343_v33  ;;  %v7027_v25 = vor.u32 %v9687_v15, %v7024_v16  ;;  %v7632_v31 = vld [vmem:[%s15486_s5 + $0x730] sm:$0xf0]  ;;  %v7222_v33 = vld [vmem:[%s15486_s5 + $0x3d8] sm:$0xf] }
 0x1a5   :  { %v9623_v36 = vld [vmem:[%s15486_s5 + $0x54] sm:$0xf]  ;;  %v7635_v42 = vor.u32 %v9839_v30, %v7632_v31  ;;  %v7223_v43 = vor.u32 %v9740_v35, %v7222_v33  ;;  %v6902_v16 = vld [vmem:[%s15486_s5 + $0x158] sm:$0xf] }
 0x1a6   :  { %2544 = vmatpush.bf16.msrb.mxu3 %v7155_v32  ;;  %2520 = vmatpush.bf16.msrb.mxu1 %v7535_v45  ;;  %v7443_v32 = vor.u32 %v9791_v22, %v7440_v24  ;;  %v6768_v37 = vld [vmem:[%s15486_s5 + $0x70] sm:$0xf0]  ;;  %v7094_v24 = vld [vmem:[%s15486_s5 + $0x2d8] sm:$0xf]  ;;  %v6903_v26 = vor.u32 %v9660_v17, %v6902_v16 }
 0x1a7   :  { %v7408_v39 = vld [vmem:[%s15486_s5 + $0x570] sm:$0xf0]  ;;  %v6771_v46 = vor.u32 %v9623_v36, %v6768_v37  ;;  %v6870_v31 = vld [vmem:[%s15486_s5 + $0x118] sm:$0xf] }
 0x1a8   :  { %2529 = vmatpush.bf16.msrb.mxu2 %v6931_v38  ;;  %2505 = vmatpush.bf16.msrb.mxu0 %v7311_v48  ;;  %v9783_v38 = vld [vmem:[%s15486_s5 + $0x554] sm:$0xf]  ;;  %v7190_v48 = vld [vmem:[%s15486_s5 + $0x398] sm:$0xf] }
 0x1a9   :  { %v9831_v44 = vld [vmem:[%s15486_s5 + $0x6d4] sm:$0xf]  ;;  %v7191_v57 = vor.u32 %v9732_v49, %v7190_v48  ;;  %v7062_v37 = vld [vmem:[%s15486_s5 + $0x298] sm:$0xf] }
 0x1aa   :  { %2545 = vmatpush.bf16.msrb.mxu3 %v7123_v47  ;;  %2521 = vmatpush.bf16.msrb.mxu1 %v7503_v59  ;;  %v7600_v45 = vld [vmem:[%s15486_s5 + $0x6f0] sm:$0xf0]  ;;  %v7411_v47 = vor.u32 %v9783_v38, %v7408_v39  ;;  %v9700_v38 = vld [vmem:[%s15486_s5 + $0x2b4] sm:$0xf0] }
 0x1ab   :  { %v9615_v50 = vld [vmem:[%s15486_s5 + $0x14] sm:$0xf]  ;;  %v7603_v56 = vor.u32 %v9831_v44, %v7600_v45  ;;  %v7478_v48 = vld [vmem:[%s15486_s5 + $0x5d8] sm:$0xf] }
 0x1ac   :  { %2530 = vmatpush.bf16.msrb.mxu2 %v6899_v52  ;;  %2506 = vmatpush.bf16.msrb.mxu0 %v7279_v0  ;;  %v6736_v51 = vld [vmem:[%s15486_s5 + $0x30] sm:$0xf0]  ;;  %v9724_v0 = vld [vmem:[%s15486_s5 + $0x374] sm:$0xf0] }
 0x1ad   :  { %2522 = vmatmul.bf16.vlgmr.msrb.gmra.mxu1 %v11357_v10  ;;  %v9775_v52 = vld [vmem:[%s15486_s5 + $0x514] sm:$0xf]  ;;  %v6739_v58 = vor.u32 %v9615_v50, %v6736_v51  ;;  %v7159_v6 = vor.u32 %v9724_v0, %v7158_v62  ;;  %v9804_v49 = vld [vmem:[%s15486_s5 + $0x5f4] sm:$0xf0]  ;;  %v7063_v50 = vor.u32 %v9700_v38, %v7062_v37 }
 0x1ae   :  { %2546 = vmatpush.bf16.msrb.mxu3 %v7091_v60  ;;  %2570 = vmatpush.bf16.msra.mxu1 %v7731_v61  ;;  %v7376_v53 = vld [vmem:[%s15486_s5 + $0x530] sm:$0xf0]  ;;  %v9796_v62 = vld [vmem:[%s15486_s5 + $0x5b4] sm:$0xf0] }
 0x1af   :  { %v7379_v59 = vor.u32 %v9775_v52, %v7376_v53  ;;  %v9823_v60 = vld [vmem:[%s15486_s5 + $0x694] sm:$0xf]  ;;  %v6998_v0 = vld [vmem:[%s15486_s5 + $0x218] sm:$0xf] }
 0x1b0   :  { %2531 = vmatpush.bf16.msrb.mxu2 %v6867_v1  ;;  %2507 = vmatpush.bf16.msrb.mxu0 %v7247_v13  ;;  %v7568_v61 = vld [vmem:[%s15486_s5 + $0x6b0] sm:$0xf0]  ;;  %v9716_v13 = vld [vmem:[%s15486_s5 + $0x334] sm:$0xf0] }
 0x1b1   :  { %v9767_v1 = vld [vmem:[%s15486_s5 + $0x4d4] sm:$0xf]  ;;  %v7571_v5 = vor.u32 %v9823_v60, %v7568_v61  ;;  %v9636_v60 = vld [vmem:[%s15486_s5 + $0xb4] sm:$0xf0] }
 0x1b2   :  { %2547 = vmatpush.bf16.msrb.mxu3 %v7059_v11  ;;  %2571 = vmatpush.bf16.msra.mxu1 %v7699_v12  ;;  %v7344_v2 = vld [vmem:[%s15486_s5 + $0x4f0] sm:$0xf0]  ;;  %v7126_v11 = vld [vmem:[%s15486_s5 + $0x318] sm:$0xf]  ;;  %v6935_v12 = vor.u32 %v9668_v4, %v6934_v3 }
 0x1b3   :  { %2508 = vmatmul.bf16.vlgmr.msrb.gmra.mxu0 %v11397_v34  ;;  %v7347_v7 = vor.u32 %v9767_v1, %v7344_v2  ;;  %v9815_v8 = vld [vmem:[%s15486_s5 + $0x654] sm:$0xf]  ;;  %v7127_v20 = vor.u32 %v9716_v13, %v7126_v11  ;;  %v7446_v61 = vld [vmem:[%s15486_s5 + $0x598] sm:$0xf] }
 0x1b4   :  { %2532 = vmatpush.bf16.msrb.mxu2 %v6835_v14  ;;  %2556 = vmatpush.bf16.msra.mxu0 %v7475_v18  ;;  %v7536_v9 = vld [vmem:[%s15486_s5 + $0x670] sm:$0xf0]  ;;  %v9684_v4 = vld [vmem:[%s15486_s5 + $0x234] sm:$0xf0] }
 0x1b5   :  { %v9759_v14 = vld [vmem:[%s15486_s5 + $0x494] sm:$0xf]  ;;  %v7539_v18 = vor.u32 %v9815_v8, %v7536_v9  ;;  %v9736_v8 = vld [vmem:[%s15486_s5 + $0x3dc] sm:$0xf]  ;;  %v6774_v11 = vld [vmem:[%s15486_s5 + $0x58] sm:$0xf] }
 0x1b6   :  { %2548 = vmatpush.bf16.msrb.mxu3 %v7027_v25  ;;  %2572 = vmatpush.bf16.msra.mxu1 %v7667_v27  ;;  %v7312_v15 = vld [vmem:[%s15486_s5 + $0x4b0] sm:$0xf0]  ;;  %v9708_v25 = vld [vmem:[%s15486_s5 + $0x2f4] sm:$0xf0]  ;;  %v7224_v9 = vld [vmem:[%s15486_s5 + $0x3f8] sm:$0xf0] }
 0x1b7   :  { %v9807_v19 = vld [vmem:[%s15486_s5 + $0x614] sm:$0xf]  ;;  %v7315_v21 = vor.u32 %v9759_v14, %v7312_v15  ;;  %v7734_v27 = vld [vmem:[%s15486_s5 + $0x7d8] sm:$0xf]  ;;  %v7095_v35 = vor.u32 %v9708_v25, %v7094_v24  ;;  %v6999_v15 = vor.u32 %v9684_v4, %v6998_v0  ;;  %v7227_v17 = vor.u32 %v9736_v8, %v7224_v9  ;;  %v7192_v24 = vld [vmem:[%s15486_s5 + $0x3b8] sm:$0xf0] }
 0x1b8   :  { %2533 = vmatpush.bf16.msrb.mxu2 %v6803_v28  ;;  %2557 = vmatpush.bf16.msra.mxu0 %v7443_v32  ;;  %v7504_v22 = vld [vmem:[%s15486_s5 + $0x630] sm:$0xf0]  ;;  %v9868_v28 = vld [vmem:[%s15486_s5 + $0x7f4] sm:$0xf0]  ;;  %v9864_v8 = vld [vmem:[%s15486_s5 + $0x7dc] sm:$0xf] }
 0x1b9   :  { %v9751_v29 = vld [vmem:[%s15486_s5 + $0x454] sm:$0xf]  ;;  %v9652_v32 = vld [vmem:[%s15486_s5 + $0x134] sm:$0xf0]  ;;  %v7507_v33 = vor.u32 %v9807_v19, %v7504_v22  ;;  %v7735_v36 = vor.u32 %v9868_v28, %v7734_v27  ;;  %v9728_v22 = vld [vmem:[%s15486_s5 + $0x39c] sm:$0xf] }
 0x1ba   :  { %2549 = vmatpush.bf16.msrb.mxu3 %v6995_v41  ;;  %2573 = vmatpush.bf16.msra.mxu1 %v7635_v42  ;;  %v7280_v30 = vld [vmem:[%s15486_s5 + $0x470] sm:$0xf0]  ;;  %v6871_v41 = vor.u32 %v9652_v32, %v6870_v31  ;;  %v7702_v42 = vld [vmem:[%s15486_s5 + $0x798] sm:$0xf]  ;;  %v6968_v31 = vld [vmem:[%s15486_s5 + $0x1f8] sm:$0xf0] }
 0x1bb   :  { %v7283_v39 = vor.u32 %v9751_v29, %v7280_v30  ;;  %v9743_v44 = vld [vmem:[%s15486_s5 + $0x414] sm:$0xf]  ;;  %v7414_v13 = vld [vmem:[%s15486_s5 + $0x558] sm:$0xf]  ;;  %v9672_v30 = vld [vmem:[%s15486_s5 + $0x1dc] sm:$0xf] }
 0x1bc   :  { %2534 = vmatpush.bf16.msrb.mxu2 %v6771_v46  ;;  %2558 = vmatpush.bf16.msra.mxu0 %v7411_v47  ;;  %v7248_v45 = vld [vmem:[%s15486_s5 + $0x430] sm:$0xf0]  ;;  %v6838_v46 = vld [vmem:[%s15486_s5 + $0xd8] sm:$0xf]  ;;  %v7736_v9 = vld [vmem:[%s15486_s5 + $0x7f8] sm:$0xf0] }
 0x1bd   :  { %2550 = vmatmul.bf16.vlgmr.msrb.gmra.mxu3 %v11292_v23  ;;  %v9644_v47 = vld [vmem:[%s15486_s5 + $0xf4] sm:$0xf0]  ;;  %v7251_v52 = vor.u32 %v9743_v44, %v7248_v45  ;;  %v6971_v44 = vor.u32 %v9672_v30, %v6968_v31  ;;  %v7160_v45 = vld [vmem:[%s15486_s5 + $0x378] sm:$0xf0] }
 0x1be   :  { %2598 = vmatpush.bf16.msra.mxu3 %v7223_v43  ;;  %2574 = vmatpush.bf16.msra.mxu1 %v7603_v56  ;;  %v9860_v43 = vld [vmem:[%s15486_s5 + $0x7b4] sm:$0xf0]  ;;  %v6839_v53 = vor.u32 %v9644_v47, %v6838_v46  ;;  %v9640_v31 = vld [vmem:[%s15486_s5 + $0xdc] sm:$0xf] }
 0x1bf   :  { %v7703_v51 = vor.u32 %v9860_v43, %v7702_v42  ;;  %v7670_v56 = vld [vmem:[%s15486_s5 + $0x758] sm:$0xf] }
 0x1c0   :  { %2535 = vmatpush.bf16.msrb.mxu2 %v6739_v58  ;;  %2559 = vmatpush.bf16.msra.mxu0 %v7379_v59  ;;  %v9852_v58 = vld [vmem:[%s15486_s5 + $0x774] sm:$0xf0] }
 0x1c1   :  { %v6806_v59 = vld [vmem:[%s15486_s5 + $0x98] sm:$0xf]  ;;  %v7671_v2 = vor.u32 %v9852_v58, %v7670_v56 }
 0x1c2   :  { %2599 = vmatpush.bf16.msra.mxu3 %v7191_v57  ;;  %2575 = vmatpush.bf16.msra.mxu1 %v7571_v5  ;;  %v7479_v57 = vor.u32 %v9804_v49, %v7478_v48  ;;  %v6807_v3 = vor.u32 %v9636_v60, %v6806_v59  ;;  %v7638_v5 = vld [vmem:[%s15486_s5 + $0x718] sm:$0xf]  ;;  %v9664_v48 = vld [vmem:[%s15486_s5 + $0x19c] sm:$0xf] }
 0x1c3   :  { %2536 = vmatmul.bf16.vlgmr.msrb.gmra.mxu2 %v11314_v40  ;;  %v9788_v14 = vld [vmem:[%s15486_s5 + $0x574] sm:$0xf0]  ;;  %v6936_v49 = vld [vmem:[%s15486_s5 + $0x1b8] sm:$0xf0] }
 0x1c4   :  { %2584 = vmatpush.bf16.msra.mxu2 %v6967_v63  ;;  %2560 = vmatpush.bf16.msra.mxu0 %v7347_v7  ;;  %v7031_v63 = vor.u32 %v9692_v55, %v7030_v54  ;;  %v7447_v7 = vor.u32 %v9796_v62, %v7446_v61  ;;  %v9836_v19 = vld [vmem:[%s15486_s5 + $0x6f4] sm:$0xf0]  ;;  %v9712_v55 = vld [vmem:[%s15486_s5 + $0x31c] sm:$0xf]  ;;  %v6939_v56 = vor.u32 %v9664_v48, %v6936_v49 }
 0x1c5   :  { %v6742_v25 = vld [vmem:[%s15486_s5 + $0x18] sm:$0xf]  ;;  %v9656_v60 = vld [vmem:[%s15486_s5 + $0x15c] sm:$0xf] }
 0x1c6   :  { %2600 = vmatpush.bf16.msra.mxu3 %v7159_v6  ;;  %2576 = vmatpush.bf16.msra.mxu1 %v7539_v18  ;;  %v12198_v1 = vpop.f32.mrf.mxu2  ;;  %v9844_v6 = vld [vmem:[%s15486_s5 + $0x734] sm:$0xf0]  ;;  %v6904_v61 = vld [vmem:[%s15486_s5 + $0x178] sm:$0xf0] }
 0x1c7   :  { %v7639_v16 = vor.u32 %v9844_v6, %v7638_v5  ;;  %v7606_v18 = vld [vmem:[%s15486_s5 + $0x6d8] sm:$0xf]  ;;  %v9704_v5 = vld [vmem:[%s15486_s5 + $0x2dc] sm:$0xf] }
 0x1c8   :  { %2585 = vmatpush.bf16.msra.mxu2 %v6935_v12  ;;  %2561 = vmatpush.bf16.msra.mxu0 %v7315_v21  ;;  %v9628_v12 = vld [vmem:[%s15486_s5 + $0x74] sm:$0xf0]  ;;  %v7415_v21 = vor.u32 %v9788_v14, %v7414_v13  ;;  %v7607_v32 = vor.u32 %v9836_v19, %v7606_v18  ;;  %v7096_v6 = vld [vmem:[%s15486_s5 + $0x2f8] sm:$0xf0] }
 0x1c9   :  { %v9620_v27 = vld [vmem:[%s15486_s5 + $0x34] sm:$0xf0]  ;;  %v9648_v14 = vld [vmem:[%s15486_s5 + $0x11c] sm:$0xf]  ;;  %v7099_v19 = vor.u32 %v9704_v5, %v7096_v6 }
 0x1ca   :  { %2601 = vmatpush.bf16.msra.mxu3 %v7127_v20  ;;  %2577 = vmatpush.bf16.msra.mxu1 %v7507_v33  ;;  %v6775_v20 = vor.u32 %v9628_v12, %v6774_v11  ;;  %v7382_v28 = vld [vmem:[%s15486_s5 + $0x518] sm:$0xf]  ;;  %v7195_v33 = vor.u32 %v9728_v22, %v7192_v24  ;;  %v7064_v22 = vld [vmem:[%s15486_s5 + $0x2b8] sm:$0xf0] }
 0x1cb   :  { %v9780_v29 = vld [vmem:[%s15486_s5 + $0x534] sm:$0xf0]  ;;  %v7672_v49 = vld [vmem:[%s15486_s5 + $0x778] sm:$0xf0] }
 0x1cc   :  { %2586 = vmatpush.bf16.msra.mxu2 %v6903_v26  ;;  %2562 = vmatpush.bf16.msra.mxu0 %v7283_v39  ;;  %v12243_v26 = vpop.f32.mrf.mxu3  ;;  %v7383_v37 = vor.u32 %v9780_v29, %v7382_v28  ;;  %v7574_v38 = vld [vmem:[%s15486_s5 + $0x698] sm:$0xf]  ;;  %v7704_v28 = vld [vmem:[%s15486_s5 + $0x7b8] sm:$0xf0] }
 0x1cd   :  { %2578 = vmatmul.bf16.vlgmr.msra.gmra.mxu1 %v11357_v10  ;;  %v9828_v39 = vld [vmem:[%s15486_s5 + $0x6b4] sm:$0xf0]  ;;  %v9624_v5 = vld [vmem:[%s15486_s5 + $0x5c] sm:$0xf] }
 0x1ce   :  { %2602 = vmatpush.bf16.msra.mxu3 %v7095_v35  ;;  %2626 = vmatpush.bf16.msrb.mxu1 %v7735_v36  ;;  %v12260_v35 = vpop.f32.mrf.mxu1  ;;  %v6743_v36 = vor.u32 %v9620_v27, %v6742_v25  ;;  %v12271_v42 = vpop.f32.mrf.mxu2  ;;  %v7350_v46 = vld [vmem:[%s15486_s5 + $0x4d8] sm:$0xf]  ;;  %v9856_v27 = vld [vmem:[%s15486_s5 + $0x79c] sm:$0xf] }
 0x1cf   :  { %v9772_v47 = vld [vmem:[%s15486_s5 + $0x4f4] sm:$0xf0]  ;;  %v6776_v6 = vld [vmem:[%s15486_s5 + $0x78] sm:$0xf0] }
 0x1d0   :  { %2587 = vmatpush.bf16.msra.mxu2 %v6871_v41  ;;  %2563 = vmatpush.bf16.msra.mxu0 %v7251_v52  ;;  %v9720_v41 = vld [vmem:[%s15486_s5 + $0x35c] sm:$0xf]  ;;  %v12273_v43 = vpop.f32.mrf.mxu0  ;;  %v7351_v52 = vor.u32 %v9772_v47, %v7350_v46  ;;  %v9820_v54 = vld [vmem:[%s15486_s5 + $0x674] sm:$0xf0] }
 0x1d1   :  { %v7318_v58 = vld [vmem:[%s15486_s5 + $0x498] sm:$0xf]  ;;  %v7032_v46 = vld [vmem:[%s15486_s5 + $0x278] sm:$0xf0] }
 0x1d2   :  { %2603 = vmatpush.bf16.msra.mxu3 %v7063_v50  ;;  %2627 = vmatpush.bf16.msrb.mxu1 %v7703_v51  ;;  %v7575_v50 = vor.u32 %v9828_v39, %v7574_v38  ;;  %v7163_v51 = vor.u32 %v9720_v41, %v7160_v45  ;;  %v9764_v59 = vld [vmem:[%s15486_s5 + $0x4b4] sm:$0xf0]  ;;  %v7707_v38 = vor.u32 %v9856_v27, %v7704_v28  ;;  %v9688_v45 = vld [vmem:[%s15486_s5 + $0x25c] sm:$0xf] }
 0x1d3   :  { %2564 = vmatmul.bf16.vlgmr.msra.gmra.mxu0 %v11397_v34  ;;  %v7510_v0 = vld [vmem:[%s15486_s5 + $0x618] sm:$0xf]  ;;  %v9848_v47 = vld [vmem:[%s15486_s5 + $0x75c] sm:$0xf] }
 0x1d4   :  { %2588 = vmatpush.bf16.msra.mxu2 %v6839_v53  ;;  %2612 = vmatpush.bf16.msrb.mxu0 %v7479_v57  ;;  %v7542_v53 = vld [vmem:[%s15486_s5 + $0x658] sm:$0xf]  ;;  %v7128_v57 = vld [vmem:[%s15486_s5 + $0x338] sm:$0xf0]  ;;  %v12315_v62 = vpop.f32.mrf.mxu3 }
 0x1d5   :  { %v9812_v4 = vld [vmem:[%s15486_s5 + $0x634] sm:$0xf0]  ;;  %v9776_v27 = vld [vmem:[%s15486_s5 + $0x51c] sm:$0xf] }
 0x1d6   :  { %2604 = vmatpush.bf16.msra.mxu3 %v7031_v63  ;;  %2628 = vmatpush.bf16.msrb.mxu1 %v7671_v2  ;;  %v7543_v63 = vor.u32 %v9820_v54, %v7542_v53  ;;  %v7131_v2 = vor.u32 %v9712_v55, %v7128_v57  ;;  %v7286_v11 = vld [vmem:[%s15486_s5 + $0x458] sm:$0xf]  ;;  %v12339_v12 = vpop.f32.mrf.mxu1  ;;  %v7511_v18 = vor.u32 %v9812_v4, %v7510_v0  ;;  %v7448_v53 = vld [vmem:[%s15486_s5 + $0x5b8] sm:$0xf0]  ;;  %v9977_v4 = vld [vmem:[%s15488_s7 + $0x360] sm:$0xf0] }
 0x1d7   :  { %v9756_v13 = vld [vmem:[%s15486_s5 + $0x474] sm:$0xf0]  ;;  %v7035_v55 = vor.u32 %v9688_v45, %v7032_v46  ;;  %v7640_v0 = vld [vmem:[%s15486_s5 + $0x738] sm:$0xf0] }
 0x1d8   :  { %2589 = vmatpush.bf16.msra.mxu2 %v6807_v3  ;;  %2613 = vmatpush.bf16.msrb.mxu0 %v7447_v7  ;;  %v7319_v3 = vor.u32 %v9764_v59, %v7318_v58  ;;  %v6907_v7 = vor.u32 %v9656_v60, %v6904_v61  ;;  %v7287_v24 = vor.u32 %v9756_v13, %v7286_v11  ;;  %v7254_v29 = vld [vmem:[%s15486_s5 + $0x418] sm:$0xf]  ;;  %v7000_v61 = vld [vmem:[%s15486_s5 + $0x238] sm:$0xf0] }
 0x1d9   :  { %v9748_v30 = vld [vmem:[%s15486_s5 + $0x434] sm:$0xf0]  ;;  %v7675_v59 = vor.u32 %v9848_v47, %v7672_v49  ;;  %v7384_v28 = vld [vmem:[%s15486_s5 + $0x538] sm:$0xf0] }
 0x1da   :  { %2605 = vmatpush.bf16.msra.mxu3 %v6999_v15  ;;  %2629 = vmatpush.bf16.msrb.mxu1 %v7639_v16  ;;  %v6872_v15 = vld [vmem:[%s15486_s5 + $0x138] sm:$0xf0]  ;;  %v12350_v16 = vpop.f32.mrf.mxu2  ;;  %v7255_v41 = vor.u32 %v9748_v30, %v7254_v29  ;;  %v7938_v29 = vld [vmem:[%s15488_s7 + $0x188] sm:$0xf]  ;;  %v9921_v30 = vld [vmem:[%s15488_s7 + $0x1a0] sm:$0xf0] }
 0x1db   :  { %v6875_v25 = vor.u32 %v9648_v14, %v6872_v15  ;;  %v9832_v14 = vld [vmem:[%s15486_s5 + $0x6dc] sm:$0xf]  ;;  %v7939_v47 = vor.u32 %v9921_v30, %v7938_v29  ;;  %v10089_v29 = vld [vmem:[%s15488_s7 + $0x6e0] sm:$0xf0] }
 0x1dc   :  { %2590 = vmatpush.bf16.msra.mxu2 %v6775_v20  ;;  %2614 = vmatpush.bf16.msrb.mxu0 %v7415_v21  ;;  %v7739_v20 = vor.u32 %v9864_v8, %v7736_v9  ;;  %v9696_v21 = vld [vmem:[%s15486_s5 + $0x29c] sm:$0xf]  ;;  %v12384_v39 = vpop.f32.mrf.mxu3 }
 0x1dd   :  { %2606 = vmatmul.bf16.vlgmr.msra.gmra.mxu3 %v11292_v23  ;;  %v7416_v8 = vld [vmem:[%s15486_s5 + $0x578] sm:$0xf0] }
 0x1de   :  { %2654 = vmatpush.bf16.msrb.mxu3 %v7227_v17  ;;  %2630 = vmatpush.bf16.msrb.mxu1 %v7607_v32  ;;  %v12352_v17 = vpop.f32.mrf.mxu0  ;;  %v6840_v32 = vld [vmem:[%s15486_s5 + $0xf8] sm:$0xf0]  ;;  %v12411_v54 = vpop.f32.mrf.mxu1 }
 0x1df   :  { %v7608_v15 = vld [vmem:[%s15486_s5 + $0x6f8] sm:$0xf0] }
 0x1e0   :  { %2591 = vmatpush.bf16.msra.mxu2 %v6743_v36  ;;  %2615 = vmatpush.bf16.msrb.mxu0 %v7383_v37  ;;  %v7480_v36 = vld [vmem:[%s15486_s5 + $0x5f8] sm:$0xf0]  ;;  %v7067_v37 = vor.u32 %v9696_v21, %v7064_v22  ;;  %v9970_v21 = vld [vmem:[%s15488_s7 + $0x328] sm:$0xf0] }
 0x1e1   :  { %v9616_v22 = vld [vmem:[%s15486_s5 + $0x1c] sm:$0xf] }
 0x1e2   :  { %2655 = vmatpush.bf16.msrb.mxu3 %v7195_v33  ;;  %2631 = vmatpush.bf16.msrb.mxu1 %v7575_v50  ;;  %v9800_v33 = vld [vmem:[%s15486_s5 + $0x5dc] sm:$0xf]  ;;  %v12416_v57 = vpop.f32.mrf.mxu2 }
 0x1e3   :  { %2592 = vmatmul.bf16.vlgmr.msra.gmra.mxu2 %v11314_v40  ;;  %v7483_v48 = vor.u32 %v9800_v33, %v7480_v36  ;;  %v9632_v50 = vld [vmem:[%s15486_s5 + $0x9c] sm:$0xf] }
 0x1e4   :  { %2640 = vmatpush.bf16.msrb.mxu2 %v6971_v44  ;;  %2616 = vmatpush.bf16.msrb.mxu0 %v7351_v52  ;;  %v6843_v44 = vor.u32 %v9640_v31, %v6840_v32  ;;  %v9792_v52 = vld [vmem:[%s15486_s5 + $0x59c] sm:$0xf]  ;;  %v7611_v31 = vor.u32 %v9832_v14, %v7608_v15  ;;  %v8050_v15 = vld [vmem:[%s15488_s7 + $0x268] sm:$0xf] }
 0x1e5   :  { %v9768_v49 = vld [vmem:[%s15486_s5 + $0x4dc] sm:$0xf] }
 0x1e6   :  { %2656 = vmatpush.bf16.msrb.mxu3 %v7163_v51  ;;  %2632 = vmatpush.bf16.msrb.mxu1 %v7543_v63  ;;  %v6808_v51 = vld [vmem:[%s15486_s5 + $0xb8] sm:$0xf0]  ;;  %v12418_v58 = vpop.f32.mrf.mxu0  ;;  %v12480_v33 = vpop.f32.mrf.mxu1 }
 0x1e7   :  { %v6811_v60 = vor.u32 %v9632_v50, %v6808_v51  ;;  %v9840_v63 = vld [vmem:[%s15486_s5 + $0x71c] sm:$0xf]  ;;  %v7910_v51 = vld [vmem:[%s15488_s7 + $0x150] sm:$0xf] }
 0x1e8   :  { %2641 = vmatpush.bf16.msrb.mxu2 %v6939_v56  ;;  %2617 = vmatpush.bf16.msrb.mxu0 %v7319_v3  ;;  %v9680_v56 = vld [vmem:[%s15486_s5 + $0x21c] sm:$0xf]  ;;  %v8162_v3 = vld [vmem:[%s15488_s7 + $0x348] sm:$0xf]  ;;  %v7643_v11 = vor.u32 %v9840_v63, %v7640_v0 }
 0x1e9   :  { %v7003_v9 = vor.u32 %v9680_v56, %v7000_v61  ;;  %v8163_v13 = vor.u32 %v9977_v4, %v8162_v3  ;;  %v7352_v50 = vld [vmem:[%s15486_s5 + $0x4f8] sm:$0xf0]  ;;  %v12532_v3 = vld [vmem:[%s15489_s6] sm:$0xff]  ;;  %v7882_v4 = vld [vmem:[%s15488_s7 + $0x118] sm:$0xf] }
 0x1ea   :  { %2657 = vmatpush.bf16.msrb.mxu3 %v7131_v2  ;;  %2633 = vmatpush.bf16.msrb.mxu1 %v7511_v18  ;;  %v7451_v2 = vor.u32 %v9792_v52, %v7448_v53  ;;  %v6779_v18 = vor.u32 %v9624_v5, %v6776_v6  ;;  %v12491_v45 = vpop.f32.mrf.mxu2  ;;  %v9816_v56 = vld [vmem:[%s15486_s5 + $0x65c] sm:$0xf]  ;;  %v9907_v5 = vld [vmem:[%s15488_s7 + $0x130] sm:$0xf0]  ;;  %v953_v6 = vperm.slane %v12532_v3, 1 }
 0x1eb   :  { %v9956_v63 = vld [vmem:[%s15488_s7 + $0x2b8] sm:$0xf0] }
 0x1ec   :  { %2642 = vmatpush.bf16.msrb.mxu2 %v6907_v7  ;;  %2618 = vmatpush.bf16.msrb.mxu0 %v7287_v24  ;;  %v9784_v7 = vld [vmem:[%s15486_s5 + $0x55c] sm:$0xf]  ;;  %v12463_v24 = vpop.f32.mrf.mxu3  ;;  %v2314_v30 = vadd.f32 %v12350_v16, %v953_v6  ;;  %v9942_v16 = vld [vmem:[%s15488_s7 + $0x248] sm:$0xf0] }
 0x1ed   :  { %2634 = vmatmul.bf16.vlgmr.msrb.gmra.mxu1 %v11357_v10  ;;  %v9760_v0 = vld [vmem:[%s15486_s5 + $0x49c] sm:$0xf] }
 0x1ee   :  { %2658 = vmatpush.bf16.msrb.mxu3 %v7099_v19  ;;  %2682 = vmatpush.bf16.msra.mxu1 %v7739_v20  ;;  %v7419_v19 = vor.u32 %v9784_v7, %v7416_v8  ;;  %v8134_v20 = vld [vmem:[%s15488_s7 + $0x310] sm:$0xf]  ;;  %v12493_v46 = vpop.f32.mrf.mxu0  ;;  %v7512_v14 = vld [vmem:[%s15486_s5 + $0x638] sm:$0xf0] }
 0x1ef   :  { %v8135_v32 = vor.u32 %v9970_v21, %v8134_v20  ;;  %v7288_v20 = vld [vmem:[%s15486_s5 + $0x478] sm:$0xf0]  ;;  %v7854_v21 = vld [vmem:[%s15488_s7 + $0xe0] sm:$0xf] }
 0x1f0   :  { %2643 = vmatpush.bf16.msrb.mxu2 %v6875_v25  ;;  %2619 = vmatpush.bf16.msrb.mxu0 %v7255_v41  ;;  %v6744_v25 = vld [vmem:[%s15486_s5 + $0x38] sm:$0xf0] }
 0x1f1   :  { %v6747_v36 = vor.u32 %v9616_v22, %v6744_v25  ;;  %v7576_v41 = vld [vmem:[%s15486_s5 + $0x6b8] sm:$0xf0]  ;;  %v2316_v22 = vadd.f32 %v12416_v57, %v953_v6  ;;  %v12566_v25 = vpop.f32.mrf.mxu1 }
 0x1f2   :  { %2659 = vmatpush.bf16.msrb.mxu3 %v7067_v37  ;;  %2683 = vmatpush.bf16.msra.mxu1 %v7707_v38  ;;  %v7387_v37 = vor.u32 %v9776_v27, %v7384_v28  ;;  %v9824_v38 = vld [vmem:[%s15486_s5 + $0x69c] sm:$0xf]  ;;  %v8610_v28 = vld [vmem:[%s15488_s7 + $0x6c8] sm:$0xf] }
 0x1f3   :  { %2620 = vmatmul.bf16.vlgmr.msrb.gmra.mxu0 %v11397_v34  ;;  %v7579_v52 = vor.u32 %v9824_v38, %v7576_v41  ;;  %v9900_v27 = vld [vmem:[%s15488_s7 + $0xf8] sm:$0xf0]  ;;  %v8022_v41 = vld [vmem:[%s15488_s7 + $0x230] sm:$0xf] }
 0x1f4   :  { %2644 = vmatpush.bf16.msrb.mxu2 %v6843_v44  ;;  %2668 = vmatpush.bf16.msra.mxu0 %v7483_v48  ;;  %v8106_v44 = vld [vmem:[%s15488_s7 + $0x2d8] sm:$0xf]  ;;  %v9963_v48 = vld [vmem:[%s15488_s7 + $0x2f0] sm:$0xf0]  ;;  %v12541_v7 = vpop.f32.mrf.mxu3 }
 0x1f5   :  { %v8107_v53 = vor.u32 %v9963_v48, %v8106_v44  ;;  %v7855_v44 = vor.u32 %v9900_v27, %v7854_v21  ;;  %v9744_v48 = vld [vmem:[%s15486_s5 + $0x41c] sm:$0xf] }
 0x1f6   :  { %2660 = vmatpush.bf16.msrb.mxu3 %v7035_v55  ;;  %2684 = vmatpush.bf16.msra.mxu1 %v7675_v59  ;;  %v7355_v55 = vor.u32 %v9768_v49, %v7352_v50  ;;  %v7544_v59 = vld [vmem:[%s15486_s5 + $0x678] sm:$0xf0]  ;;  %v7826_v50 = vld [vmem:[%s15488_s7 + $0xa8] sm:$0xf] }
 0x1f7   :  { %v7547_v8 = vor.u32 %v9816_v56, %v7544_v59  ;;  %v7256_v49 = vld [vmem:[%s15486_s5 + $0x438] sm:$0xf0]  ;;  %v2328_v56 = vadd.f32 %v12384_v39, %v2314_v30 }
 0x1f8   :  { %2645 = vmatpush.bf16.msrb.mxu2 %v6811_v60  ;;  %2669 = vmatpush.bf16.msra.mxu0 %v7451_v2  ;;  %v8078_v60 = vld [vmem:[%s15488_s7 + $0x2a0] sm:$0xf]  ;;  %v7320_v2 = vld [vmem:[%s15486_s5 + $0x4b8] sm:$0xf0] }
 0x1fa   :  { %2661 = vmatpush.bf16.msrb.mxu3 %v7003_v9  ;;  %2685 = vmatpush.bf16.msra.mxu1 %v7643_v11  ;;  %v9808_v9 = vld [vmem:[%s15486_s5 + $0x61c] sm:$0xf]  ;;  %v8079_v11 = vor.u32 %v9956_v63, %v8078_v60  ;;  %v8023_v60 = vor.u32 %v9942_v16, %v8022_v41  ;;  %v2342_v63 = vadd.f32 %v12418_v58, %v2328_v56  ;;  %v10201_v41 = vld [vmem:[%s15488_s7 + $0xa60] sm:$0xf0]  ;;  %v8498_v56 = vld [vmem:[%s15488_s7 + $0x5e8] sm:$0xf] }
 0x1fb   :  { %v7515_v57 = vor.u32 %v9808_v9, %v7512_v14  ;;  %v9886_v9 = vld [vmem:[%s15488_s7 + $0x88] sm:$0xf0] }
 0x1fc   :  { %2646 = vmatpush.bf16.msrb.mxu2 %v6779_v18  ;;  %2670 = vmatpush.bf16.msra.mxu0 %v7419_v19  ;;  %v7883_v18 = vor.u32 %v9907_v5, %v7882_v4  ;;  %v9752_v19 = vld [vmem:[%s15486_s5 + $0x45c] sm:$0xf]  ;;  %v7994_v4 = vld [vmem:[%s15488_s7 + $0x1f8] sm:$0xf]  ;;  %v7798_v5 = vld [vmem:[%s15488_s7 + $0x70] sm:$0xf]  ;;  %v2356_v21 = vadd.f32 %v12411_v54, %v2342_v63 }
 0x1fd   :  { %2662 = vmatmul.bf16.vlgmr.msrb.gmra.mxu3 %v11292_v23  ;;  %v9914_v23 = vld [vmem:[%s15488_s7 + $0x168] sm:$0xf0]  ;;  %v7291_v38 = vor.u32 %v9752_v19, %v7288_v20  ;;  %v7966_v20 = vld [vmem:[%s15488_s7 + $0x1c0] sm:$0xf] }
 0x1fe   :  { %5566 = vmatpush.bf16.msra.mxu3 %v8163_v13  ;;  %2686 = vmatpush.bf16.msra.mxu1 %v7611_v31  ;;  %v7911_v61 = vor.u32 %v9914_v23, %v7910_v51  ;;  %v7323_v13 = vor.u32 %v9760_v0, %v7320_v2  ;;  %v12578_v31 = vpop.f32.mrf.mxu2  ;;  %v2330_v23 = vadd.f32 %v12463_v24, %v2316_v22  ;;  %v10082_v24 = vld [vmem:[%s15488_s7 + $0x6a8] sm:$0xf0]  ;;  %v12618_v0 = vpop.f32.mrf.mxu3 }
 0x200   :  { %2647 = vmatpush.bf16.msrb.mxu2 %v6747_v36  ;;  %2671 = vmatpush.bf16.msra.mxu0 %v7387_v37  ;;  %v952_v36 = vperm.slane %v12532_v3, 0  ;;  %v2344_v59 = vadd.f32 %v12493_v46, %v2330_v23  ;;  %v9935_v46 = vld [vmem:[%s15488_s7 + $0x210] sm:$0xf0] }
 0x201   :  { %v7995_v19 = vor.u32 %v9935_v46, %v7994_v4  ;;  %v10194_v4 = vld [vmem:[%s15488_s7 + $0xa28] sm:$0xf0] }
 0x202   :  { %5567 = vmatpush.bf16.msra.mxu3 %v8135_v32  ;;  %2687 = vmatpush.bf16.msra.mxu1 %v7579_v52  ;;  %v12580_v32 = vpop.f32.mrf.mxu0  ;;  %v2260_v51 = vadd.f32 %v12271_v42, %v952_v36  ;;  %v9893_v52 = vld [vmem:[%s15488_s7 + $0xc0] sm:$0xf0]  ;;  %v8582_v42 = vld [vmem:[%s15488_s7 + $0x690] sm:$0xf]  ;;  %v2258_v58 = vadd.f32 %v12198_v1, %v952_v36  ;;  %v8554_v1 = vld [vmem:[%s15488_s7 + $0x658] sm:$0xf] }
 0x203   :  { %2648 = vmatmul.bf16.vlgmr.msrb.gmra.mxu2 %v11314_v40  ;;  %v9949_v40 = vld [vmem:[%s15488_s7 + $0x280] sm:$0xf0]  ;;  %v7827_v39 = vor.u32 %v9893_v52, %v7826_v50  ;;  %v10019_v36 = vld [vmem:[%s15488_s7 + $0x4b0] sm:$0xf0]  ;;  %v955_v50 = vperm.slane %v12532_v3, 3 }
 0x204   :  { %5552 = vmatpush.bf16.msra.mxu2 %v7939_v47  ;;  %2672 = vmatpush.bf16.msra.mxu0 %v7355_v55  ;;  %v8051_v37 = vor.u32 %v9949_v40, %v8050_v15  ;;  %v8611_v47 = vor.u32 %v10089_v29, %v8610_v28  ;;  %v10033_v55 = vld [vmem:[%s15488_s7 + $0x520] sm:$0xf0]  ;;  %v2274_v6 = vadd.f32 %v12315_v62, %v2260_v51  ;;  %v954_v15 = vperm.slane %v12532_v3, 2  ;;  %v7770_v28 = vld [vmem:[%s15488_s7 + $0x38] sm:$0xf] }
 0x205   :  { %v2358_v40 = vadd.f32 %v12480_v33, %v2344_v59  ;;  %v9928_v33 = vld [vmem:[%s15488_s7 + $0x1d8] sm:$0xf0]  ;;  %v9879_v29 = vld [vmem:[%s15488_s7 + $0x50] sm:$0xf0]  ;;  %v2272_v54 = vadd.f32 %v12243_v26, %v2258_v58  ;;  %v7742_v52 = vld [vmem:[%s15488_s7] sm:$0xf] }
 0x206   :  { %5568 = vmatpush.bf16.msra.mxu3 %v8107_v53  ;;  %2688 = vmatpush.bf16.msra.mxu1 %v7547_v8  ;;  %v8386_v53 = vld [vmem:[%s15488_s7 + $0x508] sm:$0xf]  ;;  %v8583_v8 = vor.u32 %v10082_v24, %v8582_v42  ;;  %v2425_v14 = vpop.f32.mrf.mxu2  ;;  %v2288_v62 = vadd.f32 %v12352_v17, %v2274_v6  ;;  %v7799_v17 = vor.u32 %v9886_v9, %v7798_v5  ;;  %v10068_v26 = vld [vmem:[%s15488_s7 + $0x638] sm:$0xf0]  ;;  %v10061_v24 = vld [vmem:[%s15488_s7 + $0x600] sm:$0xf0] }
 0x207   :  { %v8387_v2 = vor.u32 %v10033_v55, %v8386_v53  ;;  %v2286_v16 = vadd.f32 %v12273_v43, %v2272_v54  ;;  %v7771_v51 = vor.u32 %v9879_v29, %v7770_v28  ;;  %v9872_v43 = vld [vmem:[%s15488_s7 + $0x18] sm:$0xf0]  ;;  %v8302_v53 = vld [vmem:[%s15488_s7 + $0x460] sm:$0xf]  ;;  %v8834_v59 = vld [vmem:[%s15488_s7 + $0x888] sm:$0xf]  ;;  %v2426_v5 = vadd.f32 %v2425_v14, %v955_v50 }
 0x208   :  { %5553 = vmatpush.bf16.msra.mxu2 %v7911_v61  ;;  %2673 = vmatpush.bf16.msra.mxu0 %v7323_v13  ;;  %v7259_v61 = vor.u32 %v9744_v48, %v7256_v49  ;;  %v10026_v13 = vld [vmem:[%s15488_s7 + $0x4e8] sm:$0xf0]  ;;  %v7967_v48 = vor.u32 %v9928_v33, %v7966_v20  ;;  %v2439_v49 = vpop.f32.mrf.mxu3  ;;  %v10012_v55 = vld [vmem:[%s15488_s7 + $0x478] sm:$0xf0]  ;;  %v8499_v9 = vor.u32 %v10061_v24, %v8498_v56  ;;  %v8470_v14 = vld [vmem:[%s15488_s7 + $0x5b0] sm:$0xf] }
 0x209   :  { %v10187_v33 = vld [vmem:[%s15488_s7 + $0x9f0] sm:$0xf0]  ;;  %v2440_v28 = vadd.f32 %v2439_v49, %v2426_v5  ;;  %v8246_v54 = vld [vmem:[%s15488_s7 + $0x3f0] sm:$0xf]  ;;  %v10180_v49 = vld [vmem:[%s15488_s7 + $0x9b8] sm:$0xf0] }
 0x20a   :  { %5569 = vmatpush.bf16.msra.mxu3 %v8079_v11  ;;  %2689 = vmatpush.bf16.msra.mxu1 %v7515_v57  ;;  %v8358_v11 = vld [vmem:[%s15488_s7 + $0x4d0] sm:$0xf]  ;;  %v12656_v22 = vpop.f32.mrf.mxu0  ;;  %v8330_v57 = vld [vmem:[%s15488_s7 + $0x498] sm:$0xf]  ;;  %v8750_v24 = vld [vmem:[%s15488_s7 + $0x7e0] sm:$0xf] }
 0x20b   :  { %v8359_v27 = vor.u32 %v10026_v13, %v8358_v11  ;;  %v8331_v23 = vor.u32 %v10019_v36, %v8330_v57  ;;  %v8274_v13 = vld [vmem:[%s15488_s7 + $0x428] sm:$0xf]  ;;  %v9998_v57 = vld [vmem:[%s15488_s7 + $0x408] sm:$0xf0]  ;;  %v8442_v36 = vld [vmem:[%s15488_s7 + $0x578] sm:$0xf] }
 0x20c   :  { %5554 = vmatpush.bf16.msra.mxu2 %v7883_v18  ;;  %2674 = vmatpush.bf16.msra.mxu0 %v7291_v38  ;;  %v12650_v18 = vpop.f32.mrf.mxu1  ;;  %v9058_v38 = vld [vmem:[%s15488_s7 + $0xa48] sm:$0xf]  ;;  %v8190_v5 = vld [vmem:[%s15488_s7 + $0x380] sm:$0xf] }
 0x20d   :  { %2690 = vmatmul.bf16.vlgmr.msra.gmra.mxu1 %v11357_v10  ;;  %v10075_v10 = vld [vmem:[%s15488_s7 + $0x670] sm:$0xf0]  ;;  %v9059_v42 = vor.u32 %v10201_v41, %v9058_v38 }
 0x20e   :  { %5570 = vmatpush.bf16.msra.mxu3 %v8051_v37  ;;  %5594 = vmatpush.bf16.msrb.mxu1 %v8611_v47  ;;  %v8555_v30 = vor.u32 %v10075_v10, %v8554_v1  ;;  %v8526_v37 = vld [vmem:[%s15488_s7 + $0x620] sm:$0xf]  ;;  %v2705_v47 = vmax.f32 %v2358_v40, 0.0  ;;  %v2427_v58 = vpop.f32.mrf.mxu2  ;;  %v10005_v1 = vld [vmem:[%s15488_s7 + $0x440] sm:$0xf0]  ;;  %v2370_v10 = vadd.f32 %v12491_v45, %v954_v15  ;;  %v2372_v45 = vadd.f32 %v12578_v31, %v954_v15 }
 0x20f   :  { %v8806_v40 = vld [vmem:[%s15488_s7 + $0x850] sm:$0xf]  ;;  %v8275_v29 = vor.u32 %v10005_v1, %v8274_v13  ;;  %v10117_v13 = vld [vmem:[%s15488_s7 + $0x7c0] sm:$0xf0] }
 0x210   :  { %5555 = vmatpush.bf16.msra.mxu2 %v7855_v44  ;;  %2675 = vmatpush.bf16.msra.mxu0 %v7259_v61  ;;  %v2302_v44 = vadd.f32 %v12339_v12, %v2288_v62  ;;  %v8527_v12 = vor.u32 %v10068_v26, %v8526_v37  ;;  %v2300_v61 = vadd.f32 %v12260_v35, %v2286_v16  ;;  %v10054_v62 = vld [vmem:[%s15488_s7 + $0x5c8] sm:$0xf0]  ;;  %v10047_v37 = vld [vmem:[%s15488_s7 + $0x590] sm:$0xf0]  ;;  %v2441_v38 = vpop.f32.mrf.mxu3  ;;  %v8778_v16 = vld [vmem:[%s15488_s7 + $0x818] sm:$0xf] }
 0x211   :  { %v7743_v35 = vor.u32 %v9872_v43, %v7742_v52  ;;  %v8471_v31 = vor.u32 %v10054_v62, %v8470_v14  ;;  %v2384_v26 = vadd.f32 %v12541_v7, %v2370_v10  ;;  %v8974_v7 = vld [vmem:[%s15488_s7 + $0x9a0] sm:$0xf]  ;;  %v8443_v52 = vor.u32 %v10047_v37, %v8442_v36  ;;  %v8918_v1 = vld [vmem:[%s15488_s7 + $0x930] sm:$0xf]  ;;  %v10166_v14 = vld [vmem:[%s15488_s7 + $0x948] sm:$0xf0] }
 0x212   :  { %5571 = vmatpush.bf16.msra.mxu3 %v8023_v60  ;;  %5595 = vmatpush.bf16.msrb.mxu1 %v8583_v8  ;;  %v10145_v60 = vld [vmem:[%s15488_s7 + $0x8a0] sm:$0xf0]  ;;  %v2704_v46 = vmax.f32 %v2302_v44, 0.0  ;;  %v2453_v6 = vpop.f32.mrf.mxu0  ;;  %v8303_v8 = vor.u32 %v10012_v55, %v8302_v53  ;;  %v10131_v44 = vld [vmem:[%s15488_s7 + $0x830] sm:$0xf0] }
 0x213   :  { %2676 = vmatmul.bf16.vlgmr.msra.gmra.mxu0 %v11397_v34  ;;  %v2697_v34 = vmax.f32 %v2356_v21, 0.0  ;;  %v8835_v11 = vor.u32 %v10145_v60, %v8834_v59  ;;  %v2696_v21 = vmax.f32 %v2300_v61, 0.0  ;;  %v2454_v41 = vadd.f32 %v2453_v6, %v2440_v28  ;;  %v8218_v53 = vld [vmem:[%s15488_s7 + $0x3b8] sm:$0xf]  ;;  %v9991_v55 = vld [vmem:[%s15488_s7 + $0x3d0] sm:$0xf0] }
 0x214   :  { %5556 = vmatpush.bf16.msra.mxu2 %v7827_v39  ;;  %5580 = vmatpush.bf16.msrb.mxu0 %v8387_v2  ;;  %v12717_v39 = vpop.f32.mrf.mxu1  ;;  %v9030_v2 = vld [vmem:[%s15488_s7 + $0xa10] sm:$0xf]  ;;  %v10124_v59 = vld [vmem:[%s15488_s7 + $0x7f8] sm:$0xf0]  ;;  %v8975_v60 = vor.u32 %v10180_v49, %v8974_v7  ;;  %v9282_v10 = vld [vmem:[%s15488_s7 + $0xc08] sm:$0xf]  ;;  %v8919_v28 = vor.u32 %v10166_v14, %v8918_v1 }
 0x215   :  { %v12715_v63 = vpack.c.bf16 %v2705_v47, %v2697_v34  ;;  %v9031_v20 = vor.u32 %v10194_v4, %v9030_v2  ;;  %v2468_v56 = vadd.f32 %v12717_v39, %v2454_v41  ;;  %v8946_v39 = vld [vmem:[%s15488_s7 + $0x968] sm:$0xf]  ;;  %v10173_v2 = vld [vmem:[%s15488_s7 + $0x980] sm:$0xf0]  ;;  %v10103_v41 = vld [vmem:[%s15488_s7 + $0x750] sm:$0xf0] }
 0x216   :  { %5572 = vmatpush.bf16.msra.mxu3 %v7995_v19  ;;  %5596 = vmatpush.bf16.msrb.mxu1 %v8555_v30  ;;  %v10138_v19 = vld [vmem:[%s15488_s7 + $0x868] sm:$0xf0]  ;;  %v12759_v30 = vpack.c.bf16 %v2704_v46, %v2696_v21  ;;  %v8219_v46 = vor.u32 %v9991_v55, %v8218_v53  ;;  %v10257_v62 = vld [vmem:[%s15488_s7 + $0xc20] sm:$0xf0]  ;;  %v8164_v49 = vld [vmem:[%s15488_s7 + $0x364] sm:$0xf0] }
 0x217   :  { %v8807_v15 = vor.u32 %v10138_v19, %v8806_v40  ;;  %v9974_v7 = vld [vmem:[%s15488_s7 + $0x34c] sm:$0xf]  ;;  %v7940_v55 = vld [vmem:[%s15488_s7 + $0x1a4] sm:$0xf0]  ;;  %v9904_v14 = vld [vmem:[%s15488_s7 + $0x11c] sm:$0xf] }
 0x218   :  { %5557 = vmatpush.bf16.msra.mxu2 %v7799_v17  ;;  %5581 = vmatpush.bf16.msrb.mxu0 %v8359_v27  ;;  %v2428_v17 = vadd.f32 %v2427_v58, %v955_v50  ;;  %v9002_v27 = vld [vmem:[%s15488_s7 + $0x9d8] sm:$0xf]  ;;  %v2398_v50 = vadd.f32 %v12580_v32, %v2384_v26  ;;  %v8414_v32 = vld [vmem:[%s15488_s7 + $0x540] sm:$0xf] }
 0x219   :  { %v9003_v47 = vor.u32 %v10187_v33, %v9002_v27  ;;  %v8694_v27 = vld [vmem:[%s15488_s7 + $0x770] sm:$0xf]  ;;  %v10110_v33 = vld [vmem:[%s15488_s7 + $0x788] sm:$0xf0]  ;;  %v8666_v26 = vld [vmem:[%s15488_s7 + $0x738] sm:$0xf] }
 0x21a   :  { %5573 = vmatpush.bf16.msra.mxu3 %v7967_v48  ;;  %5597 = vmatpush.bf16.msrb.mxu1 %v8527_v12  ;;  %v2386_v48 = vadd.f32 %v12618_v0, %v2372_v45  ;;  %v2442_v34 = vadd.f32 %v2441_v38, %v2428_v17  ;;  %v8779_v12 = vor.u32 %v10131_v44, %v8778_v16  ;;  %v9226_v44 = vld [vmem:[%s15488_s7 + $0xb98] sm:$0xf] }
 0x21b   :  { %v2412_v4 = vadd.f32 %v12566_v25, %v2398_v50  ;;  %v8722_v25 = vld [vmem:[%s15488_s7 + $0x7a8] sm:$0xf]  ;;  %v9283_v17 = vor.u32 %v10257_v62, %v9282_v10  ;;  %v8695_v37 = vor.u32 %v10110_v33, %v8694_v27  ;;  %v956_v50 = vperm.slane %v12532_v3, 4  ;;  %v7884_v62 = vld [vmem:[%s15488_s7 + $0x134] sm:$0xf0] }
 0x21c   :  { %5558 = vmatpush.bf16.msra.mxu2 %v7771_v51  ;;  %5582 = vmatpush.bf16.msrb.mxu0 %v8331_v23  ;;  %v2455_v51 = vpop.f32.mrf.mxu0  ;;  %v8247_v23 = vor.u32 %v9998_v57, %v8246_v54  ;;  %v2400_v43 = vadd.f32 %v12656_v22, %v2386_v48  ;;  %v10040_v22 = vld [vmem:[%s15488_s7 + $0x558] sm:$0xf0]  ;;  %v8723_v45 = vor.u32 %v10117_v13, %v8722_v25  ;;  %v10159_v54 = vld [vmem:[%s15488_s7 + $0x910] sm:$0xf0]  ;;  %v8862_v48 = vld [vmem:[%s15488_s7 + $0x8c0] sm:$0xf] }
 0x21d   :  { %5574 = vmatmul.bf16.vlgmr.msra.gmra.mxu3 %v12715_v63  ;;  %v2456_v0 = vadd.f32 %v2455_v51, %v2442_v34  ;;  %v10152_v34 = vld [vmem:[%s15488_s7 + $0x8d8] sm:$0xf0]  ;;  %v8667_v51 = vor.u32 %v10103_v41, %v8666_v26  ;;  %v8108_v25 = vld [vmem:[%s15488_s7 + $0x2f4] sm:$0xf0]  ;;  %v8080_v27 = vld [vmem:[%s15488_s7 + $0x2bc] sm:$0xf0] }
 0x21e   :  { %5622 = vmatpush.bf16.msrb.mxu3 %v9059_v42  ;;  %5598 = vmatpush.bf16.msrb.mxu1 %v8499_v9  ;;  %v2469_v42 = vpop.f32.mrf.mxu1  ;;  %v2414_v58 = vadd.f32 %v12650_v18, %v2400_v43  ;;  %v9984_v9 = vld [vmem:[%s15488_s7 + $0x398] sm:$0xf0]  ;;  %v8947_v18 = vor.u32 %v10173_v2, %v8946_v39  ;;  %v8638_v43 = vld [vmem:[%s15488_s7 + $0x700] sm:$0xf]  ;;  %v8863_v53 = vor.u32 %v10152_v34, %v8862_v48  ;;  %v10215_v41 = vld [vmem:[%s15488_s7 + $0xad0] sm:$0xf0] }
 0x21f   :  { %v2470_v61 = vadd.f32 %v2469_v42, %v2456_v0  ;;  %v8191_v19 = vor.u32 %v9984_v9, %v8190_v5  ;;  %v10096_v0 = vld [vmem:[%s15488_s7 + $0x718] sm:$0xf0]  ;;  %v9911_v5 = vld [vmem:[%s15488_s7 + $0x154] sm:$0xf] }
 0x220   :  { %5559 = vmatpush.bf16.msra.mxu2 %v7743_v35  ;;  %5583 = vmatpush.bf16.msrb.mxu0 %v8303_v8  ;;  %v8415_v35 = vor.u32 %v10040_v22, %v8414_v32  ;;  %v8751_v8 = vor.u32 %v10124_v59, %v8750_v24  ;;  %v2706_v21 = vmax.f32 %v2414_v58, 0.0  ;;  %v8167_v32 = vor.u32 %v9974_v7, %v8164_v49  ;;  %v10236_v42 = vld [vmem:[%s15488_s7 + $0xb78] sm:$0xf0]  ;;  %v9967_v22 = vld [vmem:[%s15488_s7 + $0x314] sm:$0xf] }
 0x221   :  { %v2707_v6 = vmax.f32 %v2470_v61, 0.0  ;;  %v8136_v24 = vld [vmem:[%s15488_s7 + $0x32c] sm:$0xf0]  ;;  %v8639_v61 = vor.u32 %v10096_v0, %v8638_v43  ;;  %v9960_v9 = vld [vmem:[%s15488_s7 + $0x2dc] sm:$0xf] }
 0x222   :  { %5623 = vmatpush.bf16.msrb.mxu3 %v9031_v20  ;;  %5599 = vmatpush.bf16.msrb.mxu1 %v8471_v31  ;;  %v2698_v20 = vmax.f32 %v2412_v4, 0.0  ;;  %v9254_v31 = vld [vmem:[%s15488_s7 + $0xbd0] sm:$0xf]  ;;  %v9890_v49 = vld [vmem:[%s15488_s7 + $0xac] sm:$0xf] }
 0x223   :  { %5560 = vmatmul.bf16.vlgmr.msra.gmra.mxu2 %v12759_v30  ;;  %v7912_v58 = vld [vmem:[%s15488_s7 + $0x16c] sm:$0xf0]  ;;  %v9086_v43 = vld [vmem:[%s15488_s7 + $0xa80] sm:$0xf]  ;;  %v10208_v0 = vld [vmem:[%s15488_s7 + $0xa98] sm:$0xf0] }
 0x224   :  { %5608 = vmatpush.bf16.msrb.mxu2 %v8835_v11  ;;  %5584 = vmatpush.bf16.msrb.mxu0 %v8275_v29  ;;  %v2699_v11 = vmax.f32 %v2468_v56, 0.0  ;;  %v8890_v29 = vld [vmem:[%s15488_s7 + $0x8f8] sm:$0xf]  ;;  %v12859_v36 = vpack.c.bf16 %v2706_v21, %v2698_v20  ;;  %v9198_v56 = vld [vmem:[%s15488_s7 + $0xb60] sm:$0xf]  ;;  %v7915_v1 = vor.u32 %v9911_v5, %v7912_v58 }
 0x225   :  { %v8891_v16 = vor.u32 %v10159_v54, %v8890_v29  ;;  %v9199_v39 = vor.u32 %v10236_v42, %v9198_v56  ;;  %v9142_v20 = vld [vmem:[%s15488_s7 + $0xaf0] sm:$0xf]  ;;  %v10222_v21 = vld [vmem:[%s15488_s7 + $0xb08] sm:$0xf0]  ;;  %v7887_v54 = vor.u32 %v9904_v14, %v7884_v62  ;;  %v9087_v56 = vor.u32 %v10208_v0, %v9086_v43  ;;  %v10313_v42 = vld [vmem:[%s15488_s7 + $0xde0] sm:$0xf0] }
 0x226   :  { %5624 = vmatpush.bf16.msrb.mxu3 %v9003_v47  ;;  %5600 = vmatpush.bf16.msrb.mxu1 %v8443_v52  ;;  %v12838_v40 = vpack.c.bf16 %v2707_v6, %v2699_v11  ;;  %v2481_v57 = vpop.f32.mrf.mxu2  ;;  %v10243_v47 = vld [vmem:[%s15488_s7 + $0xbb0] sm:$0xf0]  ;;  %v2495_v52 = vpop.f32.mrf.mxu3  ;;  %v8139_v6 = vor.u32 %v9967_v22, %v8136_v24  ;;  %v10030_v22 = vld [vmem:[%s15488_s7 + $0x50c] sm:$0xf]  ;;  %v8388_v24 = vld [vmem:[%s15488_s7 + $0x524] sm:$0xf0] }
 0x227   :  { %v2482_v59 = vadd.f32 %v2481_v57, %v956_v50  ;;  %v7996_v5 = vld [vmem:[%s15488_s7 + $0x214] sm:$0xf0]  ;;  %v9478_v58 = vld [vmem:[%s15488_s7 + $0xd90] sm:$0xf]  ;;  %v7968_v62 = vld [vmem:[%s15488_s7 + $0x1dc] sm:$0xf0] }
 0x228   :  { %5609 = vmatpush.bf16.msrb.mxu2 %v8807_v15  ;;  %5585 = vmatpush.bf16.msrb.mxu0 %v8247_v23  ;;  %v10250_v15 = vld [vmem:[%s15488_s7 + $0xbe8] sm:$0xf0]  ;;  %v9227_v23 = vor.u32 %v10243_v47, %v9226_v44  ;;  %v8052_v47 = vld [vmem:[%s15488_s7 + $0x284] sm:$0xf0]  ;;  %v10285_v43 = vld [vmem:[%s15488_s7 + $0xd00] sm:$0xf0] }
 0x229   :  { %v9255_v38 = vor.u32 %v10250_v15, %v9254_v31  ;;  %v2496_v13 = vadd.f32 %v2495_v52, %v2482_v59  ;;  %v9897_v31 = vld [vmem:[%s15488_s7 + $0xe4] sm:$0xf]  ;;  %v9946_v44 = vld [vmem:[%s15488_s7 + $0x26c] sm:$0xf] }
 0x22a   :  { %5625 = vmatpush.bf16.msrb.mxu3 %v8975_v60  ;;  %5601 = vmatpush.bf16.msrb.mxu1 %v8415_v35  ;;  %v2523_v60 = vpop.f32.mrf.mxu1  ;;  %v9170_v35 = vld [vmem:[%s15488_s7 + $0xb28] sm:$0xf]  ;;  %v8055_v52 = vor.u32 %v9946_v44, %v8052_v47  ;;  %v10002_v0 = vld [vmem:[%s15488_s7 + $0x42c] sm:$0xf] }
 0x22c   :  { %5610 = vmatpush.bf16.msrb.mxu2 %v8779_v12  ;;  %5586 = vmatpush.bf16.msrb.mxu0 %v8219_v46  ;;  %v9918_v12 = vld [vmem:[%s15488_s7 + $0x18c] sm:$0xf] }
 0x22d   :  { %5602 = vmatmul.bf16.vlgmr.msrb.gmra.mxu1 %v12838_v40  ;;  %v7943_v46 = vor.u32 %v9918_v12, %v7940_v55  ;;  %v9939_v12 = vld [vmem:[%s15488_s7 + $0x234] sm:$0xf]  ;;  %v9506_v55 = vld [vmem:[%s15488_s7 + $0xdc8] sm:$0xf] }
 0x22e   :  { %5626 = vmatpush.bf16.msrb.mxu3 %v8947_v18  ;;  %v2483_v2 = vpop.f32.mrf.mxu2 }
 0x22f   :  { %v2484_v11 = vadd.f32 %v2483_v2, %v956_v50  ;;  %v7828_v50 = vld [vmem:[%s15488_s7 + $0xc4] sm:$0xf0]  ;;  %v7800_v2 = vld [vmem:[%s15488_s7 + $0x8c] sm:$0xf0] }
 0x230   :  { %5611 = vmatpush.bf16.msrb.mxu2 %v8751_v8  ;;  %5587 = vmatpush.bf16.msrb.mxu0 %v8191_v19  ;;  %v2509_v4 = vpop.f32.mrf.mxu0  ;;  %v10229_v8 = vld [vmem:[%s15488_s7 + $0xb40] sm:$0xf0]  ;;  %v8111_v19 = vor.u32 %v9960_v9, %v8108_v25  ;;  %v7831_v59 = vor.u32 %v9890_v49, %v7828_v50  ;;  %v8360_v9 = vld [vmem:[%s15488_s7 + $0x4ec] sm:$0xf0]  ;;  %v10135_v49 = vld [vmem:[%s15488_s7 + $0x854] sm:$0xf] }
 0x231   :  { %v9171_v18 = vor.u32 %v10229_v8, %v9170_v35  ;;  %v2510_v10 = vadd.f32 %v2509_v4, %v2496_v13  ;;  %v10023_v35 = vld [vmem:[%s15488_s7 + $0x4d4] sm:$0xf]  ;;  %v9876_v13 = vld [vmem:[%s15488_s7 + $0x3c] sm:$0xf]  ;;  %v8808_v50 = vld [vmem:[%s15488_s7 + $0x86c] sm:$0xf0] }
 0x232   :  { %5627 = vmatpush.bf16.msrb.mxu3 %v8919_v28  ;;  %v9143_v28 = vor.u32 %v10222_v21, %v9142_v20  ;;  %v10299_v20 = vld [vmem:[%s15488_s7 + $0xd70] sm:$0xf0]  ;;  %v10016_v21 = vld [vmem:[%s15488_s7 + $0x49c] sm:$0xf] }
 0x233   :  { %5588 = vmatmul.bf16.vlgmr.msrb.gmra.mxu0 %v12859_v36  ;;  %v2524_v15 = vadd.f32 %v2523_v60, %v2510_v10  ;;  %v9883_v60 = vld [vmem:[%s15488_s7 + $0x74] sm:$0xf]  ;;  %v9925_v10 = vld [vmem:[%s15488_s7 + $0x1c4] sm:$0xf] }
 0x234   :  { %5612 = vmatpush.bf16.msrb.mxu2 %v8723_v45  ;;  %5636 = vmatpush.bf16.msra.mxu0 %v9283_v17  ;;  %v2497_v45 = vpop.f32.mrf.mxu3  ;;  %v9953_v17 = vld [vmem:[%s15488_s7 + $0x2a4] sm:$0xf] }
 0x235   :  { %v2498_v33 = vadd.f32 %v2497_v45, %v2484_v11  ;;  %v8083_v26 = vor.u32 %v9953_v17, %v8080_v27  ;;  %v7803_v11 = vor.u32 %v9883_v60, %v7800_v2  ;;  %v8332_v17 = vld [vmem:[%s15488_s7 + $0x4b4] sm:$0xf0]  ;;  %v957_v27 = vperm.slane %v12532_v3, 5  ;;  %v8836_v3 = vld [vmem:[%s15488_s7 + $0x8a4] sm:$0xf0] }
 0x236   :  { %5628 = vmatpush.bf16.msrb.mxu3 %v8891_v16  ;;  %v2525_v16 = vpop.f32.mrf.mxu1  ;;  %v9366_v60 = vld [vmem:[%s15488_s7 + $0xcb0] sm:$0xf] }
 0x238   :  { %5613 = vmatpush.bf16.msrb.mxu2 %v8695_v37  ;;  %5637 = vmatpush.bf16.msra.mxu0 %v9255_v38  ;;  %v2511_v29 = vpop.f32.mrf.mxu0  ;;  %v7856_v37 = vld [vmem:[%s15488_s7 + $0xfc] sm:$0xf0]  ;;  %v9114_v38 = vld [vmem:[%s15488_s7 + $0xab8] sm:$0xf] }
 0x239   :  { %v2512_v57 = vadd.f32 %v2511_v29, %v2498_v33  ;;  %v9115_v34 = vor.u32 %v10215_v41, %v9114_v38  ;;  %v7859_v7 = vor.u32 %v9897_v31, %v7856_v37  ;;  %v8335_v29 = vor.u32 %v10016_v21, %v8332_v17  ;;  %v10142_v31 = vld [vmem:[%s15488_s7 + $0x88c] sm:$0xf]  ;;  %v9422_v37 = vld [vmem:[%s15488_s7 + $0xd20] sm:$0xf]  ;;  %v10009_v38 = vld [vmem:[%s15488_s7 + $0x464] sm:$0xf] }
 0x23a   :  { %5629 = vmatpush.bf16.msrb.mxu3 %v8863_v53  ;;  %v8024_v53 = vld [vmem:[%s15488_s7 + $0x24c] sm:$0xf0] }
 0x23b   :  { %v2526_v48 = vadd.f32 %v2525_v16, %v2512_v57  ;;  %v8027_v4 = vor.u32 %v9939_v12, %v8024_v53  ;;  %v8304_v16 = vld [vmem:[%s15488_s7 + $0x47c] sm:$0xf0]  ;;  %v8276_v53 = vld [vmem:[%s15488_s7 + $0x444] sm:$0xf0] }
 0x23c   :  { %5614 = vmatpush.bf16.msrb.mxu2 %v8667_v51  ;;  %5638 = vmatpush.bf16.msra.mxu0 %v9227_v23  ;;  %v2700_v51 = vmax.f32 %v2524_v15, 0.0  ;;  %v7971_v15 = vor.u32 %v9925_v10, %v7968_v62  ;;  %v8307_v47 = vor.u32 %v10009_v38, %v8304_v16  ;;  %v8220_v62 = vld [vmem:[%s15488_s7 + $0x3d4] sm:$0xf0]  ;;  %v8612_v16 = vld [vmem:[%s15488_s7 + $0x6e4] sm:$0xf0] }
 0x23d   :  { %v2708_v23 = vmax.f32 %v2526_v48, 0.0 }
 0x23e   :  { %5678 = vmatpush.bf16.msra.mxu3 %v8167_v32 }
 0x23f   :  { %v12986_v32 = vpack.c.bf16 %v2708_v23, %v2700_v51 }
 0x240   :  { %5615 = vmatpush.bf16.msrb.mxu2 %v8639_v61  ;;  %5639 = vmatpush.bf16.msra.mxu0 %v9199_v39  ;;  %v9507_v61 = vor.u32 %v10313_v42, %v9506_v55  ;;  %v8391_v39 = vor.u32 %v10030_v22, %v8388_v24  ;;  %v2551_v57 = vpop.f32.mrf.mxu3  ;;  %v8279_v55 = vor.u32 %v10002_v0, %v8276_v53  ;;  %v10128_v24 = vld [vmem:[%s15488_s7 + $0x81c] sm:$0xf]  ;;  %v9004_v53 = vld [vmem:[%s15488_s7 + $0x9f4] sm:$0xf0] }
 0x241   :  { %v8811_v22 = vor.u32 %v10135_v49, %v8808_v50  ;;  %v10107_v49 = vld [vmem:[%s15488_s7 + $0x774] sm:$0xf]  ;;  %v8696_v50 = vld [vmem:[%s15488_s7 + $0x78c] sm:$0xf0] }
 0x242   :  { %5679 = vmatpush.bf16.msra.mxu3 %v8139_v6  ;;  %5650 = vmatpush.bf16.msra.mxu1 %v9507_v61  ;;  %v10306_v6 = vld [vmem:[%s15488_s7 + $0xda8] sm:$0xf0]  ;;  %v8699_v0 = vor.u32 %v10107_v49, %v8696_v50 }
 0x243   :  { %5616 = vmatmul.bf16.vlgmr.msrb.gmra.mxu2 %v12986_v32  ;;  %v9479_v8 = vor.u32 %v10306_v6, %v9478_v58  ;;  %v10278_v61 = vld [vmem:[%s15488_s7 + $0xcc8] sm:$0xf0] }
 0x244   :  { %5664 = vmatpush.bf16.msra.mxu2 %v7943_v46  ;;  %5640 = vmatpush.bf16.msra.mxu0 %v9171_v18  ;;  %v9932_v46 = vld [vmem:[%s15488_s7 + $0x1fc] sm:$0xf]  ;;  %v8363_v18 = vor.u32 %v10023_v35, %v8360_v9  ;;  %v8752_v9 = vld [vmem:[%s15488_s7 + $0x7fc] sm:$0xf0] }
 0x245   :  { %v7999_v14 = vor.u32 %v9932_v46, %v7996_v5  ;;  %v8248_v46 = vld [vmem:[%s15488_s7 + $0x40c] sm:$0xf0] }
 0x246   :  { %5680 = vmatpush.bf16.msra.mxu3 %v8111_v19  ;;  %v2537_v25 = vpop.f32.mrf.mxu2  ;;  %5651 = vmatpush.bf16.msra.mxu1 %v9479_v8  ;;  %v9450_v19 = vld [vmem:[%s15488_s7 + $0xd58] sm:$0xf]  ;;  %v10121_v8 = vld [vmem:[%s15488_s7 + $0x7e4] sm:$0xf] }
 0x247   :  { %v9451_v45 = vor.u32 %v10299_v20, %v9450_v19  ;;  %v2538_v48 = vadd.f32 %v2537_v25, %v957_v27  ;;  %v10198_v20 = vld [vmem:[%s15488_s7 + $0xa4c] sm:$0xf]  ;;  %v8755_v17 = vor.u32 %v10121_v8, %v8752_v9  ;;  %v10065_v8 = vld [vmem:[%s15488_s7 + $0x624] sm:$0xf]  ;;  %v8528_v9 = vld [vmem:[%s15488_s7 + $0x63c] sm:$0xf0] }
 0x248   :  { %5665 = vmatpush.bf16.msra.mxu2 %v7915_v1  ;;  %5641 = vmatpush.bf16.msra.mxu0 %v9143_v28  ;;  %v7772_v1 = vld [vmem:[%s15488_s7 + $0x54] sm:$0xf0]  ;;  %v9869_v28 = vld [vmem:[%s15488_s7 + $0x4] sm:$0xf]  ;;  %v2553_v5 = vpop.f32.mrf.mxu3 }
 0x249   :  { %v7775_v33 = vor.u32 %v9876_v13, %v7772_v1  ;;  %v2552_v42 = vadd.f32 %v2551_v57, %v2538_v48  ;;  %v10271_v13 = vld [vmem:[%s15488_s7 + $0xc90] sm:$0xf0] }
 0x24a   :  { %5681 = vmatpush.bf16.msra.mxu3 %v8083_v26  ;;  %5652 = vmatpush.bf16.msra.mxu1 %v9451_v45  ;;  %v10292_v26 = vld [vmem:[%s15488_s7 + $0xd38] sm:$0xf0]  ;;  %v10191_v48 = vld [vmem:[%s15488_s7 + $0xa14] sm:$0xf] }
 0x24b   :  { %v9423_v41 = vor.u32 %v10292_v26, %v9422_v37  ;;  %v8192_v37 = vld [vmem:[%s15488_s7 + $0x39c] sm:$0xf0] }
 0x24c   :  { %5666 = vmatpush.bf16.msra.mxu2 %v7887_v54  ;;  %5642 = vmatpush.bf16.msra.mxu0 %v9115_v34  ;;  %v7744_v54 = vld [vmem:[%s15488_s7 + $0x1c] sm:$0xf0]  ;;  %v2579_v34 = vpop.f32.mrf.mxu1 }
 0x24d   :  { %v7747_v44 = vor.u32 %v9869_v28, %v7744_v54  ;;  %v8724_v28 = vld [vmem:[%s15488_s7 + $0x7c4] sm:$0xf0]  ;;  %v10264_v54 = vld [vmem:[%s15488_s7 + $0xc58] sm:$0xf0] }
 0x24e   :  { %5682 = vmatpush.bf16.msra.mxu3 %v8055_v52  ;;  %v2539_v51 = vpop.f32.mrf.mxu2  ;;  %5653 = vmatpush.bf16.msra.mxu1 %v9423_v41  ;;  %v9394_v52 = vld [vmem:[%s15488_s7 + $0xce8] sm:$0xf]  ;;  %v10086_v41 = vld [vmem:[%s15488_s7 + $0x6cc] sm:$0xf] }
 0x24f   :  { %v9395_v12 = vor.u32 %v10285_v43, %v9394_v52 }
 0x250   :  { %5667 = vmatpush.bf16.msra.mxu2 %v7859_v7  ;;  %5643 = vmatpush.bf16.msra.mxu0 %v9087_v56  ;;  %v8839_v7 = vor.u32 %v10142_v31, %v8836_v3  ;;  %v2565_v23 = vpop.f32.mrf.mxu0  ;;  %v2540_v56 = vadd.f32 %v2539_v51, %v957_v27  ;;  %v9060_v27 = vld [vmem:[%s15488_s7 + $0xa64] sm:$0xf0]  ;;  %v9981_v31 = vld [vmem:[%s15488_s7 + $0x384] sm:$0xf]  ;;  %v10079_v51 = vld [vmem:[%s15488_s7 + $0x694] sm:$0xf] }
 0x251   :  { %v2566_v2 = vadd.f32 %v2565_v23, %v2552_v42  ;;  %v9063_v26 = vor.u32 %v10198_v20, %v9060_v27  ;;  %v8195_v38 = vor.u32 %v9981_v31, %v8192_v37  ;;  %v8584_v23 = vld [vmem:[%s15488_s7 + $0x6ac] sm:$0xf0]  ;;  %v8668_v42 = vld [vmem:[%s15488_s7 + $0x754] sm:$0xf0] }
 0x252   :  { %5683 = vmatpush.bf16.msra.mxu3 %v8027_v4  ;;  %5654 = vmatpush.bf16.msra.mxu1 %v9395_v12  ;;  %v9367_v4 = vor.u32 %v10278_v61, %v9366_v60  ;;  %v2554_v6 = vadd.f32 %v2553_v5, %v2540_v56  ;;  %v8587_v43 = vor.u32 %v10079_v51, %v8584_v23  ;;  %v10184_v12 = vld [vmem:[%s15488_s7 + $0x9dc] sm:$0xf]  ;;  %v13198_v61 = vld [vmem:[%s15489_s6] sm:$0xff]  ;;  %v8920_v31 = vld [vmem:[%s15488_s7 + $0x94c] sm:$0xf0] }
 0x253   :  { %v2580_v1 = vadd.f32 %v2579_v34, %v2566_v2  ;;  %v9032_v34 = vld [vmem:[%s15488_s7 + $0xa2c] sm:$0xf0]  ;;  %v10100_v56 = vld [vmem:[%s15488_s7 + $0x73c] sm:$0xf]  ;;  %v10093_v5 = vld [vmem:[%s15488_s7 + $0x704] sm:$0xf] }
 0x254   :  { %5668 = vmatpush.bf16.msra.mxu2 %v7831_v59  ;;  %5692 = vmatpush.bf16.msrb.mxu0 %v8391_v39  ;;  %v8780_v59 = vld [vmem:[%s15488_s7 + $0x834] sm:$0xf0]  ;;  %v9995_v39 = vld [vmem:[%s15488_s7 + $0x3f4] sm:$0xf]  ;;  %v2581_v19 = vpop.f32.mrf.mxu1  ;;  %v9035_v52 = vor.u32 %v10191_v48, %v9032_v34  ;;  %v8671_v2 = vor.u32 %v10100_v56, %v8668_v42  ;;  %v10156_v34 = vld [vmem:[%s15488_s7 + $0x8fc] sm:$0xf] }
 0x255   :  { %v8251_v58 = vor.u32 %v9995_v39, %v8248_v46  ;;  %v8783_v35 = vor.u32 %v10128_v24, %v8780_v59  ;;  %v2701_v3 = vmax.f32 %v2580_v1, 0.0  ;;  %v8556_v24 = vld [vmem:[%s15488_s7 + $0x674] sm:$0xf0]  ;;  %v9007_v59 = vor.u32 %v10184_v12, %v9004_v53  ;;  %v8976_v46 = vld [vmem:[%s15488_s7 + $0x9bc] sm:$0xf0] }
 0x256   :  { %5684 = vmatpush.bf16.msra.mxu3 %v7999_v14  ;;  %5655 = vmatpush.bf16.msra.mxu1 %v9367_v4  ;;  %v958_v39 = vperm.slane %v13198_v61, 6  ;;  %v10177_v4 = vld [vmem:[%s15488_s7 + $0x9a4] sm:$0xf]  ;;  %v10170_v1 = vld [vmem:[%s15488_s7 + $0x96c] sm:$0xf] }
 0x257   :  { %v7862_v51 = vld [vmem:[%s15488_s7 + $0xe8] sm:$0xf] }
 0x258   :  { %5669 = vmatpush.bf16.msra.mxu2 %v7803_v11  ;;  %5693 = vmatpush.bf16.msrb.mxu0 %v8363_v18  ;;  %v2567_v25 = vpop.f32.mrf.mxu0  ;;  %v9338_v11 = vld [vmem:[%s15488_s7 + $0xc78] sm:$0xf]  ;;  %v9988_v18 = vld [vmem:[%s15488_s7 + $0x3bc] sm:$0xf] }
 0x259   :  { %v2568_v14 = vadd.f32 %v2567_v25, %v2554_v6  ;;  %v9339_v10 = vor.u32 %v10271_v13, %v9338_v11  ;;  %v8223_v21 = vor.u32 %v9988_v18, %v8220_v62  ;;  %v7946_v6 = vld [vmem:[%s15488_s7 + $0x190] sm:$0xf]  ;;  %v8979_v11 = vor.u32 %v10177_v4, %v8976_v46  ;;  %v7918_v62 = vld [vmem:[%s15488_s7 + $0x158] sm:$0xf]  ;;  %v9978_v46 = vld [vmem:[%s15488_s7 + $0x368] sm:$0xf0] }
 0x25a   :  { %5685 = vmatpush.bf16.msra.mxu3 %v7971_v15  ;;  %v8531_v13 = vor.u32 %v10065_v8, %v8528_v9  ;;  %v8170_v4 = vld [vmem:[%s15488_s7 + $0x350] sm:$0xf]  ;;  %v8416_v8 = vld [vmem:[%s15488_s7 + $0x55c] sm:$0xf0] }
 0x25b   :  { %v2582_v45 = vadd.f32 %v2581_v19, %v2568_v14  ;;  %5656 = vmatpush.bf16.msra.mxu1 %v9339_v10  ;;  %v8948_v14 = vld [vmem:[%s15488_s7 + $0x984] sm:$0xf0] }
 0x25c   :  { %5670 = vmatpush.bf16.msra.mxu2 %v7775_v33  ;;  %5694 = vmatpush.bf16.msrb.mxu0 %v8335_v29  ;;  %v10114_v33 = vld [vmem:[%s15488_s7 + $0x7ac] sm:$0xf]  ;;  %v9310_v29 = vld [vmem:[%s15488_s7 + $0xc40] sm:$0xf] }
 0x25d   :  { %v2709_v15 = vmax.f32 %v2582_v45, 0.0  ;;  %v9311_v57 = vor.u32 %v10264_v54, %v9310_v29  ;;  %v10058_v45 = vld [vmem:[%s15488_s7 + $0x5ec] sm:$0xf]  ;;  %v10163_v54 = vld [vmem:[%s15488_s7 + $0x934] sm:$0xf] }
 0x25f   :  { %5657 = vmatpush.bf16.msra.mxu1 %v9311_v57 }
 0x260   :  { %5671 = vmatpush.bf16.msra.mxu2 %v7747_v44  ;;  %5695 = vmatpush.bf16.msrb.mxu0 %v8307_v47  ;;  %v13156_v44 = vpack.c.bf16 %v2709_v15, %v2701_v3  ;;  %v8727_v47 = vor.u32 %v10114_v33, %v8724_v28  ;;  %v2607_v25 = vpop.f32.mrf.mxu3  ;;  %v8951_v28 = vor.u32 %v10170_v1, %v8948_v14  ;;  %v7890_v15 = vld [vmem:[%s15488_s7 + $0x120] sm:$0xf] }
 0x262   :  { %5630 = vmatmul.bf16.vlgmr.msrb.gmra.mxu3 %v13156_v44 }
 0x263   :  { %5672 = vmatmul.bf16.vlgmr.msra.gmra.mxu2 %v12759_v30  ;;  %5734 = vmatpush.bf16.msrb.mxu3 %v9063_v26  ;;  %v9908_v26 = vld [vmem:[%s15488_s7 + $0x138] sm:$0xf0] }
 0x264   :  { %5720 = vmatpush.bf16.msrb.mxu2 %v8839_v7  ;;  %5696 = vmatpush.bf16.msrb.mxu0 %v8279_v55  ;;  %v8615_v7 = vor.u32 %v10086_v41, %v8612_v16  ;;  %v8472_v41 = vld [vmem:[%s15488_s7 + $0x5cc] sm:$0xf0]  ;;  %v8923_v16 = vor.u32 %v10163_v54, %v8920_v31  ;;  %v7891_v50 = vor.u32 %v9908_v26, %v7890_v15  ;;  %v8114_v54 = vld [vmem:[%s15488_s7 + $0x2e0] sm:$0xf]  ;;  %v9964_v31 = vld [vmem:[%s15488_s7 + $0x2f8] sm:$0xf0] }
 0x265   :  { %v9228_v15 = vld [vmem:[%s15488_s7 + $0xbb4] sm:$0xf0]  ;;  %v8115_v26 = vor.u32 %v9964_v31, %v8114_v54 }
 0x266   :  { %5706 = vmatpush.bf16.msrb.mxu1 %v8615_v7  ;;  %v2593_v55 = vpop.f32.mrf.mxu2  ;;  %v8892_v7 = vld [vmem:[%s15488_s7 + $0x914] sm:$0xf0] }
 0x267   :  { %5735 = vmatpush.bf16.msrb.mxu3 %v9035_v52  ;;  %v2594_v19 = vadd.f32 %v2593_v55, %v958_v39  ;;  %v9901_v52 = vld [vmem:[%s15488_s7 + $0x100] sm:$0xf0]  ;;  %v8895_v53 = vor.u32 %v10156_v34, %v8892_v7  ;;  %v9200_v34 = vld [vmem:[%s15488_s7 + $0xb7c] sm:$0xf0]  ;;  %v7750_v7 = vld [vmem:[%s15488_s7 + $0x8] sm:$0xf] }
 0x268   :  { %5721 = vmatpush.bf16.msrb.mxu2 %v8811_v22  ;;  %5697 = vmatpush.bf16.msrb.mxu0 %v8251_v58  ;;  %v10072_v22 = vld [vmem:[%s15488_s7 + $0x65c] sm:$0xf]  ;;  %v8640_v58 = vld [vmem:[%s15488_s7 + $0x71c] sm:$0xf0]  ;;  %v2609_v49 = vpop.f32.mrf.mxu3  ;;  %v10149_v55 = vld [vmem:[%s15488_s7 + $0x8c4] sm:$0xf] }
 0x269   :  { %v8559_v60 = vor.u32 %v10072_v22, %v8556_v24  ;;  %v8643_v18 = vor.u32 %v10093_v5, %v8640_v58  ;;  %v2608_v37 = vadd.f32 %v2607_v25, %v2594_v19  ;;  %v8864_v24 = vld [vmem:[%s15488_s7 + $0x8dc] sm:$0xf0]  ;;  %v7834_v5 = vld [vmem:[%s15488_s7 + $0xb0] sm:$0xf]  ;;  %v9971_v19 = vld [vmem:[%s15488_s7 + $0x330] sm:$0xf0] }
 0x26a   :  { %5707 = vmatpush.bf16.msrb.mxu1 %v8587_v43  ;;  %v2635_v20 = vpop.f32.mrf.mxu1  ;;  %v10044_v43 = vld [vmem:[%s15488_s7 + $0x57c] sm:$0xf]  ;;  %v8867_v9 = vor.u32 %v10149_v55, %v8864_v24  ;;  %v9172_v55 = vld [vmem:[%s15488_s7 + $0xb44] sm:$0xf0] }
 0x26b   :  { %5736 = vmatpush.bf16.msrb.mxu3 %v9007_v59  ;;  %v10254_v59 = vld [vmem:[%s15488_s7 + $0xc0c] sm:$0xf] }
 0x26c   :  { %5722 = vmatpush.bf16.msrb.mxu2 %v8783_v35  ;;  %5698 = vmatpush.bf16.msrb.mxu0 %v8223_v21  ;;  %v9922_v35 = vld [vmem:[%s15488_s7 + $0x1a8] sm:$0xf0]  ;;  %v9915_v21 = vld [vmem:[%s15488_s7 + $0x170] sm:$0xf0] }
 0x26d   :  { %v7947_v10 = vor.u32 %v9922_v35, %v7946_v6  ;;  %v7919_v3 = vor.u32 %v9915_v21, %v7918_v62  ;;  %v9894_v6 = vld [vmem:[%s15488_s7 + $0xc8] sm:$0xf0]  ;;  %v10037_v35 = vld [vmem:[%s15488_s7 + $0x544] sm:$0xf]  ;;  %v8142_v62 = vld [vmem:[%s15488_s7 + $0x318] sm:$0xf] }
 0x26e   :  { %5708 = vmatpush.bf16.msrb.mxu1 %v8559_v60  ;;  %v2595_v27 = vpop.f32.mrf.mxu2  ;;  %v9284_v60 = vld [vmem:[%s15488_s7 + $0xc24] sm:$0xf0]  ;;  %v8419_v25 = vor.u32 %v10037_v35, %v8416_v8  ;;  %v7835_v14 = vor.u32 %v9894_v6, %v7834_v5  ;;  %v9256_v21 = vld [vmem:[%s15488_s7 + $0xbec] sm:$0xf0]  ;;  %v10219_v5 = vld [vmem:[%s15488_s7 + $0xaf4] sm:$0xf] }
 0x26f   :  { %5737 = vmatpush.bf16.msrb.mxu3 %v8979_v11  ;;  %v2596_v57 = vadd.f32 %v2595_v27, %v958_v39  ;;  %v9287_v1 = vor.u32 %v10254_v59, %v9284_v60  ;;  %v8143_v27 = vor.u32 %v9971_v19, %v8142_v62  ;;  %v8814_v59 = vld [vmem:[%s15488_s7 + $0x858] sm:$0xf]  ;;  %v10139_v60 = vld [vmem:[%s15488_s7 + $0x870] sm:$0xf0]  ;;  %v9144_v6 = vld [vmem:[%s15488_s7 + $0xb0c] sm:$0xf0] }
 0x270   :  { %5723 = vmatpush.bf16.msrb.mxu2 %v8755_v17  ;;  %5699 = vmatpush.bf16.msrb.mxu0 %v8195_v38  ;;  %v8500_v17 = vld [vmem:[%s15488_s7 + $0x604] sm:$0xf0]  ;;  %v2621_v33 = vpop.f32.mrf.mxu0  ;;  %v10051_v38 = vld [vmem:[%s15488_s7 + $0x5b4] sm:$0xf]  ;;  %v8030_v35 = vld [vmem:[%s15488_s7 + $0x238] sm:$0xf] }
 0x271   :  { %v8503_v29 = vor.u32 %v10058_v45, %v8500_v17  ;;  %v2622_v48 = vadd.f32 %v2621_v33, %v2608_v37  ;;  %v2610_v23 = vadd.f32 %v2609_v49, %v2596_v57  ;;  %v7806_v45 = vld [vmem:[%s15488_s7 + $0x78] sm:$0xf]  ;;  %v9887_v17 = vld [vmem:[%s15488_s7 + $0x90] sm:$0xf0]  ;;  %v7778_v57 = vld [vmem:[%s15488_s7 + $0x40] sm:$0xf] }
 0x272   :  { %5709 = vmatpush.bf16.msrb.mxu1 %v8531_v13  ;;  %5686 = vmatmul.bf16.vlgmr.msra.gmra.mxu3 %v12715_v63  ;;  %v2637_v39 = vpop.f32.mrf.mxu1  ;;  %v9880_v37 = vld [vmem:[%s15488_s7 + $0x58] sm:$0xf0]  ;;  %v9873_v49 = vld [vmem:[%s15488_s7 + $0x20] sm:$0xf0]  ;;  %v9943_v8 = vld [vmem:[%s15488_s7 + $0x250] sm:$0xf0] }
 0x273   :  { %5738 = vmatpush.bf16.msrb.mxu3 %v8951_v28  ;;  %v2636_v42 = vadd.f32 %v2635_v20, %v2622_v48  ;;  %v7807_v28 = vor.u32 %v9887_v17, %v7806_v45  ;;  %v9957_v48 = vld [vmem:[%s15488_s7 + $0x2c0] sm:$0xf0]  ;;  %v9116_v62 = vld [vmem:[%s15488_s7 + $0xad4] sm:$0xf0]  ;;  %v8002_v45 = vld [vmem:[%s15488_s7 + $0x200] sm:$0xf] }
 0x274   :  { %5724 = vmatpush.bf16.msrb.mxu2 %v8727_v47  ;;  %v8475_v47 = vor.u32 %v10051_v38, %v8472_v41  ;;  %v7779_v41 = vor.u32 %v9880_v37, %v7778_v57  ;;  %v9936_v17 = vld [vmem:[%s15488_s7 + $0x218] sm:$0xf0]  ;;  %v10205_v57 = vld [vmem:[%s15488_s7 + $0xa84] sm:$0xf] }
 0x275   :  { %v2702_v11 = vmax.f32 %v2636_v42, 0.0  ;;  %v9950_v42 = vld [vmem:[%s15488_s7 + $0x288] sm:$0xf0] }
 0x276   :  { %5710 = vmatpush.bf16.msrb.mxu1 %v8503_v29  ;;  %v10240_v29 = vld [vmem:[%s15488_s7 + $0xb9c] sm:$0xf] }
 0x277   :  { %5739 = vmatpush.bf16.msrb.mxu3 %v8923_v16  ;;  %v9231_v38 = vor.u32 %v10240_v29, %v9228_v15  ;;  %v10233_v16 = vld [vmem:[%s15488_s7 + $0xb64] sm:$0xf]  ;;  %v8003_v15 = vor.u32 %v9936_v17, %v8002_v45  ;;  %v8310_v17 = vld [vmem:[%s15488_s7 + $0x468] sm:$0xf] }
 0x278   :  { %5725 = vmatpush.bf16.msrb.mxu2 %v8699_v0  ;;  %v8444_v0 = vld [vmem:[%s15488_s7 + $0x594] sm:$0xf0]  ;;  %v2623_v12 = vpop.f32.mrf.mxu0  ;;  %v10289_v45 = vld [vmem:[%s15488_s7 + $0xd24] sm:$0xf] }
 0x279   :  { %v8447_v56 = vor.u32 %v10044_v43, %v8444_v0  ;;  %v2624_v22 = vadd.f32 %v2623_v12, %v2610_v23  ;;  %v10146_v23 = vld [vmem:[%s15488_s7 + $0x8a8] sm:$0xf0]  ;;  %v9203_v0 = vor.u32 %v10233_v16, %v9200_v34  ;;  %v7751_v12 = vor.u32 %v9873_v49, %v7750_v7  ;;  %v9929_v16 = vld [vmem:[%s15488_s7 + $0x1e0] sm:$0xf0]  ;;  %v8394_v34 = vld [vmem:[%s15488_s7 + $0x510] sm:$0xf] }
 0x27a   :  { %5711 = vmatpush.bf16.msrb.mxu1 %v8475_v47  ;;  %v8086_v47 = vld [vmem:[%s15488_s7 + $0x2a8] sm:$0xf]  ;;  %v10034_v7 = vld [vmem:[%s15488_s7 + $0x528] sm:$0xf0] }
 0x27b   :  { %v2638_v58 = vadd.f32 %v2637_v39, %v2624_v22  ;;  %5740 = vmatpush.bf16.msrb.mxu3 %v8895_v53  ;;  %v8087_v43 = vor.u32 %v9957_v48, %v8086_v47  ;;  %v10226_v53 = vld [vmem:[%s15488_s7 + $0xb2c] sm:$0xf]  ;;  %v9508_v49 = vld [vmem:[%s15488_s7 + $0xde4] sm:$0xf0] }
 0x27c   :  { %5726 = vmatpush.bf16.msrb.mxu2 %v8671_v2  ;;  %v7863_v2 = vor.u32 %v9901_v52, %v7862_v51  ;;  %v8842_v51 = vld [vmem:[%s15488_s7 + $0x890] sm:$0xf]  ;;  %v10310_v48 = vld [vmem:[%s15488_s7 + $0xdcc] sm:$0xf] }
 0x27d   :  { %v2710_v13 = vmax.f32 %v2638_v58, 0.0  ;;  %v8815_v58 = vor.u32 %v10139_v60, %v8814_v59  ;;  %v10027_v59 = vld [vmem:[%s15488_s7 + $0x4f0] sm:$0xf0] }
 0x27e   :  { %5712 = vmatpush.bf16.msrb.mxu1 %v8447_v56  ;;  %v8058_v56 = vld [vmem:[%s15488_s7 + $0x270] sm:$0xf] }
 0x27f   :  { %v13320_v20 = vpack.c.bf16 %v2710_v13, %v2702_v11  ;;  %5741 = vmatpush.bf16.msrb.mxu3 %v8867_v9  ;;  %v8786_v11 = vld [vmem:[%s15488_s7 + $0x820] sm:$0xf]  ;;  %v10132_v13 = vld [vmem:[%s15488_s7 + $0x838] sm:$0xf0] }
 0x280   :  { %5727 = vmatpush.bf16.msrb.mxu2 %v8643_v18  ;;  %v8171_v18 = vor.u32 %v9978_v46, %v8170_v4  ;;  %v2663_v52 = vpop.f32.mrf.mxu3  ;;  %v9175_v4 = vor.u32 %v10226_v53, %v9172_v55  ;;  %v8059_v46 = vor.u32 %v9950_v42, %v8058_v56  ;;  %v10118_v53 = vld [vmem:[%s15488_s7 + $0x7c8] sm:$0xf0]  ;;  %v9511_v56 = vor.u32 %v10310_v48, %v9508_v49  ;;  %v8954_v49 = vld [vmem:[%s15488_s7 + $0x970] sm:$0xf] }
 0x281   :  { %5644 = vmatmul.bf16.vlgmr.msra.gmra.mxu0 %v13320_v20  ;;  %v10282_v48 = vld [vmem:[%s15488_s7 + $0xcec] sm:$0xf] }
 0x282   :  { %5713 = vmatpush.bf16.msrb.mxu1 %v8419_v25  ;;  %5748 = vmatpush.bf16.msra.mxu0 %v9287_v1  ;;  %v9147_v1 = vor.u32 %v10219_v5, %v9144_v6  ;;  %v10111_v5 = vld [vmem:[%s15488_s7 + $0x790] sm:$0xf0] }
 0x283   :  { %5728 = vmatmul.bf16.vlgmr.msrb.gmra.mxu2 %v12986_v32  ;;  %5790 = vmatpush.bf16.msra.mxu3 %v8171_v18 }
 0x284   :  { %5776 = vmatpush.bf16.msra.mxu2 %v7947_v10  ;;  %v10247_v10 = vld [vmem:[%s15488_s7 + $0xbd4] sm:$0xf]  ;;  %5742 = vmatmul.bf16.vlgmr.msrb.gmra.mxu3 %v13156_v44 }
 0x285   :  { %v9259_v33 = vor.u32 %v10247_v10, %v9256_v21  ;;  %v10212_v10 = vld [vmem:[%s15488_s7 + $0xabc] sm:$0xf]  ;;  %v8787_v21 = vor.u32 %v10132_v13, %v8786_v11  ;;  %v9452_v13 = vld [vmem:[%s15488_s7 + $0xd74] sm:$0xf0] }
 0x286   :  { %v9119_v54 = vor.u32 %v10212_v10, %v9116_v62  ;;  %v10104_v10 = vld [vmem:[%s15488_s7 + $0x758] sm:$0xf0] }
 0x287   :  { %5791 = vmatpush.bf16.msra.mxu3 %v8143_v27  ;;  %5749 = vmatpush.bf16.msra.mxu0 %v9259_v33  ;;  %v8758_v33 = vld [vmem:[%s15488_s7 + $0x7e8] sm:$0xf] }
 0x288   :  { %5777 = vmatpush.bf16.msra.mxu2 %v7919_v3  ;;  %v2649_v3 = vpop.f32.mrf.mxu2  ;;  %v2665_v19 = vpop.f32.mrf.mxu3 }
 0x28a   :  { %v2691_v24 = vpop.f32.mrf.mxu1 }
 0x28b   :  { %5792 = vmatpush.bf16.msra.mxu3 %v8115_v26  ;;  %5750 = vmatpush.bf16.msra.mxu0 %v9231_v38  ;;  %v9088_v38 = vld [vmem:[%s15488_s7 + $0xa9c] sm:$0xf0] }
 0x28c   :  { %5778 = vmatpush.bf16.msra.mxu2 %v7891_v50  ;;  %v959_v50 = vperm.slane %v13198_v61, 7  ;;  %v8843_v61 = vor.u32 %v10146_v23, %v8842_v51  ;;  %v10202_v51 = vld [vmem:[%s15488_s7 + $0xa68] sm:$0xf0] }
 0x28e   :  { %v2650_v22 = vadd.f32 %v2649_v3, %v959_v50 }
 0x28f   :  { %5793 = vmatpush.bf16.msra.mxu3 %v8087_v43  ;;  %5751 = vmatpush.bf16.msra.mxu0 %v9203_v0  ;;  %v9091_v43 = vor.u32 %v10205_v57, %v9088_v38  ;;  %v9919_v57 = vld [vmem:[%s15488_s7 + $0x194] sm:$0xf] }
 0x290   :  { %5779 = vmatpush.bf16.msra.mxu2 %v7863_v2  ;;  %v2651_v39 = vpop.f32.mrf.mxu2  ;;  %v2677_v2 = vpop.f32.mrf.mxu0  ;;  %v2664_v25 = vadd.f32 %v2663_v52, %v2650_v22  ;;  %v10303_v22 = vld [vmem:[%s15488_s7 + $0xd94] sm:$0xf] }
 0x291   :  { %v2652_v9 = vadd.f32 %v2651_v39, %v959_v50  ;;  %5700 = vmatmul.bf16.vlgmr.msrb.gmra.mxu0 %v12859_v36  ;;  %v9066_v50 = vld [vmem:[%s15488_s7 + $0xa50] sm:$0xf] }
 0x292   :  { %v2678_v18 = vadd.f32 %v2677_v2, %v2664_v25  ;;  %v2693_v37 = vpop.f32.mrf.mxu1  ;;  %v9067_v42 = vor.u32 %v10202_v51, %v9066_v50  ;;  %v9480_v39 = vld [vmem:[%s15488_s7 + $0xdac] sm:$0xf0]  ;;  %v9038_v2 = vld [vmem:[%s15488_s7 + $0xa18] sm:$0xf]  ;;  %v10020_v25 = vld [vmem:[%s15488_s7 + $0x4b8] sm:$0xf0] }
 0x293   :  { %5752 = vmatpush.bf16.msra.mxu0 %v9175_v4  ;;  %5794 = vmatpush.bf16.msra.mxu3 %v8059_v46  ;;  %v2666_v27 = vadd.f32 %v2665_v19, %v2652_v9  ;;  %v10195_v4 = vld [vmem:[%s15488_s7 + $0xa30] sm:$0xf0]  ;;  %v8702_v46 = vld [vmem:[%s15488_s7 + $0x778] sm:$0xf]  ;;  %v9483_v6 = vor.u32 %v10303_v22, %v9480_v39  ;;  %v8338_v9 = vld [vmem:[%s15488_s7 + $0x4a0] sm:$0xf] }
 0x294   :  { %5780 = vmatpush.bf16.msra.mxu2 %v7835_v14  ;;  %v8031_v14 = vor.u32 %v9943_v8, %v8030_v35  ;;  %v2692_v31 = vadd.f32 %v2691_v24, %v2678_v18  ;;  %v8366_v24 = vld [vmem:[%s15488_s7 + $0x4d8] sm:$0xf]  ;;  %v9039_v35 = vor.u32 %v10195_v4, %v9038_v2  ;;  %v10296_v8 = vld [vmem:[%s15488_s7 + $0xd5c] sm:$0xf]  ;;  %v8703_v11 = vor.u32 %v10111_v5, %v8702_v46  ;;  %v9010_v18 = vld [vmem:[%s15488_s7 + $0x9e0] sm:$0xf] }
 0x295   :  { %v8339_v62 = vor.u32 %v10020_v25, %v8338_v9  ;;  %v9455_v19 = vor.u32 %v10296_v8, %v9452_v13  ;;  %v10174_v50 = vld [vmem:[%s15488_s7 + $0x988] sm:$0xf0]  ;;  %v8926_v22 = vld [vmem:[%s15488_s7 + $0x938] sm:$0xf]  ;;  %v7892_v39 = vld [vmem:[%s15488_s7 + $0x13c] sm:$0xf0] }
 0x296   :  { %v2703_v23 = vmax.f32 %v2692_v31, 0.0  ;;  %v8646_v31 = vld [vmem:[%s15488_s7 + $0x708] sm:$0xf]  ;;  %v8226_v4 = vld [vmem:[%s15488_s7 + $0x3c0] sm:$0xf] }
 0x297   :  { %5753 = vmatpush.bf16.msra.mxu0 %v9147_v1  ;;  %5795 = vmatpush.bf16.msra.mxu3 %v8031_v14  ;;  %v10188_v1 = vld [vmem:[%s15488_s7 + $0x9f8] sm:$0xf0]  ;;  %v8674_v14 = vld [vmem:[%s15488_s7 + $0x740] sm:$0xf]  ;;  %v9898_v25 = vld [vmem:[%s15488_s7 + $0xec] sm:$0xf] }
 0x298   :  { %5781 = vmatpush.bf16.msra.mxu2 %v7807_v28  ;;  %v10125_v28 = vld [vmem:[%s15488_s7 + $0x800] sm:$0xf0]  ;;  %v2679_v29 = vpop.f32.mrf.mxu0  ;;  %v9992_v46 = vld [vmem:[%s15488_s7 + $0x3d8] sm:$0xf0]  ;;  %v8898_v8 = vld [vmem:[%s15488_s7 + $0x900] sm:$0xf] }
 0x299   :  { %v2680_v3 = vadd.f32 %v2679_v29, %v2666_v27  ;;  %v8759_v26 = vor.u32 %v10125_v28, %v8758_v33  ;;  %v10013_v27 = vld [vmem:[%s15488_s7 + $0x480] sm:$0xf0]  ;;  %v8675_v33 = vor.u32 %v10104_v10, %v8674_v14  ;;  %v9424_v28 = vld [vmem:[%s15488_s7 + $0xd3c] sm:$0xf0]  ;;  %v8982_v29 = vld [vmem:[%s15488_s7 + $0x9a8] sm:$0xf] }
 0x29a   :  { %v10160_v9 = vld [vmem:[%s15488_s7 + $0x918] sm:$0xf0]  ;;  %v7864_v13 = vld [vmem:[%s15488_s7 + $0x104] sm:$0xf0] }
 0x29b   :  { %v2694_v47 = vadd.f32 %v2693_v37, %v2680_v3  ;;  %5754 = vmatpush.bf16.msra.mxu0 %v9119_v54  ;;  %5796 = vmatpush.bf16.msra.mxu3 %v8003_v15  ;;  %v10181_v54 = vld [vmem:[%s15488_s7 + $0x9c0] sm:$0xf0]  ;;  %v8311_v15 = vor.u32 %v10013_v27, %v8310_v17  ;;  %v7948_v37 = vld [vmem:[%s15488_s7 + $0x1ac] sm:$0xf0]  ;;  %v8198_v10 = vld [vmem:[%s15488_s7 + $0x388] sm:$0xf] }
 0x29c   :  { %5782 = vmatpush.bf16.msra.mxu2 %v7779_v41  ;;  %v7974_v41 = vld [vmem:[%s15488_s7 + $0x1c8] sm:$0xf]  ;;  %v10097_v3 = vld [vmem:[%s15488_s7 + $0x720] sm:$0xf0]  ;;  %v8983_v38 = vor.u32 %v10181_v54, %v8982_v29  ;;  %v9290_v17 = vld [vmem:[%s15488_s7 + $0xc10] sm:$0xf] }
 0x29d   :  { %v2711_v52 = vmax.f32 %v2694_v47, 0.0  ;;  %v7975_v0 = vor.u32 %v9929_v16, %v7974_v41  ;;  %v8282_v41 = vld [vmem:[%s15488_s7 + $0x430] sm:$0xf]  ;;  %v10006_v16 = vld [vmem:[%s15488_s7 + $0x448] sm:$0xf0]  ;;  %v8647_v47 = vor.u32 %v10097_v3, %v8646_v31 }
 0x29e   :  { %v8283_v51 = vor.u32 %v10006_v16, %v8282_v41  ;;  %v10258_v27 = vld [vmem:[%s15488_s7 + $0xc28] sm:$0xf0]  ;;  %v9975_v54 = vld [vmem:[%s15488_s7 + $0x354] sm:$0xf]  ;;  %v8172_v3 = vld [vmem:[%s15488_s7 + $0x36c] sm:$0xf0] }
 0x29f   :  { %v13468_v55 = vpack.c.bf16 %v2711_v52, %v2703_v23  ;;  %5755 = vmatpush.bf16.msra.mxu0 %v9091_v43  ;;  %5797 = vmatpush.bf16.msra.mxu3 %v7975_v0  ;;  %v9912_v23 = vld [vmem:[%s15488_s7 + $0x15c] sm:$0xf]  ;;  %v7920_v52 = vld [vmem:[%s15488_s7 + $0x174] sm:$0xf0]  ;;  %v10090_v29 = vld [vmem:[%s15488_s7 + $0x6e8] sm:$0xf0] }
 0x2a0   :  { %5783 = vmatpush.bf16.msra.mxu2 %v7751_v12  ;;  %v8730_v12 = vld [vmem:[%s15488_s7 + $0x7b0] sm:$0xf]  ;;  %v8254_v0 = vld [vmem:[%s15488_s7 + $0x3f8] sm:$0xf] }
 0x2a1   :  { %v8731_v60 = vor.u32 %v10118_v53, %v8730_v12  ;;  %5658 = vmatmul.bf16.vlgmr.msra.gmra.mxu1 %v13468_v55  ;;  %v9999_v12 = vld [vmem:[%s15488_s7 + $0x410] sm:$0xf0]  ;;  %v8955_v53 = vor.u32 %v10174_v50, %v8954_v49  ;;  %v9262_v16 = vld [vmem:[%s15488_s7 + $0xbd8] sm:$0xf]  ;;  %v9968_v50 = vld [vmem:[%s15488_s7 + $0x31c] sm:$0xf] }
 0x2a2   :  { %5762 = vmatpush.bf16.msra.mxu1 %v9511_v56  ;;  %5798 = vmatmul.bf16.vlgmr.msra.gmra.mxu3 %v12715_v63  ;;  %v9368_v56 = vld [vmem:[%s15488_s7 + $0xccc] sm:$0xf0]  ;;  %v10083_v49 = vld [vmem:[%s15488_s7 + $0x6b0] sm:$0xf0] }
 0x2a3   :  { %5784 = vmatmul.bf16.vlgmr.msra.gmra.mxu2 %v12759_v30  ;;  %5846 = vmatpush.bf16.msrb.mxu3 %v9067_v42  ;;  %v7923_v42 = vor.u32 %v9912_v23, %v7920_v52  ;;  %v9884_v23 = vld [vmem:[%s15488_s7 + $0x7c] sm:$0xf]  ;;  %v7808_v52 = vld [vmem:[%s15488_s7 + $0x94] sm:$0xf0] }
 0x2a4   :  { %5832 = vmatpush.bf16.msrb.mxu2 %v8843_v61  ;;  %v8395_v61 = vor.u32 %v10034_v7, %v8394_v34  ;;  %5756 = vmatmul.bf16.vlgmr.msra.gmra.mxu0 %v13320_v20  ;;  %v9396_v34 = vld [vmem:[%s15488_s7 + $0xd04] sm:$0xf0]  ;;  %v7951_v7 = vor.u32 %v9919_v57, %v7948_v37  ;;  %v7836_v57 = vld [vmem:[%s15488_s7 + $0xcc] sm:$0xf0] }
 0x2a5   :  { %v9399_v43 = vor.u32 %v10282_v48, %v9396_v34  ;;  %v8175_v48 = vor.u32 %v9975_v54, %v8172_v3  ;;  %v8816_v3 = vld [vmem:[%s15488_s7 + $0x874] sm:$0xf0] }
 0x2a6   :  { %5804 = vmatpush.bf16.msrb.mxu0 %v8395_v61  ;;  %5763 = vmatpush.bf16.msra.mxu1 %v9483_v6  ;;  %v10275_v61 = vld [vmem:[%s15488_s7 + $0xcb4] sm:$0xf]  ;;  %v9340_v6 = vld [vmem:[%s15488_s7 + $0xc94] sm:$0xf0] }
 0x2a7   :  { %5847 = vmatpush.bf16.msrb.mxu3 %v9039_v35  ;;  %v9371_v2 = vor.u32 %v10275_v61, %v9368_v56  ;;  %v7811_v56 = vor.u32 %v9884_v23, %v7808_v52  ;;  %v10216_v23 = vld [vmem:[%s15488_s7 + $0xad8] sm:$0xf0] }
 0x2a8   :  { %5833 = vmatpush.bf16.msrb.mxu2 %v8815_v58  ;;  %v8367_v58 = vor.u32 %v10027_v59, %v8366_v24  ;;  %v10167_v24 = vld [vmem:[%s15488_s7 + $0x950] sm:$0xf0]  ;;  %v8255_v59 = vor.u32 %v9999_v12, %v8254_v0  ;;  %v9234_v12 = vld [vmem:[%s15488_s7 + $0xba0] sm:$0xf] }
 0x2a9   :  { %v8927_v5 = vor.u32 %v10167_v24, %v8926_v22  ;;  %v10076_v22 = vld [vmem:[%s15488_s7 + $0x678] sm:$0xf0]  ;;  %v9961_v24 = vld [vmem:[%s15488_s7 + $0x2e4] sm:$0xf] }
 0x2aa   :  { %5805 = vmatpush.bf16.msrb.mxu0 %v8367_v58  ;;  %5764 = vmatpush.bf16.msra.mxu1 %v9455_v19  ;;  %v10268_v58 = vld [vmem:[%s15488_s7 + $0xc7c] sm:$0xf]  ;;  %v8870_v19 = vld [vmem:[%s15488_s7 + $0x8c8] sm:$0xf] }
 0x2ab   :  { %v9343_v14 = vor.u32 %v10268_v58, %v9340_v6 }
 0x2ac   :  { %5834 = vmatpush.bf16.msrb.mxu2 %v8787_v21  ;;  %v9011_v21 = vor.u32 %v10188_v1, %v9010_v18  ;;  %v10261_v18 = vld [vmem:[%s15488_s7 + $0xc44] sm:$0xf]  ;;  %v9312_v1 = vld [vmem:[%s15488_s7 + $0xc5c] sm:$0xf0] }
 0x2ad   :  { %v9315_v37 = vor.u32 %v10261_v18, %v9312_v1  ;;  %v10143_v1 = vld [vmem:[%s15488_s7 + $0x894] sm:$0xf] }
 0x2ae   :  { %5806 = vmatpush.bf16.msrb.mxu0 %v8339_v62  ;;  %5848 = vmatpush.bf16.msrb.mxu3 %v9011_v21  ;;  %v9985_v62 = vld [vmem:[%s15488_s7 + $0x3a0] sm:$0xf0]  ;;  %v8899_v21 = vor.u32 %v10160_v9, %v8898_v8  ;;  %v9954_v9 = vld [vmem:[%s15488_s7 + $0x2ac] sm:$0xf] }
 0x2af   :  { %v8199_v31 = vor.u32 %v9985_v62, %v8198_v10  ;;  %v10069_v8 = vld [vmem:[%s15488_s7 + $0x640] sm:$0xf0]  ;;  %v9178_v62 = vld [vmem:[%s15488_s7 + $0xb30] sm:$0xf] }
 0x2b0   :  { %5835 = vmatpush.bf16.msrb.mxu2 %v8759_v26  ;;  %v9427_v26 = vor.u32 %v10289_v45, %v9424_v28  ;;  %v10153_v45 = vld [vmem:[%s15488_s7 + $0x8e0] sm:$0xf0]  ;;  %v8618_v28 = vld [vmem:[%s15488_s7 + $0x6d0] sm:$0xf] }
 0x2b1   :  { %5714 = vmatmul.bf16.vlgmr.msrb.gmra.mxu1 %v12838_v40  ;;  %v8619_v41 = vor.u32 %v10090_v29, %v8618_v28  ;;  %v9947_v28 = vld [vmem:[%s15488_s7 + $0x274] sm:$0xf]  ;;  %v8060_v29 = vld [vmem:[%s15488_s7 + $0x28c] sm:$0xf0] }
 0x2b2   :  { %5807 = vmatpush.bf16.msrb.mxu0 %v8311_v15  ;;  %5765 = vmatpush.bf16.msra.mxu1 %v9427_v26  ;;  %v9891_v15 = vld [vmem:[%s15488_s7 + $0xb4] sm:$0xf]  ;;  %v9291_v26 = vor.u32 %v10258_v27, %v9290_v17  ;;  %v8506_v17 = vld [vmem:[%s15488_s7 + $0x5f0] sm:$0xf]  ;;  %v10062_v27 = vld [vmem:[%s15488_s7 + $0x608] sm:$0xf0] }
 0x2b3   :  { %5849 = vmatpush.bf16.msrb.mxu3 %v8983_v38  ;;  %v8871_v38 = vor.u32 %v10153_v45, %v8870_v19  ;;  %v7839_v34 = vor.u32 %v9891_v15, %v7836_v57  ;;  %v10230_v19 = vld [vmem:[%s15488_s7 + $0xb48] sm:$0xf0]  ;;  %v8507_v15 = vor.u32 %v10062_v27, %v8506_v17  ;;  %v9150_v57 = vld [vmem:[%s15488_s7 + $0xaf8] sm:$0xf] }
 0x2b4   :  { %5836 = vmatpush.bf16.msrb.mxu2 %v8731_v60  ;;  %v9905_v60 = vld [vmem:[%s15488_s7 + $0x124] sm:$0xf]  ;;  %v9179_v54 = vor.u32 %v10230_v19, %v9178_v62 }
 0x2b5   :  { %v7895_v35 = vor.u32 %v9905_v60, %v7892_v39  ;;  %v9877_v60 = vld [vmem:[%s15488_s7 + $0x44] sm:$0xf]  ;;  %v7780_v39 = vld [vmem:[%s15488_s7 + $0x5c] sm:$0xf0] }
 0x2b6   :  { %5808 = vmatpush.bf16.msrb.mxu0 %v8283_v51  ;;  %5766 = vmatpush.bf16.msra.mxu1 %v9399_v43  ;;  %v8144_v51 = vld [vmem:[%s15488_s7 + $0x334] sm:$0xf0]  ;;  %v7783_v6 = vor.u32 %v9877_v60, %v7780_v39  ;;  %v9094_v39 = vld [vmem:[%s15488_s7 + $0xa88] sm:$0xf] }
 0x2b7   :  { %5850 = vmatpush.bf16.msrb.mxu3 %v8955_v53  ;;  %v10244_v53 = vld [vmem:[%s15488_s7 + $0xbb8] sm:$0xf0]  ;;  %v8147_v61 = vor.u32 %v9968_v50, %v8144_v51  ;;  %v9122_v51 = vld [vmem:[%s15488_s7 + $0xac0] sm:$0xf] }
 0x2b8   :  { %5837 = vmatpush.bf16.msrb.mxu2 %v8703_v11  ;;  %v8227_v11 = vor.u32 %v9992_v46, %v8226_v4  ;;  %v9206_v46 = vld [vmem:[%s15488_s7 + $0xb68] sm:$0xf] }
 0x2ba   :  { %5809 = vmatpush.bf16.msrb.mxu0 %v8255_v59  ;;  %5767 = vmatpush.bf16.msra.mxu1 %v9371_v2  ;;  %v8116_v59 = vld [vmem:[%s15488_s7 + $0x2fc] sm:$0xf0]  ;;  %v9235_v2 = vor.u32 %v10244_v53, %v9234_v12  ;;  %v9933_v53 = vld [vmem:[%s15488_s7 + $0x204] sm:$0xf] }
 0x2bb   :  { %5851 = vmatpush.bf16.msrb.mxu3 %v8927_v5  ;;  %v10237_v5 = vld [vmem:[%s15488_s7 + $0xb80] sm:$0xf0]  ;;  %v8119_v58 = vor.u32 %v9961_v24, %v8116_v59  ;;  %v8422_v24 = vld [vmem:[%s15488_s7 + $0x548] sm:$0xf] }
 0x2bc   :  { %5838 = vmatpush.bf16.msrb.mxu2 %v8675_v33  ;;  %v7867_v33 = vor.u32 %v9898_v25, %v7864_v13  ;;  %v8088_v25 = vld [vmem:[%s15488_s7 + $0x2c4] sm:$0xf0]  ;;  %v9207_v18 = vor.u32 %v10237_v5, %v9206_v46  ;;  %v10041_v59 = vld [vmem:[%s15488_s7 + $0x560] sm:$0xf0] }
 0x2bd   :  { %v7752_v13 = vld [vmem:[%s15488_s7 + $0x24] sm:$0xf0] }
 0x2be   :  { %5810 = vmatpush.bf16.msrb.mxu0 %v8227_v11  ;;  %5768 = vmatpush.bf16.msra.mxu1 %v9343_v14  ;;  %v9870_v11 = vld [vmem:[%s15488_s7 + $0xc] sm:$0xf]  ;;  %v8844_v14 = vld [vmem:[%s15488_s7 + $0x8ac] sm:$0xf0]  ;;  %v7976_v5 = vld [vmem:[%s15488_s7 + $0x1e4] sm:$0xf0] }
 0x2bf   :  { %5852 = vmatpush.bf16.msrb.mxu3 %v8899_v21  ;;  %v8091_v21 = vor.u32 %v9954_v9, %v8088_v25  ;;  %v7755_v45 = vor.u32 %v9870_v11, %v7752_v13  ;;  %v10314_v9 = vld [vmem:[%s15488_s7 + $0xde8] sm:$0xf0]  ;;  %v10199_v25 = vld [vmem:[%s15488_s7 + $0xa54] sm:$0xf]  ;;  %v9068_v13 = vld [vmem:[%s15488_s7 + $0xa6c] sm:$0xf0] }
 0x2c0   :  { %5839 = vmatpush.bf16.msrb.mxu2 %v8647_v47  ;;  %v10251_v47 = vld [vmem:[%s15488_s7 + $0xbf0] sm:$0xf0]  ;;  %v9071_v17 = vor.u32 %v10199_v25, %v9068_v13  ;;  %v9916_v13 = vld [vmem:[%s15488_s7 + $0x178] sm:$0xf0] }
 0x2c1   :  { %v9263_v43 = vor.u32 %v10251_v47, %v9262_v16  ;;  %v9940_v47 = vld [vmem:[%s15488_s7 + $0x23c] sm:$0xf] }
 0x2c2   :  { %5811 = vmatpush.bf16.msrb.mxu0 %v8199_v31  ;;  %5769 = vmatpush.bf16.msra.mxu1 %v9315_v37  ;;  %v10136_v31 = vld [vmem:[%s15488_s7 + $0x85c] sm:$0xf]  ;;  %v10223_v37 = vld [vmem:[%s15488_s7 + $0xb10] sm:$0xf0] }
 0x2c3   :  { %5840 = vmatmul.bf16.vlgmr.msrb.gmra.mxu2 %v12986_v32  ;;  %5853 = vmatpush.bf16.msrb.mxu3 %v8871_v38  ;;  %v8478_v38 = vld [vmem:[%s15488_s7 + $0x5b8] sm:$0xf]  ;;  %v8819_v16 = vor.u32 %v10136_v31, %v8816_v3  ;;  %v10108_v31 = vld [vmem:[%s15488_s7 + $0x77c] sm:$0xf] }
 0x2c4   :  { %5888 = vmatpush.bf16.msra.mxu2 %v7951_v7  ;;  %v8590_v7 = vld [vmem:[%s15488_s7 + $0x698] sm:$0xf] }
 0x2c5   :  { %v8591_v0 = vor.u32 %v10083_v49, %v8590_v7  ;;  %5812 = vmatmul.bf16.vlgmr.msrb.gmra.mxu0 %v12859_v36  ;;  %5770 = vmatmul.bf16.vlgmr.msra.gmra.mxu1 %v13468_v55  ;;  %v10129_v7 = vld [vmem:[%s15488_s7 + $0x824] sm:$0xf]  ;;  %v8788_v49 = vld [vmem:[%s15488_s7 + $0x83c] sm:$0xf0]  ;;  %v8704_v3 = vld [vmem:[%s15488_s7 + $0x794] sm:$0xf0] }
 0x2c6   :  { %5860 = vmatpush.bf16.msra.mxu0 %v9291_v26  ;;  %5818 = vmatpush.bf16.msrb.mxu1 %v8619_v41  ;;  %v8063_v26 = vor.u32 %v9947_v28, %v8060_v29  ;;  %v10055_v41 = vld [vmem:[%s15488_s7 + $0x5d0] sm:$0xf0]  ;;  %v8791_v12 = vor.u32 %v10129_v7, %v8788_v49  ;;  %v10192_v29 = vld [vmem:[%s15488_s7 + $0xa1c] sm:$0xf]  ;;  %v10101_v7 = vld [vmem:[%s15488_s7 + $0x744] sm:$0xf] }
 0x2c7   :  { %5902 = vmatpush.bf16.msra.mxu3 %v8175_v48  ;;  %v8032_v48 = vld [vmem:[%s15488_s7 + $0x254] sm:$0xf0]  ;;  %v8479_v50 = vor.u32 %v10055_v41, %v8478_v38  ;;  %v10307_v28 = vld [vmem:[%s15488_s7 + $0xdb0] sm:$0xf0]  ;;  %v8707_v41 = vor.u32 %v10108_v31, %v8704_v3  ;;  %v8676_v49 = vld [vmem:[%s15488_s7 + $0x75c] sm:$0xf0] }
 0x2c8   :  { %5889 = vmatpush.bf16.msra.mxu2 %v7923_v42  ;;  %v8562_v42 = vld [vmem:[%s15488_s7 + $0x660] sm:$0xf]  ;;  %5854 = vmatmul.bf16.vlgmr.msrb.gmra.mxu3 %v13156_v44  ;;  %v8035_v52 = vor.u32 %v9940_v47, %v8032_v48  ;;  %v10300_v47 = vld [vmem:[%s15488_s7 + $0xd78] sm:$0xf0]  ;;  %v10185_v48 = vld [vmem:[%s15488_s7 + $0x9e4] sm:$0xf] }
 0x2c9   :  { %v8563_v4 = vor.u32 %v10076_v22, %v8562_v42  ;;  %v9123_v42 = vor.u32 %v10216_v23, %v9122_v51  ;;  %v8760_v22 = vld [vmem:[%s15488_s7 + $0x804] sm:$0xf0]  ;;  %v10010_v23 = vld [vmem:[%s15488_s7 + $0x46c] sm:$0xf]  ;;  %v8228_v31 = vld [vmem:[%s15488_s7 + $0x3dc] sm:$0xf0] }
 0x2ca   :  { %5861 = vmatpush.bf16.msra.mxu0 %v9263_v43  ;;  %5819 = vmatpush.bf16.msrb.mxu1 %v8591_v0  ;;  %v8450_v43 = vld [vmem:[%s15488_s7 + $0x580] sm:$0xf]  ;;  %v10048_v0 = vld [vmem:[%s15488_s7 + $0x598] sm:$0xf0] }
 0x2cb   :  { %5903 = vmatpush.bf16.msra.mxu3 %v8147_v61  ;;  %v8004_v61 = vld [vmem:[%s15488_s7 + $0x21c] sm:$0xf0]  ;;  %v8451_v60 = vor.u32 %v10048_v0, %v8450_v43  ;;  %v8679_v0 = vor.u32 %v10101_v7, %v8676_v49  ;;  %v9982_v49 = vld [vmem:[%s15488_s7 + $0x38c] sm:$0xf] }
 0x2cc   :  { %5890 = vmatpush.bf16.msra.mxu2 %v7895_v35  ;;  %v8534_v35 = vld [vmem:[%s15488_s7 + $0x628] sm:$0xf]  ;;  %v8007_v46 = vor.u32 %v9933_v53, %v8004_v61  ;;  %v10293_v53 = vld [vmem:[%s15488_s7 + $0xd40] sm:$0xf0]  ;;  %v10178_v61 = vld [vmem:[%s15488_s7 + $0x9ac] sm:$0xf] }
 0x2cd   :  { %v8535_v10 = vor.u32 %v10069_v8, %v8534_v35  ;;  %v9514_v8 = vld [vmem:[%s15488_s7 + $0xdd0] sm:$0xf] }
 0x2ce   :  { %5862 = vmatpush.bf16.msra.mxu0 %v9235_v2  ;;  %5820 = vmatpush.bf16.msrb.mxu1 %v8563_v4  ;;  %v10209_v2 = vld [vmem:[%s15488_s7 + $0xaa0] sm:$0xf0]  ;;  %v9926_v4 = vld [vmem:[%s15488_s7 + $0x1cc] sm:$0xf]  ;;  %v9515_v19 = vor.u32 %v10314_v9, %v9514_v8  ;;  %v10171_v8 = vld [vmem:[%s15488_s7 + $0x974] sm:$0xf] }
 0x2cf   :  { %5904 = vmatpush.bf16.msra.mxu3 %v8119_v58  ;;  %v10031_v58 = vld [vmem:[%s15488_s7 + $0x514] sm:$0xf]  ;;  %v9095_v11 = vor.u32 %v10209_v2, %v9094_v39  ;;  %v7979_v62 = vor.u32 %v9926_v4, %v7976_v5  ;;  %v8284_v4 = vld [vmem:[%s15488_s7 + $0x44c] sm:$0xf0] }
 0x2d0   :  { %5891 = vmatpush.bf16.msra.mxu2 %v7867_v33  ;;  %v8847_v33 = vor.u32 %v10143_v1, %v8844_v14  ;;  %v8732_v1 = vld [vmem:[%s15488_s7 + $0x7cc] sm:$0xf0]  ;;  %v8423_v14 = vor.u32 %v10041_v59, %v8422_v24  ;;  %v7954_v59 = vld [vmem:[%s15488_s7 + $0x198] sm:$0xf]  ;;  %v10003_v2 = vld [vmem:[%s15488_s7 + $0x434] sm:$0xf] }
 0x2d1   :  { %v8956_v9 = vld [vmem:[%s15488_s7 + $0x98c] sm:$0xf0]  ;;  %v8287_v25 = vor.u32 %v10003_v2, %v8284_v4 }
 0x2d2   :  { %5863 = vmatpush.bf16.msra.mxu0 %v9207_v18  ;;  %5821 = vmatpush.bf16.msrb.mxu1 %v8535_v10  ;;  %v10115_v18 = vld [vmem:[%s15488_s7 + $0x7b4] sm:$0xf] }
 0x2d3   :  { %5905 = vmatpush.bf16.msra.mxu3 %v8091_v21  ;;  %v10024_v21 = vld [vmem:[%s15488_s7 + $0x4dc] sm:$0xf]  ;;  %v8735_v27 = vor.u32 %v10115_v18, %v8732_v1 }
 0x2d4   :  { %5892 = vmatpush.bf16.msra.mxu2 %v7839_v34  ;;  %v9151_v34 = vor.u32 %v10223_v37, %v9150_v57  ;;  %v10017_v37 = vld [vmem:[%s15488_s7 + $0x4a4] sm:$0xf]  ;;  %v9996_v1 = vld [vmem:[%s15488_s7 + $0x3fc] sm:$0xf] }
 0x2d6   :  { %5864 = vmatpush.bf16.msra.mxu0 %v9179_v54  ;;  %5822 = vmatpush.bf16.msrb.mxu1 %v8507_v15  ;;  %v9040_v54 = vld [vmem:[%s15488_s7 + $0xa34] sm:$0xf0] }
 0x2d7   :  { %5906 = vmatpush.bf16.msra.mxu3 %v8063_v26  ;;  %v8340_v26 = vld [vmem:[%s15488_s7 + $0x4bc] sm:$0xf0]  ;;  %v9043_v38 = vor.u32 %v10192_v29, %v9040_v54  ;;  %v9989_v54 = vld [vmem:[%s15488_s7 + $0x3c4] sm:$0xf] }
 0x2d8   :  { %5893 = vmatpush.bf16.msra.mxu2 %v7811_v56  ;;  %v10122_v56 = vld [vmem:[%s15488_s7 + $0x7ec] sm:$0xf] }
 0x2d9   :  { %v8763_v35 = vor.u32 %v10122_v56, %v8760_v22  ;;  %v8984_v56 = vld [vmem:[%s15488_s7 + $0x9c4] sm:$0xf0] }
 0x2da   :  { %5865 = vmatpush.bf16.msra.mxu0 %v9151_v34  ;;  %5823 = vmatpush.bf16.msrb.mxu1 %v8479_v50  ;;  %v9012_v34 = vld [vmem:[%s15488_s7 + $0x9fc] sm:$0xf0]  ;;  %v8343_v50 = vor.u32 %v10017_v37, %v8340_v26  ;;  %v8648_v22 = vld [vmem:[%s15488_s7 + $0x724] sm:$0xf0]  ;;  %v10157_v26 = vld [vmem:[%s15488_s7 + $0x904] sm:$0xf] }
 0x2db   :  { %5907 = vmatpush.bf16.msra.mxu3 %v8035_v52  ;;  %v8312_v52 = vld [vmem:[%s15488_s7 + $0x484] sm:$0xf0]  ;;  %v9015_v43 = vor.u32 %v10185_v48, %v9012_v34  ;;  %v10265_v34 = vld [vmem:[%s15488_s7 + $0xc60] sm:$0xf0] }
 0x2dc   :  { %5894 = vmatpush.bf16.msra.mxu2 %v7783_v6  ;;  %v8396_v6 = vld [vmem:[%s15488_s7 + $0x52c] sm:$0xf0]  ;;  %v8315_v24 = vor.u32 %v10010_v23, %v8312_v52  ;;  %v9318_v48 = vld [vmem:[%s15488_s7 + $0xc48] sm:$0xf] }
 0x2dd   :  { %v8399_v10 = vor.u32 %v10031_v58, %v8396_v6  ;;  %v9402_v58 = vld [vmem:[%s15488_s7 + $0xcf0] sm:$0xf]  ;;  %v10286_v6 = vld [vmem:[%s15488_s7 + $0xd08] sm:$0xf0]  ;;  %v8872_v52 = vld [vmem:[%s15488_s7 + $0x8e4] sm:$0xf0] }
 0x2de   :  { %5866 = vmatpush.bf16.msra.mxu0 %v9123_v42  ;;  %5824 = vmatpush.bf16.msrb.mxu1 %v8451_v60  ;;  %v10094_v42 = vld [vmem:[%s15488_s7 + $0x70c] sm:$0xf]  ;;  %v9923_v60 = vld [vmem:[%s15488_s7 + $0x1b0] sm:$0xf0]  ;;  %v9403_v18 = vor.u32 %v10286_v6, %v9402_v58 }
 0x2df   :  { %5908 = vmatpush.bf16.msra.mxu3 %v8007_v46  ;;  %v8987_v46 = vor.u32 %v10178_v61, %v8984_v56  ;;  %v8651_v5 = vor.u32 %v10094_v42, %v8648_v22  ;;  %v8620_v61 = vld [vmem:[%s15488_s7 + $0x6ec] sm:$0xf0]  ;;  %v8178_v56 = vld [vmem:[%s15488_s7 + $0x358] sm:$0xf]  ;;  %v9979_v22 = vld [vmem:[%s15488_s7 + $0x370] sm:$0xf0] }
 0x2e0   :  { %5895 = vmatpush.bf16.msra.mxu2 %v7755_v45  ;;  %v8368_v45 = vld [vmem:[%s15488_s7 + $0x4f4] sm:$0xf0]  ;;  %v8179_v58 = vor.u32 %v9979_v22, %v8178_v56  ;;  %v9951_v22 = vld [vmem:[%s15488_s7 + $0x290] sm:$0xf0] }
 0x2e1   :  { %v8371_v15 = vor.u32 %v10024_v21, %v8368_v45  ;;  %v10164_v45 = vld [vmem:[%s15488_s7 + $0x93c] sm:$0xf] }
 0x2e2   :  { %5867 = vmatpush.bf16.msra.mxu0 %v9095_v11  ;;  %5825 = vmatpush.bf16.msrb.mxu1 %v8423_v14  ;;  %v7926_v11 = vld [vmem:[%s15488_s7 + $0x160] sm:$0xf]  ;;  %v8256_v14 = vld [vmem:[%s15488_s7 + $0x414] sm:$0xf0] }
 0x2e3   :  { %5896 = vmatmul.bf16.vlgmr.msra.gmra.mxu2 %v12759_v30  ;;  %5909 = vmatpush.bf16.msra.mxu3 %v7979_v62  ;;  %v9374_v62 = vld [vmem:[%s15488_s7 + $0xcb8] sm:$0xf]  ;;  %v7927_v21 = vor.u32 %v9916_v13, %v7926_v11  ;;  %v7814_v11 = vld [vmem:[%s15488_s7 + $0x80] sm:$0xf]  ;;  %v9888_v13 = vld [vmem:[%s15488_s7 + $0x98] sm:$0xf0] }
 0x2e4   :  { %5944 = vmatpush.bf16.msrb.mxu2 %v8847_v33  ;;  %v9486_v33 = vld [vmem:[%s15488_s7 + $0xd98] sm:$0xf] }
 0x2e5   :  { %v9487_v57 = vor.u32 %v10307_v28, %v9486_v33  ;;  %5826 = vmatmul.bf16.vlgmr.msrb.gmra.mxu1 %v12838_v40  ;;  %5868 = vmatmul.bf16.vlgmr.msra.gmra.mxu0 %v13320_v20  ;;  %v7898_v33 = vld [vmem:[%s15488_s7 + $0x128] sm:$0xf]  ;;  %v9909_v28 = vld [vmem:[%s15488_s7 + $0x140] sm:$0xf0] }
 0x2e6   :  { %5916 = vmatpush.bf16.msrb.mxu0 %v8399_v10  ;;  %5874 = vmatpush.bf16.msra.mxu1 %v9515_v19  ;;  %v8959_v10 = vor.u32 %v10171_v8, %v8956_v9  ;;  %v10279_v19 = vld [vmem:[%s15488_s7 + $0xcd0] sm:$0xf0]  ;;  %v7899_v37 = vor.u32 %v9909_v28, %v7898_v33  ;;  %v8592_v8 = vld [vmem:[%s15488_s7 + $0x6b4] sm:$0xf0]  ;;  %v8150_v9 = vld [vmem:[%s15488_s7 + $0x320] sm:$0xf] }
 0x2e7   :  { %5958 = vmatpush.bf16.msrb.mxu3 %v9071_v17  ;;  %v8928_v17 = vld [vmem:[%s15488_s7 + $0x954] sm:$0xf0]  ;;  %v9375_v29 = vor.u32 %v10279_v19, %v9374_v62  ;;  %v14089_v62 = vpop.f32.mrf.mxu2  ;;  %v9965_v33 = vld [vmem:[%s15488_s7 + $0x300] sm:$0xf0]  ;;  %v7786_v28 = vld [vmem:[%s15488_s7 + $0x48] sm:$0xf] }
 0x2e8   :  { %5945 = vmatpush.bf16.msrb.mxu2 %v8819_v16  ;;  %v9458_v16 = vld [vmem:[%s15488_s7 + $0xd60] sm:$0xf]  ;;  %5910 = vmatmul.bf16.vlgmr.msra.gmra.mxu3 %v12715_v63  ;;  %v8931_v3 = vor.u32 %v10164_v45, %v8928_v17  ;;  %v10073_v45 = vld [vmem:[%s15488_s7 + $0x664] sm:$0xf] }
 0x2e9   :  { %v9459_v51 = vor.u32 %v10300_v47, %v9458_v16  ;;  %v8231_v16 = vor.u32 %v9989_v54, %v8228_v31  ;;  %v9902_v47 = vld [vmem:[%s15488_s7 + $0x108] sm:$0xf0]  ;;  %v8564_v17 = vld [vmem:[%s15488_s7 + $0x67c] sm:$0xf0]  ;;  %v14111_v54 = vpop.f32.mrf.mxu3 }
 0x2ea   :  { %5917 = vmatpush.bf16.msrb.mxu0 %v8371_v15  ;;  %5875 = vmatpush.bf16.msra.mxu1 %v9487_v57  ;;  %v9346_v15 = vld [vmem:[%s15488_s7 + $0xc80] sm:$0xf]  ;;  %v10272_v57 = vld [vmem:[%s15488_s7 + $0xc98] sm:$0xf0] }
 0x2eb   :  { %5959 = vmatpush.bf16.msrb.mxu3 %v9043_v38  ;;  %v8900_v38 = vld [vmem:[%s15488_s7 + $0x91c] sm:$0xf0]  ;;  %v9347_v7 = vor.u32 %v10272_v57, %v9346_v15  ;;  %v10234_v15 = vld [vmem:[%s15488_s7 + $0xb6c] sm:$0xf]  ;;  %v9208_v57 = vld [vmem:[%s15488_s7 + $0xb84] sm:$0xf0] }
 0x2ec   :  { %5946 = vmatpush.bf16.msrb.mxu2 %v8791_v12  ;;  %v9430_v12 = vld [vmem:[%s15488_s7 + $0xd28] sm:$0xf]  ;;  %v8903_v23 = vor.u32 %v10157_v26, %v8900_v38  ;;  %v10066_v38 = vld [vmem:[%s15488_s7 + $0x62c] sm:$0xf] }
 0x2ed   :  { %v9431_v39 = vor.u32 %v10293_v53, %v9430_v12  ;;  %v10087_v53 = vld [vmem:[%s15488_s7 + $0x6d4] sm:$0xf] }
 0x2ee   :  { %5918 = vmatpush.bf16.msrb.mxu0 %v8343_v50  ;;  %5876 = vmatpush.bf16.msra.mxu1 %v9459_v51  ;;  %v8200_v50 = vld [vmem:[%s15488_s7 + $0x3a4] sm:$0xf0]  ;;  %v10150_v51 = vld [vmem:[%s15488_s7 + $0x8cc] sm:$0xf]  ;;  %v8623_v4 = vor.u32 %v10087_v53, %v8620_v61  ;;  %v10059_v53 = vld [vmem:[%s15488_s7 + $0x5f4] sm:$0xf] }
 0x2ef   :  { %5960 = vmatpush.bf16.msrb.mxu3 %v9015_v43  ;;  %v10255_v43 = vld [vmem:[%s15488_s7 + $0xc14] sm:$0xf]  ;;  %v8203_v42 = vor.u32 %v9982_v49, %v8200_v50  ;;  %v8875_v2 = vor.u32 %v10150_v51, %v8872_v52  ;;  %v9211_v49 = vor.u32 %v10234_v15, %v9208_v57  ;;  %v8850_v50 = vld [vmem:[%s15488_s7 + $0x898] sm:$0xf]  ;;  %v8508_v61 = vld [vmem:[%s15488_s7 + $0x60c] sm:$0xf0] }
 0x2f0   :  { %5947 = vmatpush.bf16.msrb.mxu2 %v8763_v35  ;;  %v7955_v35 = vor.u32 %v9923_v60, %v7954_v59  ;;  %v9895_v59 = vld [vmem:[%s15488_s7 + $0xd0] sm:$0xf0]  ;;  %v9319_v60 = vor.u32 %v10265_v34, %v9318_v48  ;;  %v7758_v48 = vld [vmem:[%s15488_s7 + $0x10] sm:$0xf]  ;;  %v9874_v34 = vld [vmem:[%s15488_s7 + $0x28] sm:$0xf0] }
 0x2f1   :  { %v10147_v51 = vld [vmem:[%s15488_s7 + $0x8b0] sm:$0xf0]  ;;  %v10126_v57 = vld [vmem:[%s15488_s7 + $0x808] sm:$0xf0] }
 0x2f2   :  { %5919 = vmatpush.bf16.msrb.mxu0 %v8315_v24  ;;  %5877 = vmatpush.bf16.msra.mxu1 %v9431_v39  ;;  %v7842_v24 = vld [vmem:[%s15488_s7 + $0xb8] sm:$0xf]  ;;  %v10227_v52 = vld [vmem:[%s15488_s7 + $0xb34] sm:$0xf]  ;;  %v8851_v56 = vor.u32 %v10147_v51, %v8850_v50 }
 0x2f3   :  { %5961 = vmatpush.bf16.msrb.mxu3 %v8987_v46  ;;  %v10248_v46 = vld [vmem:[%s15488_s7 + $0xbdc] sm:$0xf]  ;;  %v7843_v6 = vor.u32 %v9895_v59, %v7842_v24  ;;  %v14164_v24 = vpop.f32.mrf.mxu2  ;;  %v8402_v50 = vld [vmem:[%s15488_s7 + $0x518] sm:$0xf]  ;;  %v10035_v51 = vld [vmem:[%s15488_s7 + $0x530] sm:$0xf0] }
 0x2f4   :  { %5948 = vmatpush.bf16.msrb.mxu2 %v8735_v27  ;;  %v8259_v27 = vor.u32 %v9996_v1, %v8256_v14  ;;  %v10241_v14 = vld [vmem:[%s15488_s7 + $0xba4] sm:$0xf] }
 0x2f6   :  { %5920 = vmatpush.bf16.msrb.mxu0 %v8287_v25  ;;  %5878 = vmatpush.bf16.msra.mxu1 %v9403_v18  ;;  %v9972_v25 = vld [vmem:[%s15488_s7 + $0x338] sm:$0xf0] }
 0x2f7   :  { %5962 = vmatpush.bf16.msrb.mxu3 %v8959_v10  ;;  %v9236_v10 = vld [vmem:[%s15488_s7 + $0xbbc] sm:$0xf0]  ;;  %v8151_v19 = vor.u32 %v9972_v25, %v8150_v9  ;;  %v9944_v25 = vld [vmem:[%s15488_s7 + $0x258] sm:$0xf0] }
 0x2f8   :  { %5949 = vmatpush.bf16.msrb.mxu2 %v8707_v41  ;;  %v7870_v41 = vld [vmem:[%s15488_s7 + $0xf0] sm:$0xf]  ;;  %v9239_v31 = vor.u32 %v10241_v14, %v9236_v10  ;;  %v8038_v9 = vld [vmem:[%s15488_s7 + $0x240] sm:$0xf]  ;;  %v10213_v14 = vld [vmem:[%s15488_s7 + $0xac4] sm:$0xf] }
 0x2f9   :  { %v7871_v12 = vor.u32 %v9902_v47, %v7870_v41  ;;  %v8536_v41 = vld [vmem:[%s15488_s7 + $0x644] sm:$0xf0]  ;;  %v9958_v47 = vld [vmem:[%s15488_s7 + $0x2c8] sm:$0xf0]  ;;  %v9124_v10 = vld [vmem:[%s15488_s7 + $0xadc] sm:$0xf0] }
 0x2fa   :  { %5921 = vmatpush.bf16.msrb.mxu0 %v8259_v27  ;;  %5879 = vmatpush.bf16.msra.mxu1 %v9375_v29  ;;  %v8122_v27 = vld [vmem:[%s15488_s7 + $0x2e8] sm:$0xf]  ;;  %v9881_v29 = vld [vmem:[%s15488_s7 + $0x60] sm:$0xf0]  ;;  %v9127_v15 = vor.u32 %v10213_v14, %v9124_v10 }
 0x2fb   :  { %5963 = vmatpush.bf16.msrb.mxu3 %v8931_v3  ;;  %v8567_v3 = vor.u32 %v10073_v45, %v8564_v17  ;;  %v7787_v26 = vor.u32 %v9881_v29, %v7786_v28  ;;  %v10045_v45 = vld [vmem:[%s15488_s7 + $0x584] sm:$0xf]  ;;  %v8452_v17 = vld [vmem:[%s15488_s7 + $0x59c] sm:$0xf0]  ;;  %v8766_v29 = vld [vmem:[%s15488_s7 + $0x7f0] sm:$0xf] }
 0x2fc   :  { %5950 = vmatpush.bf16.msrb.mxu2 %v8679_v0  ;;  %v9292_v0 = vld [vmem:[%s15488_s7 + $0xc2c] sm:$0xf0]  ;;  %v9937_v28 = vld [vmem:[%s15488_s7 + $0x220] sm:$0xf0]  ;;  %v8346_v10 = vld [vmem:[%s15488_s7 + $0x4a8] sm:$0xf] }
 0x2fd   :  { %v9295_v39 = vor.u32 %v10255_v43, %v9292_v0  ;;  %v9180_v43 = vld [vmem:[%s15488_s7 + $0xb4c] sm:$0xf0] }
 0x2fe   :  { %5922 = vmatpush.bf16.msrb.mxu0 %v8231_v16  ;;  %5880 = vmatpush.bf16.msra.mxu1 %v9347_v7  ;;  %v8094_v16 = vld [vmem:[%s15488_s7 + $0x2b0] sm:$0xf]  ;;  %v14138_v7 = vpop.f32.mrf.mxu0  ;;  %v9183_v59 = vor.u32 %v10227_v52, %v9180_v43  ;;  %v10311_v52 = vld [vmem:[%s15488_s7 + $0xdd4] sm:$0xf] }
 0x2ff   :  { %5964 = vmatpush.bf16.msrb.mxu3 %v8903_v23  ;;  %v8539_v23 = vor.u32 %v10066_v38, %v8536_v41  ;;  %v8095_v0 = vor.u32 %v9958_v47, %v8094_v16  ;;  %v8455_v38 = vor.u32 %v10045_v45, %v8452_v17  ;;  %v10206_v41 = vld [vmem:[%s15488_s7 + $0xa8c] sm:$0xf]  ;;  %v9096_v16 = vld [vmem:[%s15488_s7 + $0xaa4] sm:$0xf0]  ;;  %v7982_v47 = vld [vmem:[%s15488_s7 + $0x1d0] sm:$0xf] }
 0x300   :  { %5951 = vmatpush.bf16.msrb.mxu2 %v8651_v5  ;;  %v9264_v5 = vld [vmem:[%s15488_s7 + $0xbf4] sm:$0xf0]  ;;  %v9516_v43 = vld [vmem:[%s15488_s7 + $0xdec] sm:$0xf0] }
 0x301   :  { %v9267_v18 = vor.u32 %v10248_v46, %v9264_v5  ;;  %v9152_v46 = vld [vmem:[%s15488_s7 + $0xb14] sm:$0xf0]  ;;  %v14178_v5 = vpop.f32.mrf.mxu3 }
 0x302   :  { %5923 = vmatpush.bf16.msrb.mxu0 %v8203_v42  ;;  %5881 = vmatpush.bf16.msra.mxu1 %v9319_v60  ;;  %v8066_v42 = vld [vmem:[%s15488_s7 + $0x278] sm:$0xf]  ;;  %v8822_v60 = vld [vmem:[%s15488_s7 + $0x860] sm:$0xf] }
 0x303   :  { %5952 = vmatmul.bf16.vlgmr.msrb.gmra.mxu2 %v12986_v32  ;;  %5965 = vmatpush.bf16.msrb.mxu3 %v8875_v2  ;;  %v8511_v2 = vor.u32 %v10059_v53, %v8508_v61  ;;  %v10203_v53 = vld [vmem:[%s15488_s7 + $0xa70] sm:$0xf0]  ;;  %v8738_v61 = vld [vmem:[%s15488_s7 + $0x7b8] sm:$0xf] }
 0x304   :  { %6000 = vmatpush.bf16.msra.mxu2 %v7955_v35  ;;  %v10080_v35 = vld [vmem:[%s15488_s7 + $0x69c] sm:$0xf] }
 0x305   :  { %v8595_v1 = vor.u32 %v10080_v35, %v8592_v8  ;;  %5882 = vmatmul.bf16.vlgmr.msra.gmra.mxu1 %v13468_v55  ;;  %5924 = vmatmul.bf16.vlgmr.msrb.gmra.mxu0 %v12859_v36  ;;  %v8480_v35 = vld [vmem:[%s15488_s7 + $0x5d4] sm:$0xf0] }
 0x306   :  { %5972 = vmatpush.bf16.msra.mxu0 %v9295_v39  ;;  %5930 = vmatpush.bf16.msrb.mxu1 %v8623_v4  ;;  %v10140_v39 = vld [vmem:[%s15488_s7 + $0x878] sm:$0xf0] }
 0x307   :  { %6014 = vmatpush.bf16.msra.mxu3 %v8179_v58  ;;  %v10220_v4 = vld [vmem:[%s15488_s7 + $0xafc] sm:$0xf]  ;;  %v8067_v58 = vor.u32 %v9951_v22, %v8066_v42  ;;  %v8823_v8 = vor.u32 %v10140_v39, %v8822_v60  ;;  %v8403_v22 = vor.u32 %v10035_v51, %v8402_v50  ;;  %v9519_v39 = vor.u32 %v10311_v52, %v9516_v43  ;;  %v9432_v50 = vld [vmem:[%s15488_s7 + $0xd44] sm:$0xf0]  ;;  %v8990_v51 = vld [vmem:[%s15488_s7 + $0x9b0] sm:$0xf] }
 0x308   :  { %6001 = vmatpush.bf16.msra.mxu2 %v7927_v21  ;;  %v7815_v21 = vor.u32 %v9888_v13, %v7814_v11  ;;  %5966 = vmatmul.bf16.vlgmr.msrb.gmra.mxu3 %v13156_v44  ;;  %v9155_v11 = vor.u32 %v10220_v4, %v9152_v46  ;;  %v8794_v13 = vld [vmem:[%s15488_s7 + $0x828] sm:$0xf]  ;;  %v10028_v4 = vld [vmem:[%s15488_s7 + $0x4f8] sm:$0xf0]  ;;  %v10182_v52 = vld [vmem:[%s15488_s7 + $0x9c8] sm:$0xf0] }
 0x309   :  { %v8654_v43 = vld [vmem:[%s15488_s7 + $0x710] sm:$0xf] }
 0x30a   :  { %5973 = vmatpush.bf16.msra.mxu0 %v9267_v18  ;;  %5931 = vmatpush.bf16.msrb.mxu1 %v8595_v1  ;;  %v10133_v18 = vld [vmem:[%s15488_s7 + $0x840] sm:$0xf0] }
 0x30b   :  { %6015 = vmatpush.bf16.msra.mxu3 %v8151_v19  ;;  %v14205_v19 = vpop.f32.mrf.mxu0 }
 0x30c   :  { %6002 = vmatpush.bf16.msra.mxu2 %v7899_v37  ;;  %v8123_v37 = vor.u32 %v9965_v33, %v8122_v27  ;;  %v8795_v27 = vor.u32 %v10133_v18, %v8794_v13  ;;  %v8010_v33 = vld [vmem:[%s15488_s7 + $0x208] sm:$0xf] }
 0x30e   :  { %5974 = vmatpush.bf16.msra.mxu0 %v9239_v31  ;;  %5932 = vmatpush.bf16.msrb.mxu1 %v8567_v3  ;;  %v14222_v31 = vpop.f32.mrf.mxu1  ;;  %v14224_v3 = vpop.f32.mrf.mxu2 }
 0x30f   :  { %6016 = vmatpush.bf16.msra.mxu3 %v8123_v37  ;;  %v10038_v37 = vld [vmem:[%s15488_s7 + $0x54c] sm:$0xf] }
 0x310   :  { %6003 = vmatpush.bf16.msra.mxu2 %v7871_v12  ;;  %v7759_v12 = vor.u32 %v9874_v34, %v7758_v48  ;;  %v14244_v48 = vpop.f32.mrf.mxu3  ;;  %v8011_v34 = vor.u32 %v9937_v28, %v8010_v33  ;;  %v9460_v33 = vld [vmem:[%s15488_s7 + $0xd7c] sm:$0xf0]  ;;  %v9018_v28 = vld [vmem:[%s15488_s7 + $0x9e8] sm:$0xf] }
 0x312   :  { %5975 = vmatpush.bf16.msra.mxu0 %v9211_v49  ;;  %5933 = vmatpush.bf16.msrb.mxu1 %v8539_v23  ;;  %v9930_v49 = vld [vmem:[%s15488_s7 + $0x1e8] sm:$0xf0]  ;;  %v8767_v23 = vor.u32 %v10126_v57, %v8766_v29  ;;  %v8682_v57 = vld [vmem:[%s15488_s7 + $0x748] sm:$0xf] }
 0x313   :  { %6017 = vmatpush.bf16.msra.mxu3 %v8095_v0  ;;  %v9074_v0 = vld [vmem:[%s15488_s7 + $0xa58] sm:$0xf]  ;;  %v7983_v60 = vor.u32 %v9930_v49, %v7982_v47  ;;  %v10290_v49 = vld [vmem:[%s15488_s7 + $0xd2c] sm:$0xf] }
 0x314   :  { %6004 = vmatpush.bf16.msra.mxu2 %v7843_v6  ;;  %v10052_v6 = vld [vmem:[%s15488_s7 + $0x5bc] sm:$0xf]  ;;  %v9075_v46 = vor.u32 %v10203_v53, %v9074_v0  ;;  %v10098_v0 = vld [vmem:[%s15488_s7 + $0x728] sm:$0xf0] }
 0x315   :  { %v8483_v1 = vor.u32 %v10052_v6, %v8480_v35  ;;  %v10304_v6 = vld [vmem:[%s15488_s7 + $0xd9c] sm:$0xf]  ;;  %v9488_v35 = vld [vmem:[%s15488_s7 + $0xdb4] sm:$0xf0] }
 0x316   :  { %5976 = vmatpush.bf16.msra.mxu0 %v9183_v59  ;;  %5934 = vmatpush.bf16.msrb.mxu1 %v8511_v2  ;;  %v14273_v59 = vpop.f32.mrf.mxu0  ;;  %v8374_v2 = vld [vmem:[%s15488_s7 + $0x4e0] sm:$0xf]  ;;  %v14299_v18 = vpop.f32.mrf.mxu1  ;;  %v9491_v14 = vor.u32 %v10304_v6, %v9488_v35  ;;  %v9920_v53 = vld [vmem:[%s15488_s7 + $0x19c] sm:$0xf]  ;;  %v8962_v35 = vld [vmem:[%s15488_s7 + $0x978] sm:$0xf] }
 0x317   :  { %6018 = vmatpush.bf16.msra.mxu3 %v8067_v58  ;;  %v8375_v13 = vor.u32 %v10028_v4, %v8374_v2  ;;  %v8655_v2 = vor.u32 %v10098_v0, %v8654_v43  ;;  %v10283_v4 = vld [vmem:[%s15488_s7 + $0xcf4] sm:$0xf]  ;;  %v10269_v43 = vld [vmem:[%s15488_s7 + $0xc84] sm:$0xf]  ;;  %v9348_v0 = vld [vmem:[%s15488_s7 + $0xc9c] sm:$0xf0] }
 0x318   :  { %6005 = vmatpush.bf16.msra.mxu2 %v7815_v21  ;;  %v8039_v21 = vor.u32 %v9944_v25, %v8038_v9  ;;  %v10196_v9 = vld [vmem:[%s15488_s7 + $0xa38] sm:$0xf0]  ;;  %v8710_v25 = vld [vmem:[%s15488_s7 + $0x780] sm:$0xf]  ;;  %v14318_v29 = vpop.f32.mrf.mxu3 }
 0x31a   :  { %5977 = vmatpush.bf16.msra.mxu0 %v9155_v11  ;;  %5935 = vmatpush.bf16.msrb.mxu1 %v8483_v1  ;;  %v10112_v11 = vld [vmem:[%s15488_s7 + $0x798] sm:$0xf0]  ;;  %v14301_v1 = vpop.f32.mrf.mxu2 }
 0x31b   :  { %6019 = vmatpush.bf16.msra.mxu3 %v8039_v21  ;;  %v10021_v21 = vld [vmem:[%s15488_s7 + $0x4c0] sm:$0xf0]  ;;  %v8711_v17 = vor.u32 %v10112_v11, %v8710_v25  ;;  %v7928_v11 = vld [vmem:[%s15488_s7 + $0x17c] sm:$0xf0] }
 0x31c   :  { %6006 = vmatpush.bf16.msra.mxu2 %v7787_v26  ;;  %v8424_v26 = vld [vmem:[%s15488_s7 + $0x564] sm:$0xf0]  ;;  %v9913_v25 = vld [vmem:[%s15488_s7 + $0x164] sm:$0xf] }
 0x31d   :  { %v8427_v42 = vor.u32 %v10038_v37, %v8424_v26  ;;  %v10105_v37 = vld [vmem:[%s15488_s7 + $0x760] sm:$0xf0]  ;;  %v8347_v26 = vor.u32 %v10021_v21, %v8346_v10  ;;  %v8262_v10 = vld [vmem:[%s15488_s7 + $0x400] sm:$0xf]  ;;  %v10000_v21 = vld [vmem:[%s15488_s7 + $0x418] sm:$0xf0] }
 0x31e   :  { %5978 = vmatpush.bf16.msra.mxu0 %v9127_v15  ;;  %5936 = vmatpush.bf16.msrb.mxu1 %v8455_v38  ;;  %v10189_v15 = vld [vmem:[%s15488_s7 + $0xa00] sm:$0xf0] }
 0x31f   :  { %6020 = vmatpush.bf16.msra.mxu3 %v8011_v34  ;;  %v9019_v47 = vor.u32 %v10189_v15, %v9018_v28  ;;  %v8683_v34 = vor.u32 %v10105_v37, %v8682_v57  ;;  %v7931_v28 = vor.u32 %v9913_v25, %v7928_v11  ;;  %v8934_v15 = vld [vmem:[%s15488_s7 + $0x940] sm:$0xf]  ;;  %v10168_v57 = vld [vmem:[%s15488_s7 + $0x958] sm:$0xf0]  ;;  %v8263_v37 = vor.u32 %v10000_v21, %v8262_v10  ;;  %v10154_v11 = vld [vmem:[%s15488_s7 + $0x8e8] sm:$0xf0] }
 0x320   :  { %6007 = vmatpush.bf16.msra.mxu2 %v7759_v12  ;;  %v9099_v12 = vor.u32 %v10206_v41, %v9096_v16  ;;  %v8318_v41 = vld [vmem:[%s15488_s7 + $0x470] sm:$0xf]  ;;  %v10014_v16 = vld [vmem:[%s15488_s7 + $0x488] sm:$0xf0]  ;;  %v10259_v10 = vld [vmem:[%s15488_s7 + $0xc30] sm:$0xf0] }
 0x322   :  { %5979 = vmatpush.bf16.msra.mxu0 %v9099_v12  ;;  %5937 = vmatpush.bf16.msrb.mxu1 %v8427_v42  ;;  %v8319_v12 = vor.u32 %v10014_v16, %v8318_v41  ;;  %v9435_v42 = vor.u32 %v10290_v49, %v9432_v50  ;;  %v9993_v49 = vld [vmem:[%s15488_s7 + $0x3e0] sm:$0xf0] }
 0x323   :  { %6008 = vmatmul.bf16.vlgmr.msra.gmra.mxu2 %v12759_v30  ;;  %6021 = vmatpush.bf16.msra.mxu3 %v7983_v60  ;;  %v10007_v60 = vld [vmem:[%s15488_s7 + $0x450] sm:$0xf0] }
 0x324   :  { %6056 = vmatpush.bf16.msrb.mxu2 %v8851_v56  ;;  %v10119_v56 = vld [vmem:[%s15488_s7 + $0x7d0] sm:$0xf0] }
 0x325   :  { %v8739_v58 = vor.u32 %v10119_v56, %v8738_v61  ;;  %5938 = vmatmul.bf16.vlgmr.msrb.gmra.mxu1 %v12838_v40  ;;  %5980 = vmatmul.bf16.vlgmr.msra.gmra.mxu0 %v13320_v20  ;;  %v7956_v61 = vld [vmem:[%s15488_s7 + $0x1b4] sm:$0xf0]  ;;  %v14364_v56 = vpop.f32.mrf.mxu1 }
 0x326   :  { %6028 = vmatpush.bf16.msrb.mxu0 %v8403_v22  ;;  %5986 = vmatpush.bf16.msra.mxu1 %v9519_v39  ;;  %v8290_v22 = vld [vmem:[%s15488_s7 + $0x438] sm:$0xf]  ;;  %v8991_v39 = vor.u32 %v10182_v52, %v8990_v51  ;;  %v7959_v6 = vor.u32 %v9920_v53, %v7956_v61  ;;  %v8935_v52 = vor.u32 %v10168_v57, %v8934_v15  ;;  %v8906_v53 = vld [vmem:[%s15488_s7 + $0x908] sm:$0xf]  ;;  %v10161_v61 = vld [vmem:[%s15488_s7 + $0x920] sm:$0xf0] }
 0x327   :  { %6070 = vmatpush.bf16.msrb.mxu3 %v9075_v46  ;;  %v9404_v46 = vld [vmem:[%s15488_s7 + $0xd0c] sm:$0xf0]  ;;  %v8907_v25 = vor.u32 %v10161_v61, %v8906_v53 }
 0x328   :  { %6057 = vmatpush.bf16.msrb.mxu2 %v8823_v8  ;;  %v9046_v8 = vld [vmem:[%s15488_s7 + $0xa20] sm:$0xf]  ;;  %6022 = vmatmul.bf16.vlgmr.msra.gmra.mxu3 %v12715_v63 }
 0x329   :  { %v9047_v45 = vor.u32 %v10196_v9, %v9046_v8  ;;  %v10175_v8 = vld [vmem:[%s15488_s7 + $0x990] sm:$0xf0]  ;;  %v8291_v9 = vor.u32 %v10007_v60, %v8290_v22  ;;  %v7872_v60 = vld [vmem:[%s15488_s7 + $0x10c] sm:$0xf0] }
 0x32a   :  { %6029 = vmatpush.bf16.msrb.mxu0 %v8375_v13  ;;  %5987 = vmatpush.bf16.msra.mxu1 %v9491_v14  ;;  %v5687_v13 = vpop.f32.mrf.mxu3  ;;  %v9407_v14 = vor.u32 %v10283_v4, %v9404_v46  ;;  %v9351_v46 = vor.u32 %v10269_v43, %v9348_v0  ;;  %v9270_v43 = vld [vmem:[%s15488_s7 + $0xbe0] sm:$0xf]  ;;  %v10252_v0 = vld [vmem:[%s15488_s7 + $0xbf8] sm:$0xf0] }
 0x32b   :  { %6071 = vmatpush.bf16.msrb.mxu3 %v9047_v45  ;;  %v8963_v45 = vor.u32 %v10175_v8, %v8962_v35  ;;  %v9986_v35 = vld [vmem:[%s15488_s7 + $0x3a8] sm:$0xf0]  ;;  %v8878_v8 = vld [vmem:[%s15488_s7 + $0x8d0] sm:$0xf] }
 0x32c   :  { %6058 = vmatpush.bf16.msrb.mxu2 %v8795_v27  ;;  %v10297_v27 = vld [vmem:[%s15488_s7 + $0xd64] sm:$0xf] }
 0x32d   :  { %v9463_v38 = vor.u32 %v10297_v27, %v9460_v33  ;;  %v9376_v27 = vld [vmem:[%s15488_s7 + $0xcd4] sm:$0xf0]  ;;  %v14405_v33 = vld [vmem:[%s15490_s8] sm:$0xff]  ;;  %v14420_v16 = vpop.f32.mrf.mxu1 }
 0x32e   :  { %6030 = vmatpush.bf16.msrb.mxu0 %v8347_v26  ;;  %v9906_v26 = vld [vmem:[%s15488_s7 + $0x12c] sm:$0xf]  ;;  %v3234_v50 = vperm.slane %v14405_v33, 0  ;;  %v3235_v51 = vperm.slane %v14405_v33, 1  ;;  %v7788_v33 = vld [vmem:[%s15488_s7 + $0x64] sm:$0xf0] }
 0x32f   :  { %5988 = vmatpush.bf16.msra.mxu1 %v9463_v38  ;;  %6072 = vmatpush.bf16.msrb.mxu3 %v9019_v47  ;;  %v7900_v38 = vld [vmem:[%s15488_s7 + $0x144] sm:$0xf0] }
 0x330   :  { %6059 = vmatpush.bf16.msrb.mxu2 %v8767_v23  ;;  %v14347_v23 = vpop.f32.mrf.mxu0 }
 0x332   :  { %6031 = vmatpush.bf16.msrb.mxu0 %v8319_v12  ;;  %v7903_v12 = vor.u32 %v9906_v26, %v7900_v38  ;;  %v5689_v21 = vpop.f32.mrf.mxu3  ;;  %v9892_v26 = vld [vmem:[%s15488_s7 + $0xbc] sm:$0xf]  ;;  %v7844_v38 = vld [vmem:[%s15488_s7 + $0xd4] sm:$0xf0] }
 0x333   :  { %5989 = vmatpush.bf16.msra.mxu1 %v9435_v42  ;;  %6073 = vmatpush.bf16.msrb.mxu3 %v8991_v39  ;;  %v9899_v42 = vld [vmem:[%s15488_s7 + $0xf4] sm:$0xf]  ;;  %v10262_v39 = vld [vmem:[%s15488_s7 + $0xc4c] sm:$0xf]  ;;  %v7847_v61 = vor.u32 %v9892_v26, %v7844_v38  ;;  %v9214_v38 = vld [vmem:[%s15488_s7 + $0xb70] sm:$0xf] }
 0x334   :  { %6060 = vmatpush.bf16.msrb.mxu2 %v8739_v58  ;;  %v5673_v58 = vpop.f32.mrf.mxu2 }
 0x336   :  { %6032 = vmatpush.bf16.msrb.mxu0 %v8291_v9  ;;  %v5674_v9 = vadd.f32 %v5673_v58, %v3235_v51  ;;  %v8626_v58 = vld [vmem:[%s15488_s7 + $0x6d8] sm:$0xf] }
 0x337   :  { %5990 = vmatpush.bf16.msra.mxu1 %v9407_v14  ;;  %6074 = vmatpush.bf16.msrb.mxu3 %v8963_v45  ;;  %v9298_v14 = vld [vmem:[%s15488_s7 + $0xc18] sm:$0xf]  ;;  %v7875_v45 = vor.u32 %v9899_v42, %v7872_v60  ;;  %v8598_v42 = vld [vmem:[%s15488_s7 + $0x6a0] sm:$0xf] }
 0x338   :  { %6061 = vmatpush.bf16.msrb.mxu2 %v8711_v17  ;;  %v10276_v17 = vld [vmem:[%s15488_s7 + $0xcbc] sm:$0xf]  ;;  %v5701_v41 = vpop.f32.mrf.mxu0  ;;  %v5688_v15 = vadd.f32 %v5687_v13, %v5674_v9  ;;  %v8879_v13 = vor.u32 %v10154_v11, %v8878_v8  ;;  %v9271_v8 = vor.u32 %v10252_v0, %v9270_v43  ;;  %v9242_v11 = vld [vmem:[%s15488_s7 + $0xba8] sm:$0xf] }
 0x339   :  { %v9379_v47 = vor.u32 %v10276_v17, %v9376_v27  ;;  %v10091_v17 = vld [vmem:[%s15488_s7 + $0x6f0] sm:$0xf0]  ;;  %v9976_v27 = vld [vmem:[%s15488_s7 + $0x35c] sm:$0xf] }
 0x33a   :  { %6033 = vmatpush.bf16.msrb.mxu0 %v8263_v37  ;;  %v8180_v37 = vld [vmem:[%s15488_s7 + $0x374] sm:$0xf0] }
 0x33b   :  { %5991 = vmatpush.bf16.msra.mxu1 %v9379_v47  ;;  %6075 = vmatpush.bf16.msrb.mxu3 %v8935_v52  ;;  %v5715_v47 = vpop.f32.mrf.mxu1  ;;  %v8627_v52 = vor.u32 %v10091_v17, %v8626_v58  ;;  %v8183_v53 = vor.u32 %v9976_v27, %v8180_v37  ;;  %v5564_v58 = vadd.f32 %v14164_v24, %v3234_v50 }
 0x33c   :  { %6062 = vmatpush.bf16.msrb.mxu2 %v8683_v34  ;;  %v8234_v34 = vld [vmem:[%s15488_s7 + $0x3c8] sm:$0xf]  ;;  %v5675_v4 = vpop.f32.mrf.mxu2 }
 0x33d   :  { %v8235_v22 = vor.u32 %v9993_v49, %v8234_v34  ;;  %v9299_v49 = vor.u32 %v10259_v10, %v9298_v14  ;;  %v5676_v9 = vadd.f32 %v5675_v4, %v3235_v51  ;;  %v10245_v14 = vld [vmem:[%s15488_s7 + $0xbc0] sm:$0xf0]  ;;  %v9962_v4 = vld [vmem:[%s15488_s7 + $0x2ec] sm:$0xf] }
 0x33e   :  { %v10077_v51 = vld [vmem:[%s15488_s7 + $0x680] sm:$0xf0] }
 0x33f   :  { %6034 = vmatpush.bf16.msrb.mxu0 %v8235_v22  ;;  %5992 = vmatpush.bf16.msra.mxu1 %v9351_v46  ;;  %v9969_v22 = vld [vmem:[%s15488_s7 + $0x324] sm:$0xf]  ;;  %v5690_v17 = vadd.f32 %v5689_v21, %v5676_v9 }
 0x340   :  { %6063 = vmatpush.bf16.msrb.mxu2 %v8655_v2  ;;  %v9320_v2 = vld [vmem:[%s15488_s7 + $0xc64] sm:$0xf0]  ;;  %6076 = vmatpush.bf16.msrb.mxu3 %v8907_v25  ;;  %v9885_v46 = vld [vmem:[%s15488_s7 + $0x84] sm:$0xf] }
 0x341   :  { %v9323_v34 = vor.u32 %v10262_v39, %v9320_v2  ;;  %v8152_v2 = vld [vmem:[%s15488_s7 + $0x33c] sm:$0xf0] }
 0x342   :  { %v8155_v10 = vor.u32 %v9969_v22, %v8152_v2 }
 0x343   :  { %6064 = vmatmul.bf16.vlgmr.msrb.gmra.mxu2 %v12986_v32  ;;  %5993 = vmatpush.bf16.msra.mxu1 %v9323_v34  ;;  %v5717_v24 = vpop.f32.mrf.mxu1 }
 0x344   :  { %6112 = vmatpush.bf16.msra.mxu2 %v7959_v6  ;;  %v8206_v6 = vld [vmem:[%s15488_s7 + $0x390] sm:$0xf]  ;;  %6077 = vmatpush.bf16.msrb.mxu3 %v8879_v13  ;;  %v9955_v13 = vld [vmem:[%s15488_s7 + $0x2b4] sm:$0xf] }
 0x345   :  { %v8207_v57 = vor.u32 %v9986_v35, %v8206_v6  ;;  %v7816_v6 = vld [vmem:[%s15488_s7 + $0x9c] sm:$0xf0]  ;;  %v5729_v35 = vpop.f32.mrf.mxu2 }
 0x346   :  { %5994 = vmatmul.bf16.vlgmr.msra.gmra.mxu1 %v13468_v55 }
 0x347   :  { %6035 = vmatpush.bf16.msrb.mxu0 %v8207_v57  ;;  %6042 = vmatpush.bf16.msrb.mxu1 %v8627_v52  ;;  %v5743_v57 = vpop.f32.mrf.mxu3  ;;  %v5578_v52 = vadd.f32 %v14178_v5, %v5564_v58  ;;  %v10144_v5 = vld [vmem:[%s15488_s7 + $0x89c] sm:$0xf] }
 0x348   :  { %6113 = vmatpush.bf16.msra.mxu2 %v7931_v28  ;;  %v5562_v28 = vadd.f32 %v14089_v62, %v3234_v50  ;;  %v5702_v62 = vadd.f32 %v5701_v41, %v5688_v15  ;;  %v10084_v41 = vld [vmem:[%s15488_s7 + $0x6b8] sm:$0xf0]  ;;  %6126 = vmatpush.bf16.msra.mxu3 %v8183_v53  ;;  %v9878_v15 = vld [vmem:[%s15488_s7 + $0x4c] sm:$0xf]  ;;  %v9243_v50 = vor.u32 %v10245_v14, %v9242_v11  ;;  %v8096_v53 = vld [vmem:[%s15488_s7 + $0x2cc] sm:$0xf0] }
 0x349   :  { %v8599_v25 = vor.u32 %v10084_v41, %v8598_v42  ;;  %6078 = vmatmul.bf16.vlgmr.msrb.gmra.mxu3 %v13156_v44  ;;  %v7760_v42 = vld [vmem:[%s15488_s7 + $0x2c] sm:$0xf0] }
 0x34a   :  { %v5576_v60 = vadd.f32 %v14111_v54, %v5562_v28  ;;  %v5716_v39 = vadd.f32 %v5715_v47, %v5702_v62  ;;  %6036 = vmatmul.bf16.vlgmr.msrb.gmra.mxu0 %v12859_v36  ;;  %v8124_v28 = vld [vmem:[%s15488_s7 + $0x304] sm:$0xf0]  ;;  %v10238_v47 = vld [vmem:[%s15488_s7 + $0xb88] sm:$0xf0]  ;;  %v8542_v62 = vld [vmem:[%s15488_s7 + $0x630] sm:$0xf] }
 0x34b   :  { %6084 = vmatpush.bf16.msra.mxu0 %v9299_v49  ;;  %6043 = vmatpush.bf16.msrb.mxu1 %v8599_v25  ;;  %v8127_v34 = vor.u32 %v9962_v4, %v8124_v28  ;;  %v7791_v49 = vor.u32 %v9878_v15, %v7788_v33  ;;  %v9215_v22 = vor.u32 %v10238_v47, %v9214_v38  ;;  %v10137_v4 = vld [vmem:[%s15488_s7 + $0x864] sm:$0xf]  ;;  %v9158_v15 = vld [vmem:[%s15488_s7 + $0xb00] sm:$0xf]  ;;  %v10224_v33 = vld [vmem:[%s15488_s7 + $0xb18] sm:$0xf0] }
 0x34c   :  { %6114 = vmatpush.bf16.msra.mxu2 %v7903_v12  ;;  %v5703_v12 = vpop.f32.mrf.mxu0  ;;  %v5590_v54 = vadd.f32 %v14138_v7, %v5576_v60  ;;  %v8570_v7 = vld [vmem:[%s15488_s7 + $0x668] sm:$0xf]  ;;  %v5730_v27 = vadd.f32 %v5729_v35, %v5716_v39  ;;  %6127 = vmatpush.bf16.msra.mxu3 %v8155_v10  ;;  %v5592_v60 = vadd.f32 %v14205_v19, %v5578_v52  ;;  %v8514_v19 = vld [vmem:[%s15488_s7 + $0x5f8] sm:$0xf]  ;;  %v9948_v10 = vld [vmem:[%s15488_s7 + $0x27c] sm:$0xf] }
 0x34d   :  { %v5704_v37 = vadd.f32 %v5703_v12, %v5690_v17  ;;  %v8571_v26 = vor.u32 %v10077_v51, %v8570_v7  ;;  %v5731_v35 = vpop.f32.mrf.mxu2  ;;  %v5771_v7 = vpop.f32.mrf.mxu1  ;;  %v9941_v38 = vld [vmem:[%s15488_s7 + $0x244] sm:$0xf]  ;;  %v8040_v47 = vld [vmem:[%s15488_s7 + $0x25c] sm:$0xf0] }
 0x34e   :  { %v5604_v21 = vadd.f32 %v14222_v31, %v5590_v54  ;;  %v10070_v31 = vld [vmem:[%s15488_s7 + $0x648] sm:$0xf0]  ;;  %v5744_v12 = vadd.f32 %v5743_v57, %v5730_v27  ;;  %v5606_v58 = vadd.f32 %v14299_v18, %v5592_v60  ;;  %v8486_v18 = vld [vmem:[%s15488_s7 + $0x5c0] sm:$0xf]  ;;  %v10123_v60 = vld [vmem:[%s15488_s7 + $0x7f4] sm:$0xf] }
 0x34f   :  { %6085 = vmatpush.bf16.msra.mxu0 %v9271_v8  ;;  %v5718_v0 = vadd.f32 %v5717_v24, %v5704_v37  ;;  %6044 = vmatpush.bf16.msrb.mxu1 %v8571_v26  ;;  %v8543_v2 = vor.u32 %v10070_v31, %v8542_v62  ;;  %v8099_v8 = vor.u32 %v9955_v13, %v8096_v53  ;;  %v5745_v57 = vpop.f32.mrf.mxu3 }
 0x350   :  { %6115 = vmatpush.bf16.msra.mxu2 %v7875_v45  ;;  %v7819_v45 = vor.u32 %v9885_v46, %v7816_v6  ;;  %v5618_v43 = vadd.f32 %v14224_v3, %v5604_v21  ;;  %v8852_v3 = vld [vmem:[%s15488_s7 + $0x8b4] sm:$0xf0]  ;;  %v10231_v6 = vld [vmem:[%s15488_s7 + $0xb50] sm:$0xf0]  ;;  %6128 = vmatpush.bf16.msra.mxu3 %v8127_v34  ;;  %v9159_v34 = vor.u32 %v10224_v33, %v9158_v15 }
 0x351   :  { %v9186_v46 = vld [vmem:[%s15488_s7 + $0xb38] sm:$0xf]  ;;  %v5732_v25 = vadd.f32 %v5731_v35, %v5718_v0  ;;  %v8855_v14 = vor.u32 %v10144_v5, %v8852_v3  ;;  %v10217_v0 = vld [vmem:[%s15488_s7 + $0xae0] sm:$0xf0]  ;;  %v8043_v53 = vor.u32 %v9941_v38, %v8040_v47  ;;  %v9934_v5 = vld [vmem:[%s15488_s7 + $0x20c] sm:$0xf] }
 0x352   :  { %v5632_v39 = vadd.f32 %v14244_v48, %v5618_v43  ;;  %v10063_v48 = vld [vmem:[%s15488_s7 + $0x610] sm:$0xf0]  ;;  %v9187_v51 = vor.u32 %v10231_v6, %v9186_v46  ;;  %v9130_v43 = vld [vmem:[%s15488_s7 + $0xac8] sm:$0xf]  ;;  %v8430_v46 = vld [vmem:[%s15488_s7 + $0x550] sm:$0xf] }
 0x353   :  { %6086 = vmatpush.bf16.msra.mxu0 %v9243_v50  ;;  %6045 = vmatpush.bf16.msrb.mxu1 %v8543_v2  ;;  %v8515_v28 = vor.u32 %v10063_v48, %v8514_v19  ;;  %v5620_v50 = vadd.f32 %v14301_v1, %v5606_v58  ;;  %v5746_v26 = vadd.f32 %v5745_v57, %v5732_v25  ;;  %v8796_v1 = vld [vmem:[%s15488_s7 + $0x844] sm:$0xf0]  ;;  %v8768_v2 = vld [vmem:[%s15488_s7 + $0x80c] sm:$0xf0]  ;;  %v10042_v6 = vld [vmem:[%s15488_s7 + $0x568] sm:$0xf0] }
 0x354   :  { %6116 = vmatpush.bf16.msra.mxu2 %v7847_v61  ;;  %v9871_v61 = vld [vmem:[%s15488_s7 + $0x14] sm:$0xf]  ;;  %v5757_v41 = vpop.f32.mrf.mxu0  ;;  %v5646_v9 = vadd.f32 %v14273_v59, %v5632_v39  ;;  %v8824_v59 = vld [vmem:[%s15488_s7 + $0x87c] sm:$0xf0]  ;;  %6129 = vmatpush.bf16.msra.mxu3 %v8099_v8  ;;  %v8012_v3 = vld [vmem:[%s15488_s7 + $0x224] sm:$0xf0]  ;;  %v8431_v57 = vor.u32 %v10042_v6, %v8430_v46 }
 0x355   :  { %v7763_v54 = vor.u32 %v9871_v61, %v7760_v42  ;;  %v5758_v11 = vadd.f32 %v5757_v41, %v5744_v12  ;;  %v8827_v37 = vor.u32 %v10137_v4, %v8824_v59  ;;  %v5634_v62 = vadd.f32 %v14318_v29, %v5620_v50  ;;  %v8458_v29 = vld [vmem:[%s15488_s7 + $0x588] sm:$0xf]  ;;  %v10049_v61 = vld [vmem:[%s15488_s7 + $0x5a0] sm:$0xf0]  ;;  %v5773_v39 = vpop.f32.mrf.mxu1  ;;  %v9102_v19 = vld [vmem:[%s15488_s7 + $0xa90] sm:$0xf] }
 0x356   :  { %v5660_v17 = vadd.f32 %v14364_v56, %v5646_v9  ;;  %v10056_v56 = vld [vmem:[%s15488_s7 + $0x5d8] sm:$0xf0]  ;;  %v10210_v48 = vld [vmem:[%s15488_s7 + $0xaa8] sm:$0xf0]  ;;  %v9927_v9 = vld [vmem:[%s15488_s7 + $0x1d4] sm:$0xf]  ;;  %v8015_v25 = vor.u32 %v9934_v5, %v8012_v3 }
 0x357   :  { %6087 = vmatpush.bf16.msra.mxu0 %v9215_v22  ;;  %v5772_v27 = vadd.f32 %v5771_v7, %v5758_v11  ;;  %6046 = vmatpush.bf16.msrb.mxu1 %v8515_v28  ;;  %v8487_v52 = vor.u32 %v10056_v56, %v8486_v18  ;;  %v5648_v42 = vadd.f32 %v14347_v23, %v5634_v62  ;;  %v10032_v11 = vld [vmem:[%s15488_s7 + $0x51c] sm:$0xf]  ;;  %v9522_v7 = vld [vmem:[%s15488_s7 + $0xdd8] sm:$0xf]  ;;  %v9048_v62 = vld [vmem:[%s15488_s7 + $0xa3c] sm:$0xf0] }
 0x358   :  { %6117 = vmatpush.bf16.msra.mxu2 %v7819_v45  ;;  %v8068_v45 = vld [vmem:[%s15488_s7 + $0x294] sm:$0xf0]  ;;  %v9131_v23 = vor.u32 %v10217_v0, %v9130_v43  ;;  %v10200_v4 = vld [vmem:[%s15488_s7 + $0xa5c] sm:$0xf]  ;;  %v9103_v59 = vor.u32 %v10210_v48, %v9102_v19  ;;  %v10018_v0 = vld [vmem:[%s15488_s7 + $0x4ac] sm:$0xf] }
 0x359   :  { %v8071_v24 = vor.u32 %v9948_v10, %v8068_v45  ;;  %v6336_v21 = vpack.c.bf16 %v5772_v27, %v5660_v17  ;;  %v5662_v35 = vadd.f32 %v14420_v16, %v5648_v42  ;;  %v7984_v16 = vld [vmem:[%s15488_s7 + $0x1ec] sm:$0xf0]  ;;  %v8771_v45 = vor.u32 %v10123_v60, %v8768_v2  ;;  %v9076_v58 = vld [vmem:[%s15488_s7 + $0xa74] sm:$0xf0]  ;;  %v10116_v17 = vld [vmem:[%s15488_s7 + $0x7bc] sm:$0xf] }
 0x35a   :  { %v8740_v27 = vld [vmem:[%s15488_s7 + $0x7d4] sm:$0xf0]  ;;  %v7987_v56 = vor.u32 %v9927_v9, %v7984_v16  ;;  %v9079_v38 = vor.u32 %v10200_v4, %v9076_v58  ;;  %v10301_v42 = vld [vmem:[%s15488_s7 + $0xd80] sm:$0xf0]  ;;  %v10102_v5 = vld [vmem:[%s15488_s7 + $0x74c] sm:$0xf] }
 0x35b   :  { %6088 = vmatpush.bf16.msra.mxu0 %v9187_v51  ;;  %v6344_v31 = vunpack.c.l.bf16 %v6336_v21  ;;  %v6345_v13 = vunpack.c.h.bf16 %v6336_v21  ;;  %6130 = vmatpush.bf16.msra.mxu3 %v8071_v24  ;;  %v10315_v51 = vld [vmem:[%s15488_s7 + $0xdf0] sm:$0xf0]  ;;  %v10025_v21 = vld [vmem:[%s15488_s7 + $0x4e4] sm:$0xf]  ;;  %v8743_v47 = vor.u32 %v10116_v17, %v8740_v27  ;;  %v8684_v3 = vld [vmem:[%s15488_s7 + $0x764] sm:$0xf0] }
 0x35c   :  { %6118 = vmatpush.bf16.msra.mxu2 %v7791_v49  ;;  %v10130_v49 = vld [vmem:[%s15488_s7 + $0x82c] sm:$0xf]  ;;  %v5759_v12 = vpop.f32.mrf.mxu0  ;;  %6047 = vmatpush.bf16.msrb.mxu1 %v8487_v52  ;;  %v9523_v50 = vor.u32 %v10315_v51, %v9522_v7  ;;  %v10011_v46 = vld [vmem:[%s15488_s7 + $0x474] sm:$0xf]  ;;  %v8320_v6 = vld [vmem:[%s15488_s7 + $0x48c] sm:$0xf0] }
 0x35d   :  { %10317 = vtanh.f32 %v6344_v31  ;;  %v5760_v41 = vadd.f32 %v5759_v12, %v5746_v26  ;;  %v8799_v22 = vor.u32 %v10130_v49, %v8796_v1  ;;  %v10308_v49 = vld [vmem:[%s15488_s7 + $0xdb8] sm:$0xf0]  ;;  %v10193_v1 = vld [vmem:[%s15488_s7 + $0xa24] sm:$0xf]  ;;  %v8348_v12 = vld [vmem:[%s15488_s7 + $0x4c4] sm:$0xf0] }
 0x35e   :  { %10319 = vtanh.f32 %v6345_v13  ;;  %v10109_v31 = vld [vmem:[%s15488_s7 + $0x784] sm:$0xf]  ;;  %v8712_v13 = vld [vmem:[%s15488_s7 + $0x79c] sm:$0xf0]  ;;  %v9438_v19 = vld [vmem:[%s15488_s7 + $0xd30] sm:$0xf] }
 0x35f   :  { %6089 = vmatpush.bf16.msra.mxu0 %v9159_v34  ;;  %v5774_v8 = vadd.f32 %v5773_v39, %v5760_v41  ;;  %6131 = vmatpush.bf16.msra.mxu3 %v8043_v53  ;;  %v9494_v34 = vld [vmem:[%s15488_s7 + $0xda0] sm:$0xf]  ;;  %v9051_v53 = vor.u32 %v10193_v1, %v9048_v62  ;;  %v10186_v41 = vld [vmem:[%s15488_s7 + $0x9ec] sm:$0xf]  ;;  %v8351_v39 = vor.u32 %v10018_v0, %v8348_v12  ;;  %v10179_v9 = vld [vmem:[%s15488_s7 + $0x9b4] sm:$0xf] }
 0x360   :  { %6119 = vmatpush.bf16.msra.mxu2 %v7763_v54  ;;  %v8459_v54 = vor.u32 %v10049_v61, %v8458_v29  ;;  %v9495_v43 = vor.u32 %v10308_v49, %v9494_v34  ;;  %v8715_v29 = vor.u32 %v10109_v31, %v8712_v13  ;;  %v9466_v61 = vld [vmem:[%s15488_s7 + $0xd68] sm:$0xf]  ;;  %v10294_v48 = vld [vmem:[%s15488_s7 + $0xd48] sm:$0xf0]  ;;  %v10095_v16 = vld [vmem:[%s15488_s7 + $0x714] sm:$0xf] }
 0x361   :  { %v6340_v10 = vpack.c.bf16 %v5774_v8, %v5662_v35  ;;  %v9467_v2 = vor.u32 %v10301_v42, %v9466_v61  ;;  %v9439_v7 = vor.u32 %v10294_v48, %v9438_v19  ;;  %v10004_v51 = vld [vmem:[%s15488_s7 + $0x43c] sm:$0xf]  ;;  %v8292_v4 = vld [vmem:[%s15488_s7 + $0x454] sm:$0xf0]  ;;  %v10287_v27 = vld [vmem:[%s15488_s7 + $0xd10] sm:$0xf0] }
 0x362   :  { %6048 = vmatpush.bf16.msrb.mxu1 %v8459_v54  ;;  %v8687_v54 = vor.u32 %v10102_v5, %v8684_v3  ;;  %v9410_v17 = vld [vmem:[%s15488_s7 + $0xcf8] sm:$0xf]  ;;  %v10165_v34 = vld [vmem:[%s15488_s7 + $0x944] sm:$0xf]  ;;  %v8936_v49 = vld [vmem:[%s15488_s7 + $0x95c] sm:$0xf0] }
 0x363   :  { %6120 = vmatmul.bf16.vlgmr.msra.gmra.mxu2 %v12759_v30  ;;  %6090 = vmatpush.bf16.msra.mxu0 %v9131_v23  ;;  %v10318_v28 = vpop.eup %10317  ;;  %v6351_v15 = vunpack.c.l.bf16 %v6340_v10  ;;  %v6352_v33 = vunpack.c.h.bf16 %v6340_v10  ;;  %v7962_v10 = vld [vmem:[%s15488_s7 + $0x1a0] sm:$0xf]  ;;  %v7906_v62 = vld [vmem:[%s15488_s7 + $0x130] sm:$0xf]  ;;  %v9910_v31 = vld [vmem:[%s15488_s7 + $0x148] sm:$0xf0]  ;;  %v8939_v0 = vor.u32 %v10165_v34, %v8936_v49 }
 0x364   :  { %6168 = vmatpush.bf16.msrb.mxu2 %v8855_v14  ;;  %v8404_v14 = vld [vmem:[%s15488_s7 + $0x534] sm:$0xf0]  ;;  %v10320_v18 = vpop.eup %10319  ;;  %6132 = vmatpush.bf16.msra.mxu3 %v8015_v25  ;;  %v8992_v25 = vld [vmem:[%s15488_s7 + $0x9cc] sm:$0xf0]  ;;  %v9354_v12 = vld [vmem:[%s15488_s7 + $0xc88] sm:$0xf] }
 0x365   :  { %v8407_v24 = vor.u32 %v10032_v11, %v8404_v14  ;;  %v6372_v26 = vpack.c.bf16 %v10320_v18, %v10318_v28  ;;  %10321 = vtanh.f32 %v6351_v15  ;;  %v8656_v11 = vld [vmem:[%s15488_s7 + $0x72c] sm:$0xf0]  ;;  %v8323_v14 = vor.u32 %v10011_v46, %v8320_v6  ;;  %v10172_v15 = vld [vmem:[%s15488_s7 + $0x97c] sm:$0xf]  ;;  %v9917_v18 = vld [vmem:[%s15488_s7 + $0x180] sm:$0xf0] }
 0x366   :  { %10323 = vtanh.f32 %v6352_v33  ;;  %6049 = vmatpush.bf16.msrb.mxu1 %v8431_v57  ;;  %v8659_v58 = vor.u32 %v10095_v16, %v8656_v11  ;;  %v8964_v33 = vld [vmem:[%s15488_s7 + $0x994] sm:$0xf0]  ;;  %v8295_v57 = vor.u32 %v10004_v51, %v8292_v4  ;;  %v10158_v61 = vld [vmem:[%s15488_s7 + $0x90c] sm:$0xf]  ;;  %v8908_v42 = vld [vmem:[%s15488_s7 + $0x924] sm:$0xf0] }
 0x367   :  { %6091 = vmatpush.bf16.msra.mxu0 %v9103_v59  ;;  %6380 = vst [vmem:[%s15491_s9] sm:$0xff] %v6372_v26  ;;  %v8995_v59 = vor.u32 %v10179_v9, %v8992_v25  ;;  %v9382_v26 = vld [vmem:[%s15488_s7 + $0xcc0] sm:$0xf]  ;;  %v9903_v5 = vld [vmem:[%s15488_s7 + $0x110] sm:$0xf0]  ;;  %v9326_v3 = vld [vmem:[%s15488_s7 + $0xc50] sm:$0xf]  ;;  %v8911_v6 = vor.u32 %v10158_v61, %v8908_v42 }
 0x368   :  { %6169 = vmatpush.bf16.msrb.mxu2 %v8827_v37  ;;  %v8376_v37 = vld [vmem:[%s15488_s7 + $0x4fc] sm:$0xf0]  ;;  %6133 = vmatpush.bf16.msra.mxu3 %v7987_v56  ;;  %v9411_v56 = vor.u32 %v10287_v27, %v9410_v17  ;;  %v10151_v46 = vld [vmem:[%s15488_s7 + $0x8d4] sm:$0xf]  ;;  %v10088_v48 = vld [vmem:[%s15488_s7 + $0x6dc] sm:$0xf] }
 0x369   :  { %v8379_v52 = vor.u32 %v10025_v21, %v8376_v37  ;;  %6050 = vmatmul.bf16.vlgmr.msrb.gmra.mxu1 %v12838_v40  ;;  %v8264_v21 = vld [vmem:[%s15488_s7 + $0x41c] sm:$0xf0]  ;;  %v8967_v37 = vor.u32 %v10172_v15, %v8964_v33  ;;  %v8628_v9 = vld [vmem:[%s15488_s7 + $0x6f4] sm:$0xf0]  ;;  %v9980_v11 = vld [vmem:[%s15488_s7 + $0x378] sm:$0xf0] }
 0x36a   :  { %6098 = vmatpush.bf16.msra.mxu1 %v9523_v50  ;;  %6092 = vmatmul.bf16.vlgmr.msra.gmra.mxu0 %v13320_v20  ;;  %v9997_v50 = vld [vmem:[%s15488_s7 + $0x404] sm:$0xf]  ;;  %v8186_v25 = vld [vmem:[%s15488_s7 + $0x360] sm:$0xf]  ;;  %v8631_v4 = vor.u32 %v10088_v48, %v8628_v9  ;;  %v8158_v33 = vld [vmem:[%s15488_s7 + $0x328] sm:$0xf] }
 0x36b   :  { %6140 = vmatpush.bf16.msrb.mxu0 %v8407_v24  ;;  %v10322_v60 = vpop.eup %10321  ;;  %6134 = vmatmul.bf16.vlgmr.msra.gmra.mxu3 %v12715_v63  ;;  %v7934_v24 = vld [vmem:[%s15488_s7 + $0x168] sm:$0xf]  ;;  %v8267_v1 = vor.u32 %v9997_v50, %v8264_v21  ;;  %v8187_v17 = vor.u32 %v9980_v11, %v8186_v25  ;;  %v8600_v15 = vld [vmem:[%s15488_s7 + $0x6bc] sm:$0xf0]  ;;  %v10242_v21 = vld [vmem:[%s15488_s7 + $0xbac] sm:$0xf]  ;;  %v15015_v11 = vpop.f32.mrf.mxu0 }
 0x36c   :  { %6170 = vmatpush.bf16.msrb.mxu2 %v8799_v22  ;;  %6182 = vmatpush.bf16.msrb.mxu3 %v9079_v38  ;;  %v9020_v22 = vld [vmem:[%s15488_s7 + $0xa04] sm:$0xf0]  ;;  %v10324_v23 = vpop.eup %10323  ;;  %v10280_v38 = vld [vmem:[%s15488_s7 + $0xcd8] sm:$0xf0]  ;;  %v8130_v49 = vld [vmem:[%s15488_s7 + $0x2f0] sm:$0xf] }
 0x36d   :  { %v6376_v35 = vpack.c.bf16 %v10324_v23, %v10322_v60  ;;  %v9023_v8 = vor.u32 %v10186_v41, %v9020_v22  ;;  %v9383_v13 = vor.u32 %v10280_v38, %v9382_v26  ;;  %v7878_v41 = vld [vmem:[%s15488_s7 + $0xf8] sm:$0xf]  ;;  %v10266_v60 = vld [vmem:[%s15488_s7 + $0xc68] sm:$0xf0]  ;;  %v9983_v23 = vld [vmem:[%s15488_s7 + $0x394] sm:$0xf] }
 0x36e   :  { %6099 = vmatpush.bf16.msra.mxu1 %v9495_v43  ;;  %v8236_v43 = vld [vmem:[%s15488_s7 + $0x3e4] sm:$0xf0]  ;;  %v7879_v19 = vor.u32 %v9903_v5, %v7878_v41  ;;  %v10067_v61 = vld [vmem:[%s15488_s7 + $0x634] sm:$0xf]  ;;  %v8544_v42 = vld [vmem:[%s15488_s7 + $0x64c] sm:$0xf0] }
 0x36f   :  { %6141 = vmatpush.bf16.msrb.mxu0 %v8379_v52  ;;  %6384 = vst [vmem:[%s15491_s9 + $0x1c] sm:$0xff] %v6376_v35  ;;  %v9990_v52 = vld [vmem:[%s15488_s7 + $0x3cc] sm:$0xf]  ;;  %v8880_v35 = vld [vmem:[%s15488_s7 + $0x8ec] sm:$0xf0] }
 0x370   :  { %6171 = vmatpush.bf16.msrb.mxu2 %v8771_v45  ;;  %6183 = vmatpush.bf16.msrb.mxu3 %v9051_v53  ;;  %v9924_v45 = vld [vmem:[%s15488_s7 + $0x1b8] sm:$0xf0]  ;;  %v10273_v53 = vld [vmem:[%s15488_s7 + $0xca0] sm:$0xf0]  ;;  %v8239_v22 = vor.u32 %v9990_v52, %v8236_v43  ;;  %v8883_v51 = vor.u32 %v10151_v46, %v8880_v35  ;;  %v8572_v34 = vld [vmem:[%s15488_s7 + $0x684] sm:$0xf0]  ;;  %v8547_v46 = vor.u32 %v10067_v61, %v8544_v42 }
 0x371   :  { %v7963_v28 = vor.u32 %v9924_v45, %v7962_v10  ;;  %v9896_v10 = vld [vmem:[%s15488_s7 + $0xd8] sm:$0xf0]  ;;  %v9327_v45 = vor.u32 %v10266_v60, %v9326_v3  ;;  %v8102_v41 = vld [vmem:[%s15488_s7 + $0x2b8] sm:$0xf]  ;;  %v9875_v3 = vld [vmem:[%s15488_s7 + $0x30] sm:$0xf0]  ;;  %v14989_v60 = vpop.f32.mrf.mxu3 }
 0x372   :  { %6100 = vmatpush.bf16.msra.mxu1 %v9467_v2  ;;  %v8208_v2 = vld [vmem:[%s15488_s7 + $0x3ac] sm:$0xf0]  ;;  %v7766_v5 = vld [vmem:[%s15488_s7 + $0x18] sm:$0xf]  ;;  %v8074_v25 = vld [vmem:[%s15488_s7 + $0x280] sm:$0xf] }
 0x373   :  { %6142 = vmatpush.bf16.msrb.mxu0 %v8351_v39  ;;  %v9355_v39 = vor.u32 %v10273_v53, %v9354_v12  ;;  %v8211_v16 = vor.u32 %v9983_v23, %v8208_v2  ;;  %v9216_v12 = vld [vmem:[%s15488_s7 + $0xb8c] sm:$0xf0]  ;;  %v8858_v23 = vld [vmem:[%s15488_s7 + $0x8a0] sm:$0xf]  ;;  %v10148_v2 = vld [vmem:[%s15488_s7 + $0x8b8] sm:$0xf0] }
 0x374   :  { %6172 = vmatpush.bf16.msrb.mxu2 %v8743_v47  ;;  %6184 = vmatpush.bf16.msrb.mxu3 %v9023_v8  ;;  %v7935_v47 = vor.u32 %v9917_v18, %v7934_v24  ;;  %v10256_v8 = vld [vmem:[%s15488_s7 + $0xc1c] sm:$0xf]  ;;  %v7822_v24 = vld [vmem:[%s15488_s7 + $0x88] sm:$0xf]  ;;  %v9889_v18 = vld [vmem:[%s15488_s7 + $0xa0] sm:$0xf0]  ;;  %v8859_v9 = vor.u32 %v10148_v2, %v8858_v23 }
 0x375   :  { %v7823_v38 = vor.u32 %v9889_v18, %v7822_v24  ;;  %v9188_v35 = vld [vmem:[%s15488_s7 + $0xb54] sm:$0xf0]  ;;  %v8802_v18 = vld [vmem:[%s15488_s7 + $0x830] sm:$0xf]  ;;  %v10312_v2 = vld [vmem:[%s15488_s7 + $0xddc] sm:$0xf] }
 0x376   :  { %6101 = vmatpush.bf16.msra.mxu1 %v9439_v7  ;;  %v8516_v48 = vld [vmem:[%s15488_s7 + $0x614] sm:$0xf0] }
 0x377   :  { %6143 = vmatpush.bf16.msrb.mxu0 %v8323_v14  ;;  %v7850_v14 = vld [vmem:[%s15488_s7 + $0xc0] sm:$0xf]  ;;  %v7990_v61 = vld [vmem:[%s15488_s7 + $0x1d8] sm:$0xf] }
 0x378   :  { %6173 = vmatpush.bf16.msrb.mxu2 %v8715_v29  ;;  %6185 = vmatpush.bf16.msrb.mxu3 %v8995_v59  ;;  %v7907_v29 = vor.u32 %v9910_v31, %v7906_v62  ;;  %v10249_v59 = vld [vmem:[%s15488_s7 + $0xbe4] sm:$0xf]  ;;  %v7851_v27 = vor.u32 %v9896_v10, %v7850_v14  ;;  %v7794_v62 = vld [vmem:[%s15488_s7 + $0x50] sm:$0xf]  ;;  %v9882_v31 = vld [vmem:[%s15488_s7 + $0x68] sm:$0xf0] }
 0x379   :  { %v8830_v10 = vld [vmem:[%s15488_s7 + $0x868] sm:$0xf] }
 0x37a   :  { %6102 = vmatpush.bf16.msra.mxu1 %v9411_v56 }
 0x37b   :  { %6144 = vmatpush.bf16.msrb.mxu0 %v8295_v57  ;;  %v9973_v57 = vld [vmem:[%s15488_s7 + $0x340] sm:$0xf0] }
 0x37c   :  { %6174 = vmatpush.bf16.msrb.mxu2 %v8687_v54  ;;  %6186 = vmatpush.bf16.msrb.mxu3 %v8967_v37  ;;  %v9300_v54 = vld [vmem:[%s15488_s7 + $0xc34] sm:$0xf0]  ;;  %v9244_v37 = vld [vmem:[%s15488_s7 + $0xbc4] sm:$0xf0]  ;;  %v8159_v26 = vor.u32 %v9973_v57, %v8158_v33  ;;  %v9945_v33 = vld [vmem:[%s15488_s7 + $0x260] sm:$0xf0]  ;;  %v15043_v57 = vpop.f32.mrf.mxu1 }
 0x37d   :  { %v9303_v7 = vor.u32 %v10256_v8, %v9300_v54  ;;  %v9247_v52 = vor.u32 %v10242_v21, %v9244_v37  ;;  %v7767_v54 = vor.u32 %v9875_v3, %v7766_v5  ;;  %v10214_v21 = vld [vmem:[%s15488_s7 + $0xacc] sm:$0xf]  ;;  %v9132_v37 = vld [vmem:[%s15488_s7 + $0xae4] sm:$0xf0]  ;;  %v9931_v5 = vld [vmem:[%s15488_s7 + $0x1f0] sm:$0xf0] }
 0x37e   :  { %6103 = vmatpush.bf16.msra.mxu1 %v9383_v13  ;;  %v14962_v13 = vpop.f32.mrf.mxu2  ;;  %v8410_v3 = vld [vmem:[%s15488_s7 + $0x520] sm:$0xf] }
 0x37f   :  { %6145 = vmatpush.bf16.msrb.mxu0 %v8267_v1  ;;  %v9966_v1 = vld [vmem:[%s15488_s7 + $0x308] sm:$0xf0] }
 0x380   :  { %6175 = vmatpush.bf16.msrb.mxu2 %v8659_v58  ;;  %6187 = vmatpush.bf16.msrb.mxu3 %v8939_v0  ;;  %v9272_v58 = vld [vmem:[%s15488_s7 + $0xbfc] sm:$0xf0]  ;;  %v10235_v0 = vld [vmem:[%s15488_s7 + $0xb74] sm:$0xf]  ;;  %v8131_v53 = vor.u32 %v9966_v1, %v8130_v49  ;;  %v8018_v49 = vld [vmem:[%s15488_s7 + $0x210] sm:$0xf] }
 0x381   :  { %v9275_v56 = vor.u32 %v10249_v59, %v9272_v58  ;;  %v9938_v1 = vld [vmem:[%s15488_s7 + $0x228] sm:$0xf0] }
 0x382   :  { %6104 = vmatpush.bf16.msra.mxu1 %v9355_v39  ;;  %v9219_v39 = vor.u32 %v10235_v0, %v9216_v12  ;;  %v8432_v0 = vld [vmem:[%s15488_s7 + $0x56c] sm:$0xf0] }
 0x383   :  { %6176 = vmatmul.bf16.vlgmr.msrb.gmra.mxu2 %v12986_v32  ;;  %6146 = vmatpush.bf16.msrb.mxu0 %v8239_v22  ;;  %v9959_v22 = vld [vmem:[%s15488_s7 + $0x2d0] sm:$0xf0] }
 0x384   :  { %6224 = vmatpush.bf16.msra.mxu2 %v7963_v28  ;;  %6188 = vmatpush.bf16.msrb.mxu3 %v8911_v6  ;;  %v10081_v28 = vld [vmem:[%s15488_s7 + $0x6a4] sm:$0xf]  ;;  %v10228_v6 = vld [vmem:[%s15488_s7 + $0xb3c] sm:$0xf]  ;;  %v8103_v8 = vor.u32 %v9959_v22, %v8102_v41  ;;  %v15095_v41 = vpop.f32.mrf.mxu0  ;;  %v8019_v22 = vor.u32 %v9938_v1, %v8018_v49  ;;  %v10190_v1 = vld [vmem:[%s15488_s7 + $0xa08] sm:$0xf0] }
 0x385   :  { %v8603_v50 = vor.u32 %v10081_v28, %v8600_v15  ;;  %v9191_v14 = vor.u32 %v10228_v6, %v9188_v35  ;;  %v8046_v15 = vld [vmem:[%s15488_s7 + $0x248] sm:$0xf]  ;;  %v9082_v6 = vld [vmem:[%s15488_s7 + $0xa60] sm:$0xf] }
 0x386   :  { %6105 = vmatpush.bf16.msra.mxu1 %v9327_v45  ;;  %v10141_v45 = vld [vmem:[%s15488_s7 + $0x880] sm:$0xf0]  ;;  %v15029_v59 = vpop.f32.mrf.mxu2 }
 0x387   :  { %6147 = vmatpush.bf16.msrb.mxu0 %v8211_v16  ;;  %v9952_v16 = vld [vmem:[%s15488_s7 + $0x298] sm:$0xf0]  ;;  %v8831_v28 = vor.u32 %v10141_v45, %v8830_v10  ;;  %v8382_v45 = vld [vmem:[%s15488_s7 + $0x4e8] sm:$0xf] }
 0x388   :  { %6225 = vmatpush.bf16.msra.mxu2 %v7935_v47  ;;  %6189 = vmatpush.bf16.msrb.mxu3 %v8883_v51  ;;  %v10074_v47 = vld [vmem:[%s15488_s7 + $0x66c] sm:$0xf]  ;;  %v10221_v51 = vld [vmem:[%s15488_s7 + $0xb04] sm:$0xf]  ;;  %v8075_v58 = vor.u32 %v9952_v16, %v8074_v25  ;;  %v15126_v16 = vpop.f32.mrf.mxu1 }
 0x389   :  { %6106 = vmatmul.bf16.vlgmr.msra.gmra.mxu1 %v13468_v55  ;;  %v8575_v43 = vor.u32 %v10074_v47, %v8572_v34  ;;  %v10046_v47 = vld [vmem:[%s15488_s7 + $0x58c] sm:$0xf] }
 0x38a   :  { %6154 = vmatpush.bf16.msrb.mxu1 %v8631_v4  ;;  %6148 = vmatmul.bf16.vlgmr.msrb.gmra.mxu0 %v12859_v36  ;;  %v9160_v4 = vld [vmem:[%s15488_s7 + $0xb1c] sm:$0xf0] }
 0x38b   :  { %6196 = vmatpush.bf16.msra.mxu0 %v9303_v7  ;;  %6190 = vmatmul.bf16.vlgmr.msrb.gmra.mxu3 %v13156_v44  ;;  %v9163_v24 = vor.u32 %v10221_v51, %v9160_v4 }
 0x38c   :  { %6226 = vmatpush.bf16.msra.mxu2 %v7907_v29  ;;  %6238 = vmatpush.bf16.msra.mxu3 %v8187_v17  ;;  %v7795_v29 = vor.u32 %v9882_v31, %v7794_v62  ;;  %v10053_v17 = vld [vmem:[%s15488_s7 + $0x5c4] sm:$0xf]  ;;  %v8774_v62 = vld [vmem:[%s15488_s7 + $0x7f8] sm:$0xf]  ;;  %v9135_v31 = vor.u32 %v10214_v21, %v9132_v37  ;;  %v10022_v21 = vld [vmem:[%s15488_s7 + $0x4c8] sm:$0xf0] }
 0x38e   :  { %6155 = vmatpush.bf16.msrb.mxu1 %v8603_v50  ;;  %v15093_v42 = vpop.f32.mrf.mxu2 }
 0x38f   :  { %6197 = vmatpush.bf16.msra.mxu0 %v9275_v56  ;;  %v10134_v56 = vld [vmem:[%s15488_s7 + $0x848] sm:$0xf0] }
 0x390   :  { %6227 = vmatpush.bf16.msra.mxu2 %v7879_v19  ;;  %6239 = vmatpush.bf16.msra.mxu3 %v8159_v26  ;;  %v10060_v19 = vld [vmem:[%s15488_s7 + $0x5fc] sm:$0xf]  ;;  %v15058_v26 = vpop.f32.mrf.mxu3  ;;  %v8803_v34 = vor.u32 %v10134_v56, %v8802_v18  ;;  %v15152_v18 = vpop.f32.mrf.mxu0 }
 0x391   :  { %v8519_v7 = vor.u32 %v10060_v19, %v8516_v48  ;;  %v10120_v19 = vld [vmem:[%s15488_s7 + $0x7d8] sm:$0xf0] }
 0x392   :  { %6156 = vmatpush.bf16.msrb.mxu1 %v8575_v43  ;;  %v10039_v43 = vld [vmem:[%s15488_s7 + $0x554] sm:$0xf] }
 0x393   :  { %6198 = vmatpush.bf16.msra.mxu0 %v9247_v52  ;;  %v10127_v52 = vld [vmem:[%s15488_s7 + $0x810] sm:$0xf0]  ;;  %v8435_v48 = vor.u32 %v10039_v43, %v8432_v0  ;;  %v15183_v43 = vpop.f32.mrf.mxu1 }
 0x394   :  { %6228 = vmatpush.bf16.msra.mxu2 %v7851_v27  ;;  %6240 = vmatpush.bf16.msra.mxu3 %v8131_v53  ;;  %v8488_v27 = vld [vmem:[%s15488_s7 + $0x5dc] sm:$0xf0]  ;;  %v10207_v53 = vld [vmem:[%s15488_s7 + $0xa94] sm:$0xf]  ;;  %v8775_v23 = vor.u32 %v10127_v52, %v8774_v62  ;;  %v8690_v62 = vld [vmem:[%s15488_s7 + $0x750] sm:$0xf] }
 0x395   :  { %v8491_v50 = vor.u32 %v10053_v17, %v8488_v27  ;;  %v9496_v17 = vld [vmem:[%s15488_s7 + $0xdbc] sm:$0xf0]  ;;  %v9054_v27 = vld [vmem:[%s15488_s7 + $0xa28] sm:$0xf] }
 0x396   :  { %6157 = vmatpush.bf16.msrb.mxu1 %v8547_v46  ;;  %v9524_v46 = vld [vmem:[%s15488_s7 + $0xdf4] sm:$0xf0]  ;;  %v15169_v49 = vpop.f32.mrf.mxu2 }
 0x397   :  { %6199 = vmatpush.bf16.msra.mxu0 %v9219_v39  ;;  %v10036_v39 = vld [vmem:[%s15488_s7 + $0x538] sm:$0xf0]  ;;  %v9527_v10 = vor.u32 %v10312_v2, %v9524_v46  ;;  %v10099_v2 = vld [vmem:[%s15488_s7 + $0x730] sm:$0xf0] }
 0x398   :  { %6229 = vmatpush.bf16.msra.mxu2 %v7823_v38  ;;  %6241 = vmatpush.bf16.msra.mxu3 %v8103_v8  ;;  %v8047_v38 = vor.u32 %v9945_v33, %v8046_v15  ;;  %v10204_v8 = vld [vmem:[%s15488_s7 + $0xa78] sm:$0xf0]  ;;  %v15124_v25 = vpop.f32.mrf.mxu3  ;;  %v8718_v15 = vld [vmem:[%s15488_s7 + $0x788] sm:$0xf]  ;;  %v10113_v33 = vld [vmem:[%s15488_s7 + $0x7a0] sm:$0xf0] }
 0x399   :  { %v9083_v51 = vor.u32 %v10204_v8, %v9082_v6  ;;  %v10008_v8 = vld [vmem:[%s15488_s7 + $0x458] sm:$0xf0] }
 0x39a   :  { %6158 = vmatpush.bf16.msrb.mxu1 %v8519_v7  ;;  %v10029_v7 = vld [vmem:[%s15488_s7 + $0x500] sm:$0xf0] }
 0x39b   :  { %6200 = vmatpush.bf16.msra.mxu0 %v9191_v14  ;;  %v7991_v14 = vor.u32 %v9931_v5, %v7990_v61  ;;  %v8998_v5 = vld [vmem:[%s15488_s7 + $0x9b8] sm:$0xf] }
 0x39c   :  { %6230 = vmatpush.bf16.msra.mxu2 %v7795_v29  ;;  %6242 = vmatpush.bf16.msra.mxu3 %v8075_v58  ;;  %v9104_v29 = vld [vmem:[%s15488_s7 + $0xaac] sm:$0xf0]  ;;  %v10305_v58 = vld [vmem:[%s15488_s7 + $0xda4] sm:$0xf] }
 0x39d   :  { %v9107_v35 = vor.u32 %v10207_v53, %v9104_v29  ;;  %v9499_v56 = vor.u32 %v10305_v58, %v9496_v17  ;;  %v10015_v53 = vld [vmem:[%s15488_s7 + $0x490] sm:$0xf0]  ;;  %v8270_v58 = vld [vmem:[%s15488_s7 + $0x408] sm:$0xf]  ;;  %v10001_v17 = vld [vmem:[%s15488_s7 + $0x420] sm:$0xf0] }
 0x39e   :  { %6159 = vmatpush.bf16.msrb.mxu1 %v8491_v50  ;;  %v8354_v50 = vld [vmem:[%s15488_s7 + $0x4b0] sm:$0xf] }
 0x39f   :  { %6201 = vmatpush.bf16.msra.mxu0 %v9163_v24  ;;  %v8383_v24 = vor.u32 %v10029_v7, %v8382_v45  ;;  %v8355_v52 = vor.u32 %v10022_v21, %v8354_v50  ;;  %v8970_v45 = vld [vmem:[%s15488_s7 + $0x980] sm:$0xf]  ;;  %v10176_v7 = vld [vmem:[%s15488_s7 + $0x998] sm:$0xf0]  ;;  %v10169_v50 = vld [vmem:[%s15488_s7 + $0x960] sm:$0xf0]  ;;  %v8271_v21 = vor.u32 %v10001_v17, %v8270_v58 }
 0x3a0   :  { %6231 = vmatpush.bf16.msra.mxu2 %v7767_v54  ;;  %6243 = vmatpush.bf16.msra.mxu3 %v8047_v38  ;;  %v8746_v54 = vld [vmem:[%s15488_s7 + $0x7c0] sm:$0xf]  ;;  %v8719_v38 = vor.u32 %v10113_v33, %v8718_v15 }
 0x3a1   :  { %v8747_v4 = vor.u32 %v10120_v19, %v8746_v54  ;;  %v9384_v15 = vld [vmem:[%s15488_s7 + $0xcdc] sm:$0xf0] }
 0x3a3   :  { %6232 = vmatmul.bf16.vlgmr.msra.gmra.mxu2 %v12759_v30  ;;  %v8460_v30 = vld [vmem:[%s15488_s7 + $0x5a4] sm:$0xf0]  ;;  %6202 = vmatpush.bf16.msra.mxu0 %v9135_v31  ;;  %v10106_v31 = vld [vmem:[%s15488_s7 + $0x768] sm:$0xf0] }
 0x3a4   :  { %6280 = vmatpush.bf16.msrb.mxu2 %v8859_v9  ;;  %v8463_v12 = vor.u32 %v10046_v47, %v8460_v30  ;;  %v8411_v9 = vor.u32 %v10036_v39, %v8410_v3  ;;  %6244 = vmatpush.bf16.msra.mxu3 %v8019_v22  ;;  %v10298_v47 = vld [vmem:[%s15488_s7 + $0xd6c] sm:$0xf]  ;;  %v9468_v30 = vld [vmem:[%s15488_s7 + $0xd84] sm:$0xf0]  ;;  %v8691_v61 = vor.u32 %v10106_v31, %v8690_v62  ;;  %v9440_v22 = vld [vmem:[%s15488_s7 + $0xd4c] sm:$0xf0]  ;;  %v15200_v3 = vpop.f32.mrf.mxu3 }
 0x3a5   :  { %v9471_v0 = vor.u32 %v10298_v47, %v9468_v30  ;;  %v10183_v39 = vld [vmem:[%s15488_s7 + $0x9d0] sm:$0xf0]  ;;  %v9994_v47 = vld [vmem:[%s15488_s7 + $0x3e8] sm:$0xf0]  ;;  %v15261_v30 = vld [vmem:[%s15490_s8] sm:$0xff] }
 0x3a6   :  { %6160 = vmatpush.bf16.msrb.mxu1 %v8463_v12  ;;  %v8326_v12 = vld [vmem:[%s15488_s7 + $0x478] sm:$0xf]  ;;  %v8999_v54 = vor.u32 %v10183_v39, %v8998_v5  ;;  %v10270_v62 = vld [vmem:[%s15488_s7 + $0xc8c] sm:$0xf]  ;;  %v9356_v31 = vld [vmem:[%s15488_s7 + $0xca4] sm:$0xf0] }
 0x3a7   :  { %6203 = vmatpush.bf16.msra.mxu0 %v9107_v35  ;;  %v8327_v46 = vor.u32 %v10015_v53, %v8326_v12  ;;  %v8298_v35 = vld [vmem:[%s15488_s7 + $0x440] sm:$0xf]  ;;  %v10162_v12 = vld [vmem:[%s15488_s7 + $0x928] sm:$0xf0]  ;;  %v8214_v5 = vld [vmem:[%s15488_s7 + $0x398] sm:$0xf] }
 0x3a8   :  { %6281 = vmatpush.bf16.msrb.mxu2 %v8831_v28  ;;  %v10197_v28 = vld [vmem:[%s15488_s7 + $0xa40] sm:$0xf0]  ;;  %6245 = vmatpush.bf16.msra.mxu3 %v7991_v14  ;;  %v5897_v14 = vpop.f32.mrf.mxu2  ;;  %v9987_v39 = vld [vmem:[%s15488_s7 + $0x3b0] sm:$0xf0] }
 0x3a9   :  { %v9055_v37 = vor.u32 %v10197_v28, %v9054_v27  ;;  %v8971_v27 = vor.u32 %v10176_v7, %v8970_v45  ;;  %v10277_v28 = vld [vmem:[%s15488_s7 + $0xcc4] sm:$0xf]  ;;  %v8215_v45 = vor.u32 %v9987_v39, %v8214_v5  ;;  %v8550_v5 = vld [vmem:[%s15488_s7 + $0x638] sm:$0xf] }
 0x3aa   :  { %6161 = vmatpush.bf16.msrb.mxu1 %v8435_v48  ;;  %6204 = vmatmul.bf16.vlgmr.msra.gmra.mxu0 %v13320_v20  ;;  %v10284_v48 = vld [vmem:[%s15488_s7 + $0xcfc] sm:$0xf] }
 0x3ab   :  { %6252 = vmatpush.bf16.msrb.mxu0 %v8411_v9  ;;  %6246 = vmatmul.bf16.vlgmr.msra.gmra.mxu3 %v12715_v63  ;;  %v10291_v63 = vld [vmem:[%s15488_s7 + $0xd34] sm:$0xf]  ;;  %v9412_v9 = vld [vmem:[%s15488_s7 + $0xd14] sm:$0xf0] }
 0x3ac   :  { %6282 = vmatpush.bf16.msrb.mxu2 %v8803_v34  ;;  %6294 = vmatpush.bf16.msrb.mxu3 %v9083_v51  ;;  %v9026_v34 = vld [vmem:[%s15488_s7 + $0x9f0] sm:$0xf]  ;;  %v9443_v6 = vor.u32 %v10291_v63, %v9440_v22  ;;  %v8299_v51 = vor.u32 %v10008_v8, %v8298_v35  ;;  %v5911_v33 = vpop.f32.mrf.mxu3  ;;  %v9359_v63 = vor.u32 %v10270_v62, %v9356_v31  ;;  %v9306_v35 = vld [vmem:[%s15488_s7 + $0xc20] sm:$0xf]  ;;  %v10260_v8 = vld [vmem:[%s15488_s7 + $0xc38] sm:$0xf0] }
 0x3ad   :  { %6162 = vmatmul.bf16.vlgmr.msrb.gmra.mxu1 %v12838_v40  ;;  %v9027_v29 = vor.u32 %v10190_v1, %v9026_v34  ;;  %v3236_v34 = vperm.slane %v15261_v30, 2  ;;  %v3237_v1 = vperm.slane %v15261_v30, 3  ;;  %v9328_v22 = vld [vmem:[%s15488_s7 + $0xc6c] sm:$0xf0] }
 0x3ae   :  { %6210 = vmatpush.bf16.msra.mxu1 %v9527_v10  ;;  %v15223_v10 = vpop.f32.mrf.mxu0  ;;  %v9250_v31 = vld [vmem:[%s15488_s7 + $0xbb0] sm:$0xf] }
 0x3af   :  { %6253 = vmatpush.bf16.msrb.mxu0 %v8383_v24  ;;  %v15243_v24 = vpop.f32.mrf.mxu1 }
 0x3b0   :  { %6283 = vmatpush.bf16.msrb.mxu2 %v8775_v23  ;;  %6295 = vmatpush.bf16.msrb.mxu3 %v9055_v37  ;;  %v8662_v23 = vld [vmem:[%s15488_s7 + $0x718] sm:$0xf]  ;;  %v9387_v37 = vor.u32 %v10277_v28, %v9384_v15  ;;  %v9278_v15 = vld [vmem:[%s15488_s7 + $0xbe8] sm:$0xf] }
 0x3b1   :  { %v8663_v19 = vor.u32 %v10099_v2, %v8662_v23  ;;  %v5786_v23 = vadd.f32 %v14962_v13, %v3236_v34  ;;  %v5898_v2 = vadd.f32 %v5897_v14, %v3237_v1  ;;  %v10155_v13 = vld [vmem:[%s15488_s7 + $0x8f0] sm:$0xf0] }
 0x3b2   :  { %6211 = vmatpush.bf16.msra.mxu1 %v9499_v56  ;;  %v8942_v56 = vld [vmem:[%s15488_s7 + $0x948] sm:$0xf] }
 0x3b3   :  { %6254 = vmatpush.bf16.msrb.mxu0 %v8355_v52  ;;  %v5912_v14 = vadd.f32 %v5911_v33, %v5898_v2  ;;  %v8606_v33 = vld [vmem:[%s15488_s7 + $0x6a8] sm:$0xf] }
 0x3b4   :  { %6284 = vmatpush.bf16.msrb.mxu2 %v8747_v4  ;;  %6296 = vmatpush.bf16.msrb.mxu3 %v9027_v29  ;;  %v9415_v4 = vor.u32 %v10284_v48, %v9412_v9  ;;  %v10263_v29 = vld [vmem:[%s15488_s7 + $0xc54] sm:$0xf]  ;;  %v10092_v48 = vld [vmem:[%s15488_s7 + $0x6f8] sm:$0xf0]  ;;  %v5800_v9 = vadd.f32 %v14989_v60, %v5786_v23  ;;  %v5913_v7 = vpop.f32.mrf.mxu3  ;;  %v10253_v60 = vld [vmem:[%s15488_s7 + $0xc00] sm:$0xf0] }
 0x3b6   :  { %6212 = vmatpush.bf16.msra.mxu1 %v9471_v0  ;;  %v5925_v52 = vpop.f32.mrf.mxu0  ;;  %v8914_v0 = vld [vmem:[%s15488_s7 + $0x910] sm:$0xf]  ;;  %v5814_v58 = vadd.f32 %v15015_v11, %v5800_v9  ;;  %v10085_v11 = vld [vmem:[%s15488_s7 + $0x6c0] sm:$0xf0] }
 0x3b7   :  { %6255 = vmatpush.bf16.msrb.mxu0 %v8327_v46  ;;  %v8915_v46 = vor.u32 %v10162_v12, %v8914_v0  ;;  %v5926_v17 = vadd.f32 %v5925_v52, %v5912_v14  ;;  %v8607_v62 = vor.u32 %v10085_v11, %v8606_v33  ;;  %v8578_v52 = vld [vmem:[%s15488_s7 + $0x670] sm:$0xf] }
 0x3b8   :  { %6285 = vmatpush.bf16.msrb.mxu2 %v8719_v38  ;;  %6297 = vmatpush.bf16.msrb.mxu3 %v8999_v54  ;;  %v8242_v38 = vld [vmem:[%s15488_s7 + $0x3d0] sm:$0xf]  ;;  %v5939_v54 = vpop.f32.mrf.mxu1 }
 0x3b9   :  { %v8243_v53 = vor.u32 %v9994_v47, %v8242_v38  ;;  %v9279_v38 = vor.u32 %v10253_v60, %v9278_v15  ;;  %v5788_v47 = vadd.f32 %v15029_v59, %v3236_v34  ;;  %v10078_v59 = vld [vmem:[%s15488_s7 + $0x688] sm:$0xf0] }
 0x3ba   :  { %6213 = vmatpush.bf16.msra.mxu1 %v9443_v6  ;;  %v8886_v6 = vld [vmem:[%s15488_s7 + $0x8d8] sm:$0xf] }
 0x3bb   :  { %6256 = vmatpush.bf16.msrb.mxu0 %v8299_v51  ;;  %v9331_v51 = vor.u32 %v10263_v29, %v9328_v22  ;;  %v5802_v34 = vadd.f32 %v15058_v26, %v5788_v47  ;;  %v8579_v22 = vor.u32 %v10078_v59, %v8578_v52  ;;  %v9222_v26 = vld [vmem:[%s15488_s7 + $0xb78] sm:$0xf]  ;;  %v10050_v47 = vld [vmem:[%s15488_s7 + $0x5a8] sm:$0xf0] }
 0x3bc   :  { %6286 = vmatpush.bf16.msrb.mxu2 %v8691_v61  ;;  %6298 = vmatpush.bf16.msrb.mxu3 %v8971_v27  ;;  %v5899_v61 = vpop.f32.mrf.mxu2  ;;  %v8887_v27 = vor.u32 %v10155_v13, %v8886_v6 }
 0x3be   :  { %6214 = vmatpush.bf16.msra.mxu1 %v9415_v4  ;;  %v9307_v4 = vor.u32 %v10260_v8, %v9306_v35  ;;  %v9194_v8 = vld [vmem:[%s15488_s7 + $0xb40] sm:$0xf] }
 0x3bf   :  { %6257 = vmatpush.bf16.msrb.mxu0 %v8271_v21 }
 0x3c0   :  { %6287 = vmatpush.bf16.msrb.mxu2 %v8663_v19  ;;  %v8634_v19 = vld [vmem:[%s15488_s7 + $0x6e0] sm:$0xf]  ;;  %v5941_v29 = vpop.f32.mrf.mxu1 }
 0x3c1   :  { %v8635_v28 = vor.u32 %v10092_v48, %v8634_v19 }
 0x3c2   :  { %6215 = vmatpush.bf16.msra.mxu1 %v9387_v37  ;;  %v5927_v37 = vpop.f32.mrf.mxu0 }
 0x3c3   :  { %6288 = vmatmul.bf16.vlgmr.msrb.gmra.mxu2 %v12986_v32  ;;  %v8943_v32 = vor.u32 %v10169_v50, %v8942_v56  ;;  %6258 = vmatpush.bf16.msrb.mxu0 %v8243_v53  ;;  %v5828_v56 = vadd.f32 %v15043_v57, %v5814_v58  ;;  %v5940_v50 = vadd.f32 %v5939_v54, %v5926_v17  ;;  %v10246_v57 = vld [vmem:[%s15488_s7 + $0xbc8] sm:$0xf0]  ;;  %v5967_v53 = vpop.f32.mrf.mxu3  ;;  %v10232_v54 = vld [vmem:[%s15488_s7 + $0xb58] sm:$0xf0]  ;;  %v9166_v17 = vld [vmem:[%s15488_s7 + $0xb08] sm:$0xf] }
 0x3c4   :  { %v5953_v21 = vpop.f32.mrf.mxu2 }
 0x3c5   :  { %6299 = vmatpush.bf16.msrb.mxu3 %v8943_v32  ;;  %v5900_v32 = vadd.f32 %v5899_v61, %v3237_v1  ;;  %v5842_v1 = vadd.f32 %v15093_v42, %v5828_v56  ;;  %v5954_v12 = vadd.f32 %v5953_v21, %v5940_v50  ;;  %v5816_v61 = vadd.f32 %v15095_v41, %v5802_v34  ;;  %v10239_v42 = vld [vmem:[%s15488_s7 + $0xb90] sm:$0xf0]  ;;  %v9138_v21 = vld [vmem:[%s15488_s7 + $0xad0] sm:$0xf] }
 0x3c6   :  { %6216 = vmatpush.bf16.msra.mxu1 %v9359_v63  ;;  %v9223_v6 = vor.u32 %v10239_v42, %v9222_v26 }
 0x3c7   :  { %6259 = vmatpush.bf16.msrb.mxu0 %v8215_v45  ;;  %v5914_v0 = vadd.f32 %v5913_v7, %v5900_v32  ;;  %v5856_v41 = vadd.f32 %v15124_v25, %v5842_v1  ;;  %v5830_v39 = vadd.f32 %v15126_v16, %v5816_v61  ;;  %v5968_v23 = vadd.f32 %v5967_v53, %v5954_v12  ;;  %v8522_v25 = vld [vmem:[%s15488_s7 + $0x600] sm:$0xf]  ;;  %v10064_v16 = vld [vmem:[%s15488_s7 + $0x618] sm:$0xf0]  ;;  %v9110_v1 = vld [vmem:[%s15488_s7 + $0xa98] sm:$0xf] }
 0x3c8   :  { %v5995_v45 = vpop.f32.mrf.mxu1  ;;  %v9195_v7 = vor.u32 %v10232_v54, %v9194_v8  ;;  %v8523_v58 = vor.u32 %v10064_v16, %v8522_v25  ;;  %v10043_v12 = vld [vmem:[%s15488_s7 + $0x570] sm:$0xf0]  ;;  %v9530_v53 = vld [vmem:[%s15488_s7 + $0xde0] sm:$0xf]  ;;  %v10288_v16 = vld [vmem:[%s15488_s7 + $0xd18] sm:$0xf0] }
 0x3c9   :  { %6300 = vmatpush.bf16.msrb.mxu3 %v8915_v46  ;;  %v5928_v63 = vadd.f32 %v5927_v37, %v5914_v0  ;;  %v5870_v19 = vadd.f32 %v15152_v18, %v5856_v41  ;;  %v5844_v48 = vadd.f32 %v15169_v49, %v5830_v39  ;;  %v10225_v18 = vld [vmem:[%s15488_s7 + $0xb20] sm:$0xf0]  ;;  %v8494_v49 = vld [vmem:[%s15488_s7 + $0x5c8] sm:$0xf]  ;;  %v10218_v37 = vld [vmem:[%s15488_s7 + $0xae8] sm:$0xf0] }
 0x3ca   :  { %6217 = vmatpush.bf16.msra.mxu1 %v9331_v51  ;;  %6260 = vmatmul.bf16.vlgmr.msrb.gmra.mxu0 %v12859_v36  ;;  %v9251_v36 = vor.u32 %v10246_v57, %v9250_v31  ;;  %v5981_v46 = vpop.f32.mrf.mxu0  ;;  %v9167_v33 = vor.u32 %v10225_v18, %v9166_v17  ;;  %v9139_v57 = vor.u32 %v10218_v37, %v9138_v21  ;;  %v10211_v0 = vld [vmem:[%s15488_s7 + $0xab0] sm:$0xf0]  ;;  %v9502_v41 = vld [vmem:[%s15488_s7 + $0xda8] sm:$0xf]  ;;  %v10309_v39 = vld [vmem:[%s15488_s7 + $0xdc0] sm:$0xf0] }
 0x3cb   :  { %6308 = vmatpush.bf16.msra.mxu0 %v9307_v4  ;;  %v5942_v2 = vadd.f32 %v5941_v29, %v5928_v63  ;;  %v5982_v9 = vadd.f32 %v5981_v46, %v5968_v23  ;;  %v5884_v51 = vadd.f32 %v15183_v43, %v5870_v19  ;;  %v10057_v43 = vld [vmem:[%s15488_s7 + $0x5e0] sm:$0xf0]  ;;  %v10316_v29 = vld [vmem:[%s15488_s7 + $0xdf8] sm:$0xf0]  ;;  %v9503_v23 = vor.u32 %v10309_v39, %v9502_v41  ;;  %v10302_v46 = vld [vmem:[%s15488_s7 + $0xd88] sm:$0xf0] }
 0x3cc   :  { %v5955_v13 = vpop.f32.mrf.mxu2  ;;  %v8495_v50 = vor.u32 %v10057_v43, %v8494_v49 }
 0x3cd   :  { %6301 = vmatpush.bf16.msrb.mxu3 %v8887_v27  ;;  %6218 = vmatmul.bf16.vlgmr.msra.gmra.mxu1 %v13468_v55  ;;  %v5956_v14 = vadd.f32 %v5955_v13, %v5942_v2  ;;  %v5996_v4 = vadd.f32 %v5995_v45, %v5982_v9  ;;  %v5969_v27 = vpop.f32.mrf.mxu3  ;;  %v9474_v2 = vld [vmem:[%s15488_s7 + $0xd70] sm:$0xf]  ;;  %v9446_v13 = vld [vmem:[%s15488_s7 + $0xd38] sm:$0xf]  ;;  %v10281_v9 = vld [vmem:[%s15488_s7 + $0xce0] sm:$0xf0] }
 0x3ce   :  { %6266 = vmatpush.bf16.msrb.mxu1 %v8635_v28  ;;  %v5858_v28 = vadd.f32 %v15200_v3, %v5844_v48  ;;  %v8466_v3 = vld [vmem:[%s15488_s7 + $0x590] sm:$0xf]  ;;  %v9475_v8 = vor.u32 %v10302_v46, %v9474_v2  ;;  %v9390_v48 = vld [vmem:[%s15488_s7 + $0xcc8] sm:$0xf] }
 0x3cf   :  { %6309 = vmatpush.bf16.msra.mxu0 %v9279_v38  ;;  %v5970_v15 = vadd.f32 %v5969_v27, %v5956_v14  ;;  %v6337_v60 = vpack.c.bf16 %v5996_v4, %v5884_v51  ;;  %v8467_v34 = vor.u32 %v10050_v47, %v8466_v3  ;;  %v9391_v14 = vor.u32 %v10281_v9, %v9390_v48  ;;  %v9362_v45 = vld [vmem:[%s15488_s7 + $0xc90] sm:$0xf]  ;;  %v9334_v4 = vld [vmem:[%s15488_s7 + $0xc58] sm:$0xf] }
 0x3d0   :  { %6302 = vmatmul.bf16.vlgmr.msrb.gmra.mxu3 %v13156_v44  ;;  %v10071_v44 = vld [vmem:[%s15488_s7 + $0x650] sm:$0xf0]  ;;  %v5872_v32 = vadd.f32 %v15223_v10, %v5858_v28  ;;  %v5997_v31 = vpop.f32.mrf.mxu1  ;;  %v8438_v10 = vld [vmem:[%s15488_s7 + $0x558] sm:$0xf] }
 0x3d1   :  { %v8551_v35 = vor.u32 %v10071_v44, %v8550_v5  ;;  %v6346_v11 = vunpack.c.l.bf16 %v6337_v60  ;;  %v6347_v56 = vunpack.c.h.bf16 %v6337_v60  ;;  %v8439_v26 = vor.u32 %v10043_v12, %v8438_v10 }
 0x3d2   :  { %6267 = vmatpush.bf16.msrb.mxu1 %v8607_v62  ;;  %v5983_v38 = vpop.f32.mrf.mxu0  ;;  %v5886_v52 = vadd.f32 %v15243_v24, %v5872_v32  ;;  %v9531_v5 = vor.u32 %v10316_v29, %v9530_v53 }
 0x3d3   :  { %6310 = vmatpush.bf16.msra.mxu0 %v9251_v36  ;;  %v5984_v62 = vadd.f32 %v5983_v38, %v5970_v15  ;;  %10325 = vtanh.f32 %v6346_v11  ;;  %v9111_v36 = vor.u32 %v10211_v0, %v9110_v1 }
 0x3d4   :  { %10327 = vtanh.f32 %v6347_v56  ;;  %v6009_v18 = vpop.f32.mrf.mxu2 }
 0x3d5   :  { %v5998_v59 = vadd.f32 %v5997_v31, %v5984_v62  ;;  %v6023_v27 = vpop.f32.mrf.mxu3  ;;  %v3239_v31 = vperm.slane %v15261_v30, 5 }
 0x3d6   :  { %6268 = vmatpush.bf16.msrb.mxu1 %v8579_v22 }
 0x3d7   :  { %6311 = vmatpush.bf16.msra.mxu0 %v9223_v6  ;;  %v6341_v24 = vpack.c.bf16 %v5998_v59, %v5886_v52 }
 0x3d9   :  { %v10326_v61 = vpop.eup %10325  ;;  %v6353_v63 = vunpack.c.l.bf16 %v6341_v24  ;;  %v6354_v22 = vunpack.c.h.bf16 %v6341_v24 }
 0x3da   :  { %6269 = vmatpush.bf16.msrb.mxu1 %v8551_v35  ;;  %v10328_v42 = vpop.eup %10327  ;;  %v6037_v49 = vpop.f32.mrf.mxu0 }
 0x3db   :  { %6312 = vmatpush.bf16.msra.mxu0 %v9195_v7  ;;  %v6373_v44 = vpack.c.bf16 %v10328_v42, %v10326_v61  ;;  %10329 = vtanh.f32 %v6353_v63  ;;  %v10274_v7 = vld [vmem:[%s15488_s7 + $0xca8] sm:$0xf0] }
 0x3dc   :  { %10331 = vtanh.f32 %v6354_v22  ;;  %v9363_v51 = vor.u32 %v10274_v7, %v9362_v45  ;;  %v6011_v43 = vpop.f32.mrf.mxu2 }
 0x3dd   :  { %6381 = vst [vmem:[%s15491_s9 + $0x8] sm:$0xff] %v6373_v44  ;;  %v6025_v15 = vpop.f32.mrf.mxu3 }
 0x3de   :  { %6270 = vmatpush.bf16.msrb.mxu1 %v8523_v58  ;;  %v10267_v58 = vld [vmem:[%s15488_s7 + $0xc70] sm:$0xf0] }
 0x3df   :  { %6313 = vmatpush.bf16.msra.mxu0 %v9167_v33  ;;  %v9335_v17 = vor.u32 %v10267_v58, %v9334_v4 }
 0x3e1   :  { %v10330_v6 = vpop.eup %10329 }
 0x3e2   :  { %6271 = vmatpush.bf16.msrb.mxu1 %v8495_v50  ;;  %v10332_v35 = vpop.eup %10331  ;;  %v6039_v33 = vpop.f32.mrf.mxu0 }
 0x3e3   :  { %6314 = vmatpush.bf16.msra.mxu0 %v9139_v57  ;;  %v6377_v54 = vpack.c.bf16 %v10332_v35, %v10330_v6 }
 0x3e4   :  { %v6065_v60 = vpop.f32.mrf.mxu2 }
 0x3e5   :  { %6385 = vst [vmem:[%s15491_s9 + $0x24] sm:$0xff] %v6377_v54  ;;  %v6079_v11 = vpop.f32.mrf.mxu3 }
 0x3e6   :  { %6272 = vmatpush.bf16.msrb.mxu1 %v8467_v34  ;;  %v6051_v28 = vpop.f32.mrf.mxu1 }
 0x3e7   :  { %6315 = vmatpush.bf16.msra.mxu0 %v9111_v36 }
 0x3ea   :  { %6273 = vmatpush.bf16.msrb.mxu1 %v8439_v26  ;;  %6316 = vmatmul.bf16.vlgmr.msra.gmra.mxu0 %v13320_v20  ;;  %v10295_v20 = vld [vmem:[%s15488_s7 + $0xd50] sm:$0xf0]  ;;  %v6093_v50 = vpop.f32.mrf.mxu0 }
 0x3eb   :  { %v9447_v25 = vor.u32 %v10295_v20, %v9446_v13 }
 0x3ec   :  { %v6067_v21 = vpop.f32.mrf.mxu2 }
 0x3ed   :  { %6274 = vmatmul.bf16.vlgmr.msrb.gmra.mxu1 %v12838_v40  ;;  %v9418_v40 = vld [vmem:[%s15488_s7 + $0xd00] sm:$0xf]  ;;  %v6081_v38 = vpop.f32.mrf.mxu3 }
 0x3ee   :  { %6322 = vmatpush.bf16.msra.mxu1 %v9531_v5  ;;  %v9419_v19 = vor.u32 %v10288_v16, %v9418_v40  ;;  %v6053_v56 = vpop.f32.mrf.mxu1 }
 0x3f2   :  { %6323 = vmatpush.bf16.msra.mxu1 %v9503_v23  ;;  %v6095_v47 = vpop.f32.mrf.mxu0 }
 0x3f4   :  { %v6121_v3 = vpop.f32.mrf.mxu2 }
 0x3f5   :  { %v6135_v32 = vpop.f32.mrf.mxu3  ;;  %v6122_v34 = vadd.f32 %v6121_v3, %v3239_v31 }
 0x3f6   :  { %6324 = vmatpush.bf16.msra.mxu1 %v9475_v8 }
 0x3f7   :  { %v6136_v10 = vadd.f32 %v6135_v32, %v6122_v34 }
 0x3fa   :  { %6325 = vmatpush.bf16.msra.mxu1 %v9447_v25 }
 0x3fc   :  { %v6123_v52 = vpop.f32.mrf.mxu2 }
 0x3fd   :  { %v6137_v12 = vpop.f32.mrf.mxu3  ;;  %v6124_v26 = vadd.f32 %v6123_v52, %v3239_v31 }
 0x3fe   :  { %6326 = vmatpush.bf16.msra.mxu1 %v9419_v19 }
 0x3ff   :  { %v6138_v44 = vadd.f32 %v6137_v12, %v6124_v26 }
 0x402   :  { %6327 = vmatpush.bf16.msra.mxu1 %v9391_v14 }
 0x406   :  { %6328 = vmatpush.bf16.msra.mxu1 %v9363_v51  ;;  %v6107_v37 = vpop.f32.mrf.mxu1  ;;  %v6177_v61 = vpop.f32.mrf.mxu2 }
 0x407   :  { %v6149_v57 = vpop.f32.mrf.mxu0 }
 0x408   :  { %v6150_v53 = vadd.f32 %v6149_v57, %v6136_v10 }
 0x40a   :  { %6329 = vmatpush.bf16.msra.mxu1 %v9335_v17 }
 0x40d   :  { %6330 = vmatmul.bf16.vlgmr.msra.gmra.mxu1 %v13468_v55  ;;  %v3238_v55 = vperm.slane %v15261_v30, 4 }
 0x40e   :  { %v6109_v62 = vpop.f32.mrf.mxu1  ;;  %v6191_v39 = vpop.f32.mrf.mxu3 }
 0x40f   :  { %v6010_v59 = vadd.f32 %v6009_v18, %v3238_v55  ;;  %v6151_v63 = vpop.f32.mrf.mxu0  ;;  %v6012_v22 = vadd.f32 %v6011_v43, %v3238_v55  ;;  %v6179_v20 = vpop.f32.mrf.mxu2 }
 0x410   :  { %v6152_v46 = vadd.f32 %v6151_v63, %v6138_v44 }
 0x411   :  { %v6024_v0 = vadd.f32 %v6023_v27, %v6010_v59  ;;  %v6026_v42 = vadd.f32 %v6025_v15, %v6012_v22 }
 0x413   :  { %v6038_v24 = vadd.f32 %v6037_v49, %v6024_v0  ;;  %v6040_v2 = vadd.f32 %v6039_v33, %v6026_v42 }
 0x415   :  { %v6052_v29 = vadd.f32 %v6051_v28, %v6038_v24  ;;  %v6054_v35 = vadd.f32 %v6053_v56, %v6040_v2 }
 0x416   :  { %v6193_v45 = vpop.f32.mrf.mxu3 }
 0x417   :  { %v6066_v5 = vadd.f32 %v6065_v60, %v6052_v29  ;;  %v6068_v40 = vadd.f32 %v6067_v21, %v6054_v35 }
 0x419   :  { %v6080_v6 = vadd.f32 %v6079_v11, %v6066_v5  ;;  %v6082_v7 = vadd.f32 %v6081_v38, %v6068_v40 }
 0x41b   :  { %v6094_v25 = vadd.f32 %v6093_v50, %v6080_v6  ;;  %v6096_v27 = vadd.f32 %v6095_v47, %v6082_v7 }
 0x41d   :  { %v6108_v9 = vadd.f32 %v6107_v37, %v6094_v25  ;;  %v6110_v28 = vadd.f32 %v6109_v62, %v6096_v27  ;;  %v3240_v62 = vperm.slane %v15261_v30, 6 }
 0x426   :  { %v6233_v47 = vpop.f32.mrf.mxu2 }
 0x427   :  { %v6205_v13 = vpop.f32.mrf.mxu0  ;;  %v6234_v57 = vadd.f32 %v6233_v47, %v3240_v62 }
 0x42a   :  { %v6163_v1 = vpop.f32.mrf.mxu1 }
 0x42b   :  { %v6164_v36 = vadd.f32 %v6163_v1, %v6150_v53 }
 0x42d   :  { %v6178_v41 = vadd.f32 %v6177_v61, %v6164_v36 }
 0x42e   :  { %v6247_v32 = vpop.f32.mrf.mxu3  ;;  %v6235_v31 = vpop.f32.mrf.mxu2 }
 0x42f   :  { %v6192_v8 = vadd.f32 %v6191_v39, %v6178_v41  ;;  %v6207_v18 = vpop.f32.mrf.mxu0  ;;  %v6248_v59 = vadd.f32 %v6247_v32, %v6234_v57  ;;  %v6236_v24 = vadd.f32 %v6235_v31, %v3240_v62 }
 0x431   :  { %v6206_v16 = vadd.f32 %v6205_v13, %v6192_v8 }
 0x432   :  { %v6165_v23 = vpop.f32.mrf.mxu1 }
 0x433   :  { %v6166_v54 = vadd.f32 %v6165_v23, %v6152_v46 }
 0x435   :  { %v6180_v19 = vadd.f32 %v6179_v20, %v6166_v54 }
 0x436   :  { %v6249_v34 = vpop.f32.mrf.mxu3 }
 0x437   :  { %v6194_v51 = vadd.f32 %v6193_v45, %v6180_v19  ;;  %v6250_v53 = vadd.f32 %v6249_v34, %v6236_v24 }
 0x439   :  { %v6208_v49 = vadd.f32 %v6207_v18, %v6194_v51 }
 0x446   :  { %v6289_v10 = vpop.f32.mrf.mxu2 }
 0x447   :  { %v6261_v55 = vpop.f32.mrf.mxu0 }
 0x448   :  { %v6262_v1 = vadd.f32 %v6261_v55, %v6248_v59 }
 0x44a   :  { %v6219_v48 = vpop.f32.mrf.mxu1 }
 0x44b   :  { %v6220_v14 = vadd.f32 %v6219_v48, %v6206_v16 }
 0x44d   :  { %v6338_v4 = vpack.c.bf16 %v6220_v14, %v6108_v9 }
 0x44e   :  { %v6291_v30 = vpop.f32.mrf.mxu2 }
 0x44f   :  { %v6348_v58 = vunpack.c.l.bf16 %v6338_v4  ;;  %v6349_v17 = vunpack.c.h.bf16 %v6338_v4  ;;  %v6263_v12 = vpop.f32.mrf.mxu0 }
 0x450   :  { %v6264_v63 = vadd.f32 %v6263_v12, %v6250_v53 }
 0x451   :  { %10333 = vtanh.f32 %v6348_v58 }
 0x452   :  { %10335 = vtanh.f32 %v6349_v17  ;;  %v6221_v43 = vpop.f32.mrf.mxu1 }
 0x453   :  { %v6222_v15 = vadd.f32 %v6221_v43, %v6208_v49  ;;  %v6303_v36 = vpop.f32.mrf.mxu3 }
 0x455   :  { %v6342_v60 = vpack.c.bf16 %v6222_v15, %v6110_v28 }
 0x457   :  { %v10334_v33 = vpop.eup %10333  ;;  %v6355_v11 = vunpack.c.l.bf16 %v6342_v60  ;;  %v6356_v56 = vunpack.c.h.bf16 %v6342_v60 }
 0x458   :  { %v10336_v50 = vpop.eup %10335 }
 0x459   :  { %v6374_v21 = vpack.c.bf16 %v10336_v50, %v10334_v33  ;;  %10337 = vtanh.f32 %v6355_v11 }
 0x45a   :  { %10339 = vtanh.f32 %v6356_v56 }
 0x45b   :  { %6382 = vst [vmem:[%s15491_s9 + $0x10] sm:$0xff] %v6374_v21  ;;  %v6305_v23 = vpop.f32.mrf.mxu3 }
 0x45f   :  { %v10338_v37 = vpop.eup %10337 }
 0x460   :  { %v10340_v38 = vpop.eup %10339 }
 0x461   :  { %v6378_v3 = vpack.c.bf16 %v10340_v38, %v10338_v37 }
 0x463   :  { %6386 = vst [vmem:[%s15491_s9 + $0x2c] sm:$0xff] %v6378_v3 }
 0x467   :  { %v6317_v42 = vpop.f32.mrf.mxu0 }
 0x46a   :  { %v6275_v52 = vpop.f32.mrf.mxu1 }
 0x46b   :  { %v6276_v0 = vadd.f32 %v6275_v52, %v6262_v1 }
 0x46d   :  { %v6290_v29 = vadd.f32 %v6289_v10, %v6276_v0 }
 0x46f   :  { %v6304_v22 = vadd.f32 %v6303_v36, %v6290_v29  ;;  %v6319_v35 = vpop.f32.mrf.mxu0 }
 0x471   :  { %v6318_v5 = vadd.f32 %v6317_v42, %v6304_v22 }
 0x472   :  { %v6277_v61 = vpop.f32.mrf.mxu1 }
 0x473   :  { %v6278_v26 = vadd.f32 %v6277_v61, %v6264_v63 }
 0x475   :  { %v6292_v44 = vadd.f32 %v6291_v30, %v6278_v26 }
 0x477   :  { %v6306_v2 = vadd.f32 %v6305_v23, %v6292_v44 }
 0x479   :  { %v6320_v8 = vadd.f32 %v6319_v35, %v6306_v2 }
 0x48a   :  { %v6331_v41 = vpop.f32.mrf.mxu1 }
 0x48b   :  { %v6332_v39 = vadd.f32 %v6331_v41, %v6318_v5 }
 0x48d   :  { %v6339_v46 = vpack.c.bf16 %v6332_v39, %v6332_v39 }
 0x48f   :  { %v6350_v6 = vunpack.c.l.bf16 %v6339_v46 }
 0x491   :  { %10341 = vtanh.f32 %v6350_v6 }
 0x492   :  { %v6333_v54 = vpop.f32.mrf.mxu1 }
 0x493   :  { %v6334_v13 = vadd.f32 %v6333_v54, %v6320_v8 }
 0x495   :  { %v6343_v20 = vpack.c.bf16 %v6334_v13, %v6334_v13 }
 0x497   :  { %v10342_v25 = vpop.eup %10341  ;;  %v6357_v40 = vunpack.c.l.bf16 %v6343_v20 }
 0x498   :  { %v6375_v16 = vpack.c.bf16 %v10342_v25, %v10342_v25 }
 0x499   :  { %10343 = vtanh.f32 %v6357_v40 }
 0x49a   :  { %6383 = vst [vmem:[%s15491_s9 + $0x18] sm:$0xf] %v6375_v16 }
 0x49f   :  { %v10344_v19 = vpop.eup %10343 }
 0x4a0   :  { %v6379_v48 = vpack.c.bf16 %v10344_v19, %v10344_v19 }
 0x4a2   :  { %6387 = vst [vmem:[%s15491_s9 + $0x34] sm:$0xf] %v6379_v48 }

</bundles_post_ra>
